<compile_context>
chip_gen: v7x
topology: tpu7x:2x2x1
jax: 0.10.0
libtpu: 0.0.40
codegen_flags: <defaults>
</compile_context>

<pallas_src>
import functools

import numpy as np
import jax
import jax.numpy as jnp
from jax import lax
from jax.experimental import pallas as pl
from jax.experimental.pallas import tpu as pltpu


# ----------------------------------------------------------------------------
# Fused Bottleneck kernel: one image per grid step, everything resident in VMEM
# ----------------------------------------------------------------------------
def _bottleneck_kernel(x_ref, w1_ref, b1_ref, w2_ref, b2_ref, w3_ref, b3_ref,
                       wf1_ref, bf1_ref, wf2_ref, bf2_ref,
                       o_ref, xpad_ref, y3_ref, *, H, W):
    """Shapes (per image):
      x_ref   : (HW, Cin)  f32      w1_ref : (Cin, C2) bf16   b1_ref : (1, C2) f32
      w2_ref  : (9, C2, C2) bf16    b2_ref : (1, C2)  f32
      w3_ref  : (C2, C4)  bf16      b3_ref : (1, C4)  f32
      wf1_ref : (C4, hid) f32       bf1_ref: (1, hid) f32   (1/HW folded into wf1)
      wf2_ref : (hid, C4) f32       bf2_ref: (1, C4)  f32
      o_ref   : (HW, C4)  f32
      xpad_ref: (HW + 4W, C2) bf16  scratch (halo slab, image at offset 2W)
      y3_ref  : (HW, C4)  f32       scratch (conv3 output, reused for SE scaling)
    """
    HW = H * W
    C2 = w1_ref.shape[1]

    # ---- conv1 (1x1) + bn1 + relu ------------------------------------------------
    # In-kernel bf16 cast (x read from HBM exactly once, f32).
    x_bf = x_ref[...].astype(jnp.bfloat16)
    y1 = jnp.dot(x_bf, w1_ref[...], preferred_element_type=jnp.float32) + b1_ref[...]
    y1 = jnp.maximum(y1, 0.0)

    # Build the zero-halo slab in VMEM as bf16.  All row offsets (0, 2W, 2W+HW) are
    # multiples of W (and W % 16 == 0), so every store / per-ky load is pack-aligned.
    xpad_ref[0:2 * W, :] = jnp.zeros((2 * W, C2), jnp.bfloat16)
    xpad_ref[2 * W + HW:4 * W + HW, :] = jnp.zeros((2 * W, C2), jnp.bfloat16)
    xpad_ref[2 * W:2 * W + HW, :] = y1.astype(jnp.bfloat16)

    # ---- conv2 (3x3 grouped, pad=1) + bn2 + relu ----------------------------------
    # Grouped conv uses a block-diagonal dense weight (9, C2, C2); vertical taps are
    # aligned flat sublane-offset slices; horizontal (+/-1) taps are XLU rolls of the
    # aligned per-ky slab, with a column mask killing the wrapped / out-of-row pixels.
    xcol = lax.broadcasted_iota(jnp.int32, (HW, 1), 0) % W
    col_ok = {-1: xcol >= 1, 1: xcol < (W - 1)}

    acc = jnp.zeros((HW, C2), jnp.float32)
    for ky in range(3):
        dy = ky - 1
        start = 2 * W + dy * W                       # multiple of W -> aligned load
        base_bf = xpad_ref[start:start + HW, :]      # (HW, C2) bf16, aligned
        base_f32 = base_bf.astype(jnp.float32)       # roll in f32 (native sublane rotate)
        for kx in range(3):
            dx = kx - 1
            if dx == 0:
                tap = base_bf
            else:
                # tap[i] = base[i + dx]  (jnp.roll semantics: out[i] = in[i - shift]).
                # The single wrapped row is exactly the row col_ok[dx] zeroes.
                t = pltpu.roll(base_f32, shift=(-dx) % HW, axis=0)
                t = jnp.where(col_ok[dx], t, 0.0)
                tap = t.astype(jnp.bfloat16)
            acc = acc + jnp.dot(tap, w2_ref[ky * 3 + kx],
                                preferred_element_type=jnp.float32)
    y2 = jnp.maximum(acc + b2_ref[...], 0.0).astype(jnp.bfloat16)

    # ---- conv3 (1x1) + bn3 (no relu) ----------------------------------------------
    y3 = jnp.dot(y2, w3_ref[...], preferred_element_type=jnp.float32) + b3_ref[...]
    y3_ref[...] = y3                                 # park in VMEM scratch (reused below)

    # ---- SE: global average pool (1/HW folded into fc1) + MLP + sigmoid ------------
    pooled = jnp.sum(y3, axis=0, keepdims=True)      # (1, C4) f32 channel sums
    h = jnp.dot(pooled, wf1_ref[...], preferred_element_type=jnp.float32) + bf1_ref[...]
    h = jnp.maximum(h, 0.0)
    s = jnp.dot(h, wf2_ref[...], preferred_element_type=jnp.float32) + bf2_ref[...]
    s = jax.nn.sigmoid(s)                            # (1, C4)

    # ---- channel scale * out + identity residual -> relu ---------------------------
    # Residual re-reads the already-VMEM-resident x block (no extra HBM traffic).
    # Output kept f32 to match the PyTorch module's dtype.
    o_ref[...] = jnp.maximum(y3_ref[...] * s + x_ref[...], 0.0).astype(o_ref.dtype)


# ----------------------------------------------------------------------------
# Parameter construction / folding (host-side, once)
# ----------------------------------------------------------------------------
def fold_bn(gamma, beta, mean, var, eps=1e-5):
    scale = gamma / jnp.sqrt(var + eps)
    bias = beta - mean * scale
    return scale, bias


def densify_grouped_weight(w, groups):
    """(Cout, Cin//groups, 3, 3) grouped weight -> dense block-diagonal (9, Cin, Cout)."""
    Cout, gcin, kh, kw = w.shape
    gcout = Cout // groups
    Cin = gcin * groups
    wt = jnp.transpose(w, (2, 3, 1, 0)).reshape(kh * kw, gcin, Cout)     # [k, j, o]
    i_idx = jnp.arange(Cin)
    dense = wt[:, i_idx % gcin, :]                                       # [k, i, o]
    mask = (i_idx[:, None] // gcin) == (jnp.arange(Cout)[None, :] // gcout)
    return dense * mask[None, :, :].astype(dense.dtype)


def prepare_params(p, *, num_group, hw):
    """Fold BN into weights/bias, block-diagonalise conv2, cast matmul weights to bf16."""
    s1, b1 = fold_bn(p["bn1_gamma"], p["bn1_beta"], p["bn1_mean"], p["bn1_var"])
    s2, b2 = fold_bn(p["bn2_gamma"], p["bn2_beta"], p["bn2_mean"], p["bn2_var"])
    s3, b3 = fold_bn(p["bn3_gamma"], p["bn3_beta"], p["bn3_mean"], p["bn3_var"])
    w1 = (p["conv1_w"][:, :, 0, 0] * s1[:, None]).T                      # (Cin, C2)
    w2 = densify_grouped_weight(p["conv2_w"], num_group) * s2[None, None, :]
    w3 = (p["conv3_w"][:, :, 0, 0] * s3[:, None]).T                      # (C2, C4)
    return {
        "w1": w1.astype(jnp.bfloat16), "b1": b1.reshape(1, -1),
        "w2": w2.astype(jnp.bfloat16), "b2": b2.reshape(1, -1),
        "w3": w3.astype(jnp.bfloat16), "b3": b3.reshape(1, -1),
        # SE MLP kept in f32 (tiny); fold 1/HW of the average pool into fc1's weight.
        "w_fc1": p["fc1_w"].T / float(hw), "b_fc1": p["fc1_b"].reshape(1, -1),
        "w_fc2": p["fc2_w"].T, "b_fc2": p["fc2_b"].reshape(1, -1),
    }


def make_params(key, inplanes, planes, num_group):
    c2 = planes * 2
    c4 = planes * 4
    hid = int(round(planes / 4))
    ks = jax.random.split(key, 20)

    def nrm(k, shape, s=0.1):
        return s * jax.random.normal(k, shape, jnp.float32)

    p = {}
    p["conv1_w"] = nrm(ks[0], (c2, inplanes, 1, 1))
    p["conv2_w"] = nrm(ks[1], (c2, c2 // num_group, 3, 3))
    p["conv3_w"] = nrm(ks[2], (c4, c2, 1, 1))
    for i, (name, c) in enumerate([("bn1", c2), ("bn2", c2), ("bn3", c4)]):
        p[f"{name}_gamma"] = 1.0 + nrm(ks[3 + i], (c,))
        p[f"{name}_beta"] = nrm(ks[6 + i], (c,))
        p[f"{name}_mean"] = nrm(ks[9 + i], (c,))
        p[f"{name}_var"] = 1.0 + 0.1 * jax.random.uniform(ks[12 + i], (c,))
    p["fc1_w"] = nrm(ks[15], (hid, c4))
    p["fc1_b"] = nrm(ks[16], (hid,))
    p["fc2_w"] = nrm(ks[17], (c4, hid))
    p["fc2_b"] = nrm(ks[18], (c4,))
    return p


# ----------------------------------------------------------------------------
# Full Bottleneck forward (single fused Pallas call), NHWC in / NHWC out
# ----------------------------------------------------------------------------
def bottleneck_forward(x_nhwc, p):
    N, H, W, Cin = x_nhwc.shape
    HW = H * W
    C2 = p["w1"].shape[1]
    C4 = p["w3"].shape[1]
    HID = p["w_fc1"].shape[1]
    assert Cin == C4, "identity residual requires inplanes == planes*4"
    assert W % 16 == 0, "bf16 halo slab requires W to be a multiple of 16"

    x3 = x_nhwc.reshape(N, HW, Cin)   # free reshape, no cast in the wrapper

    out = pl.pallas_call(
        functools.partial(_bottleneck_kernel, H=H, W=W),
        out_shape=jax.ShapeDtypeStruct((N, HW, C4), jnp.float32),
        grid=(N,),
        in_specs=[
            pl.BlockSpec((None, HW, Cin), lambda n: (n, 0, 0)),   # x (f32)
            pl.BlockSpec((Cin, C2), lambda n: (0, 0)),            # w1
            pl.BlockSpec((1, C2), lambda n: (0, 0)),              # b1
            pl.BlockSpec((9, C2, C2), lambda n: (0, 0, 0)),       # w2 (block-diag dense)
            pl.BlockSpec((1, C2), lambda n: (0, 0)),              # b2
            pl.BlockSpec((C2, C4), lambda n: (0, 0)),             # w3
            pl.BlockSpec((1, C4), lambda n: (0, 0)),              # b3
            pl.BlockSpec((C4, HID), lambda n: (0, 0)),            # fc1 w (1/HW folded)
            pl.BlockSpec((1, HID), lambda n: (0, 0)),             # fc1 b
            pl.BlockSpec((HID, C4), lambda n: (0, 0)),            # fc2 w
            pl.BlockSpec((1, C4), lambda n: (0, 0)),              # fc2 b
        ],
        out_specs=pl.BlockSpec((None, HW, C4), lambda n: (n, 0, 0)),
        scratch_shapes=[
            pltpu.VMEM((HW + 4 * W, C2), jnp.bfloat16),   # halo slab
            pltpu.VMEM((HW, C4), jnp.float32),            # conv3 output / SE scaling
        ],
        compiler_params=pltpu.CompilerParams(
            dimension_semantics=("parallel",),            # N >= 2 keeps both v7x TCs busy
            vmem_limit_bytes=32 * 1024 * 1024,            # tiny usage here; raise for prod sizes
        ),
    )(x3, p["w1"], p["b1"], p["w2"], p["b2"], p["w3"], p["b3"],
      p["w_fc1"], p["b_fc1"], p["w_fc2"], p["b_fc2"])

    return out.reshape(N, H, W, C4)


# ----------------------------------------------------------------------------
# Pure-JAX reference (matches PyTorch eval-mode semantics), NCHW
# ----------------------------------------------------------------------------
def reference_forward(x, p, *, num_group):
    def bn(y, g, b, m, v, eps=1e-5):
        return (y - m[:, None, None]) / jnp.sqrt(v[:, None, None] + eps) \
            * g[:, None, None] + b[:, None, None]

    dn = ("NCHW", "OIHW", "NCHW")
    hp = lax.Precision.HIGHEST
    out = lax.conv_general_dilated(x, p["conv1_w"], (1, 1), "VALID",
                                   dimension_numbers=dn, precision=hp)
    out = jax.nn.relu(bn(out, p["bn1_gamma"], p["bn1_beta"], p["bn1_mean"], p["bn1_var"]))
    out = lax.conv_general_dilated(out, p["conv2_w"], (1, 1), ((1, 1), (1, 1)),
                                   dimension_numbers=dn, feature_group_count=num_group,
                                   precision=hp)
    out = jax.nn.relu(bn(out, p["bn2_gamma"], p["bn2_beta"], p["bn2_mean"], p["bn2_var"]))
    out = lax.conv_general_dilated(out, p["conv3_w"], (1, 1), "VALID",
                                   dimension_numbers=dn, precision=hp)
    out = bn(out, p["bn3_gamma"], p["bn3_beta"], p["bn3_mean"], p["bn3_var"])
    original = out
    pooled = jnp.mean(out, axis=(2, 3))
    h = jax.nn.relu(pooled @ p["fc1_w"].T + p["fc1_b"])
    s = jax.nn.sigmoid(h @ p["fc2_w"].T + p["fc2_b"])
    out = original * s[:, :, None, None] + x
    return jax.nn.relu(out)


# ----------------------------------------------------------------------------
if __name__ == "__main__":
    # Small but lane-friendly config: planes=32 -> C2=64, C4=128 (lane-dense output),
    # num_group=32 (module default), identity residual (inplanes == planes*4).
    planes = 32
    inplanes = planes * 4       # 128
    num_group = 32              # C2=64 -> 2 input channels per group
    N, H, W = 2, 16, 16

    key = jax.random.PRNGKey(0)
    kx, kp = jax.random.split(key)
    x_nhwc = jax.random.normal(kx, (N, H, W, inplanes), jnp.float32)
    raw = make_params(kp, inplanes, planes, num_group)
    params = prepare_params(raw, num_group=num_group, hw=H * W)

    fwd = jax.jit(bottleneck_forward)
    out = jax.block_until_ready(fwd(x_nhwc, params))

    # Reference runs in NCHW (PyTorch layout); compare in NHWC.
    x_nchw = jnp.transpose(x_nhwc, (0, 3, 1, 2))
    ref = reference_forward(x_nchw, raw, num_group=num_group)
    ref_nhwc = jnp.transpose(ref, (0, 2, 3, 1))
    # bf16 MXU path with f32 accumulation: tolerance loosened vs pure-f32.
    np.testing.assert_allclose(np.asarray(out), np.asarray(ref_nhwc),
                               rtol=2e-2, atol=2e-2)
    print("KERNEL_OK")
</pallas_src>

<mosaic_0001>
module attributes {stable_mosaic.version = 11 : i64} {
  func.func @_bottleneck_kernel(%arg0: i32, %arg1: memref<1x256x128xf32, #tpu.memory_space<vmem>>, %arg2: memref<128x64xbf16, #tpu.memory_space<vmem>>, %arg3: memref<1x64xf32, #tpu.memory_space<vmem>>, %arg4: memref<9x64x64xbf16, #tpu.memory_space<vmem>>, %arg5: memref<1x64xf32, #tpu.memory_space<vmem>>, %arg6: memref<64x128xbf16, #tpu.memory_space<vmem>>, %arg7: memref<1x128xf32, #tpu.memory_space<vmem>>, %arg8: memref<128x8xf32, #tpu.memory_space<vmem>>, %arg9: memref<1x8xf32, #tpu.memory_space<vmem>>, %arg10: memref<8x128xf32, #tpu.memory_space<vmem>>, %arg11: memref<1x128xf32, #tpu.memory_space<vmem>>, %arg12: memref<1x256x128xf32, #tpu.memory_space<vmem>>, %arg13: memref<320x64xbf16, #tpu.memory_space<vmem>>, %arg14: memref<256x128xf32, #tpu.memory_space<vmem>>) attributes {dimension_semantics = [#tpu.dimension_semantics<parallel>], iteration_bounds = array<i64: 2>, scalar_prefetch = 0 : i64, scratch_operands = 2 : i64, tpu.core_type = #tpu.core_type<tc>, window_params = [{transform_indices = @transform_0, window_bounds = array<i64: 1, 256, 128>}, {pipeline_mode = #tpu.pipeline_mode<synchronous>, transform_indices = @transform_1, window_bounds = array<i64: 128, 64>}, {pipeline_mode = #tpu.pipeline_mode<synchronous>, transform_indices = @transform_2, window_bounds = array<i64: 1, 64>}, {pipeline_mode = #tpu.pipeline_mode<synchronous>, transform_indices = @transform_3, window_bounds = array<i64: 9, 64, 64>}, {pipeline_mode = #tpu.pipeline_mode<synchronous>, transform_indices = @transform_4, window_bounds = array<i64: 1, 64>}, {pipeline_mode = #tpu.pipeline_mode<synchronous>, transform_indices = @transform_5, window_bounds = array<i64: 64, 128>}, {pipeline_mode = #tpu.pipeline_mode<synchronous>, transform_indices = @transform_6, window_bounds = array<i64: 1, 128>}, {pipeline_mode = #tpu.pipeline_mode<synchronous>, transform_indices = @transform_7, window_bounds = array<i64: 128, 8>}, {pipeline_mode = #tpu.pipeline_mode<synchronous>, transform_indices = @transform_8, window_bounds = array<i64: 1, 8>}, {pipeline_mode = #tpu.pipeline_mode<synchronous>, transform_indices = @transform_9, window_bounds = array<i64: 8, 128>}, {pipeline_mode = #tpu.pipeline_mode<synchronous>, transform_indices = @transform_10, window_bounds = array<i64: 1, 128>}, {transform_indices = @transform_11, window_bounds = array<i64: 1, 256, 128>}]} {
    %c0 = arith.constant 0 : index
    %c0_0 = arith.constant 0 : index
    %c0_1 = arith.constant 0 : index
    %0 = vector.load %arg1[%c0, %c0_0, %c0_1] : memref<1x256x128xf32, #tpu.memory_space<vmem>>, vector<1x256x128xf32>
    %1 = vector.shape_cast %0 : vector<1x256x128xf32> to vector<256x128xf32>
    %2 = arith.truncf %1 : vector<256x128xf32> to vector<256x128xbf16>
    %c0_2 = arith.constant 0 : index
    %c0_3 = arith.constant 0 : index
    %3 = vector.load %arg2[%c0_2, %c0_3] : memref<128x64xbf16, #tpu.memory_space<vmem>>, vector<128x64xbf16>
    %cst = arith.constant dense<0.000000e+00> : vector<256x64xf32>
    %4 = tpu.matmul %2, %3, %cst {dimension_numbers = #tpu.dot_dimension_numbers<[1], [0], [0], [1], [0, 0, 1, 1], [], []>} : vector<256x128xbf16>, vector<128x64xbf16>, vector<256x64xf32> -> vector<256x64xf32>
    %c0_4 = arith.constant 0 : index
    %c0_5 = arith.constant 0 : index
    %5 = vector.load %arg3[%c0_4, %c0_5] : memref<1x64xf32, #tpu.memory_space<vmem>>, vector<1x64xf32>
    %6 = vector.broadcast %5 : vector<1x64xf32> to vector<256x64xf32>
    %7 = arith.addf %4, %6 : vector<256x64xf32>
    %cst_6 = arith.constant 0.000000e+00 : f32
    %8 = vector.broadcast %cst_6 : f32 to vector<256x64xf32>
    %9 = arith.maximumf %7, %8 : vector<256x64xf32>
    %cst_7 = arith.constant 0.000000e+00 : bf16
    %10 = vector.broadcast %cst_7 : bf16 to vector<32x64xbf16>
    %c0_8 = arith.constant 0 : index
    %c0_9 = arith.constant 0 : index
    %11 = vector.load %arg13[%c0_8, %c0_9] : memref<320x64xbf16, #tpu.memory_space<vmem>>, vector<32x64xbf16>
    tpu.vector_store %arg13[%c0_8, %c0_9], %10 {strides = array<i32>} : memref<320x64xbf16, #tpu.memory_space<vmem>>, vector<32x64xbf16>,
    %cst_10 = arith.constant 0.000000e+00 : bf16
    %12 = vector.broadcast %cst_10 : bf16 to vector<32x64xbf16>
    %c288 = arith.constant 288 : index
    %c0_11 = arith.constant 0 : index
    %13 = vector.load %arg13[%c288, %c0_11] : memref<320x64xbf16, #tpu.memory_space<vmem>>, vector<32x64xbf16>
    tpu.vector_store %arg13[%c288, %c0_11], %12 {strides = array<i32>} : memref<320x64xbf16, #tpu.memory_space<vmem>>, vector<32x64xbf16>,
    %14 = arith.truncf %9 : vector<256x64xf32> to vector<256x64xbf16>
    %c32 = arith.constant 32 : index
    %c0_12 = arith.constant 0 : index
    %15 = vector.load %arg13[%c32, %c0_12] : memref<320x64xbf16, #tpu.memory_space<vmem>>, vector<256x64xbf16>
    tpu.vector_store %arg13[%c32, %c0_12], %14 {strides = array<i32>} : memref<320x64xbf16, #tpu.memory_space<vmem>>, vector<256x64xbf16>,
    %16 = tpu.iota {dimensions = array<i32: 0>} : vector<256x1xi32>
    %c16_i32 = arith.constant 16 : i32
    %c0_i32 = arith.constant 0 : i32
    %17 = arith.cmpi eq, %c16_i32, %c0_i32 : i32
    %c1_i32 = arith.constant 1 : i32
    %18 = arith.select %17, %c1_i32, %c16_i32 : i32
    %19 = vector.broadcast %18 : i32 to vector<256x1xi32>
    %20 = arith.remsi %16, %19 : vector<256x1xi32>
    %c0_i32_13 = arith.constant 0 : i32
    %21 = vector.broadcast %c0_i32_13 : i32 to vector<256x1xi32>
    %22 = arith.cmpi ne, %20, %21 : vector<256x1xi32>
    %c0_i32_14 = arith.constant 0 : i32
    %23 = vector.broadcast %c0_i32_14 : i32 to vector<256x1xi32>
    %24 = arith.cmpi slt, %20, %23 : vector<256x1xi32>
    %c0_i32_15 = arith.constant 0 : i32
    %25 = arith.cmpi slt, %18, %c0_i32_15 : i32
    %26 = vector.broadcast %25 : i1 to vector<256x1xi1>
    %27 = vector.broadcast %26 : vector<256x1xi1> to vector<256x1xi1>
    %28 = arith.xori %24, %27 : vector<256x1xi1>
    %29 = arith.andi %28, %22 : vector<256x1xi1>
    %30 = vector.broadcast %18 : i32 to vector<256x1xi32>
    %31 = arith.addi %20, %30 : vector<256x1xi32>
    %32 = arith.select %29, %31, %20 : vector<256x1xi1>, vector<256x1xi32>
    %c1_i32_16 = arith.constant 1 : i32
    %33 = vector.broadcast %c1_i32_16 : i32 to vector<256x1xi32>
    %34 = arith.cmpi sge, %32, %33 : vector<256x1xi32>
    %c15_i32 = arith.constant 15 : i32
    %35 = vector.broadcast %c15_i32 : i32 to vector<256x1xi32>
    %36 = arith.cmpi slt, %32, %35 : vector<256x1xi32>
    %cst_17 = arith.constant 0.000000e+00 : f32
    %37 = vector.broadcast %cst_17 : f32 to vector<256x64xf32>
    %c16 = arith.constant 16 : index
    %c0_18 = arith.constant 0 : index
    %38 = vector.load %arg13[%c16, %c0_18] : memref<320x64xbf16, #tpu.memory_space<vmem>>, vector<256x64xbf16>
    %39 = arith.extf %38 : vector<256x64xbf16> to vector<256x64xf32>
    %c1_i32_19 = arith.constant 1 : i32
    %40 = tpu.dynamic_rotate %39 by %c1_i32_19 dim 0 : vector<256x64xf32>, i32 -> vector<256x64xf32>
    %cst_20 = arith.constant 0.000000e+00 : f32
    %41 = vector.shape_cast %34 : vector<256x1xi1> to vector<256x1xi1>
    %42 = vector.broadcast %41 : vector<256x1xi1> to vector<256x64xi1>
    %43 = vector.broadcast %cst_20 : f32 to vector<256x64xf32>
    %44 = arith.select %42, %40, %43 : vector<256x64xi1>, vector<256x64xf32>
    %45 = arith.truncf %44 : vector<256x64xf32> to vector<256x64xbf16>
    %c0_21 = arith.constant 0 : index
    %c0_22 = arith.constant 0 : index
    %c0_23 = arith.constant 0 : index
    %46 = vector.load %arg4[%c0_21, %c0_22, %c0_23] : memref<9x64x64xbf16, #tpu.memory_space<vmem>>, vector<1x64x64xbf16>
    %47 = vector.shape_cast %46 : vector<1x64x64xbf16> to vector<64x64xbf16>
    %cst_24 = arith.constant dense<0.000000e+00> : vector<256x64xf32>
    %48 = tpu.matmul %45, %47, %cst_24 {dimension_numbers = #tpu.dot_dimension_numbers<[1], [0], [0], [1], [0, 0, 1, 1], [], []>} : vector<256x64xbf16>, vector<64x64xbf16>, vector<256x64xf32> -> vector<256x64xf32>
    %49 = arith.addf %37, %48 : vector<256x64xf32>
    %c1 = arith.constant 1 : index
    %c0_25 = arith.constant 0 : index
    %c0_26 = arith.constant 0 : index
    %50 = vector.load %arg4[%c1, %c0_25, %c0_26] : memref<9x64x64xbf16, #tpu.memory_space<vmem>>, vector<1x64x64xbf16>
    %51 = vector.shape_cast %50 : vector<1x64x64xbf16> to vector<64x64xbf16>
    %cst_27 = arith.constant dense<0.000000e+00> : vector<256x64xf32>
    %52 = tpu.matmul %38, %51, %cst_27 {dimension_numbers = #tpu.dot_dimension_numbers<[1], [0], [0], [1], [0, 0, 1, 1], [], []>} : vector<256x64xbf16>, vector<64x64xbf16>, vector<256x64xf32> -> vector<256x64xf32>
    %53 = arith.addf %49, %52 : vector<256x64xf32>
    %c255_i32 = arith.constant 255 : i32
    %54 = tpu.dynamic_rotate %39 by %c255_i32 dim 0 : vector<256x64xf32>, i32 -> vector<256x64xf32>
    %cst_28 = arith.constant 0.000000e+00 : f32
    %55 = vector.shape_cast %36 : vector<256x1xi1> to vector<256x1xi1>
    %56 = vector.broadcast %55 : vector<256x1xi1> to vector<256x64xi1>
    %57 = vector.broadcast %cst_28 : f32 to vector<256x64xf32>
    %58 = arith.select %56, %54, %57 : vector<256x64xi1>, vector<256x64xf32>
    %59 = arith.truncf %58 : vector<256x64xf32> to vector<256x64xbf16>
    %c2 = arith.constant 2 : index
    %c0_29 = arith.constant 0 : index
    %c0_30 = arith.constant 0 : index
    %60 = vector.load %arg4[%c2, %c0_29, %c0_30] : memref<9x64x64xbf16, #tpu.memory_space<vmem>>, vector<1x64x64xbf16>
    %61 = vector.shape_cast %60 : vector<1x64x64xbf16> to vector<64x64xbf16>
    %cst_31 = arith.constant dense<0.000000e+00> : vector<256x64xf32>
    %62 = tpu.matmul %59, %61, %cst_31 {dimension_numbers = #tpu.dot_dimension_numbers<[1], [0], [0], [1], [0, 0, 1, 1], [], []>} : vector<256x64xbf16>, vector<64x64xbf16>, vector<256x64xf32> -> vector<256x64xf32>
    %63 = arith.addf %53, %62 : vector<256x64xf32>
    %c32_32 = arith.constant 32 : index
    %c0_33 = arith.constant 0 : index
    %64 = vector.load %arg13[%c32_32, %c0_33] : memref<320x64xbf16, #tpu.memory_space<vmem>>, vector<256x64xbf16>
    %65 = arith.extf %64 : vector<256x64xbf16> to vector<256x64xf32>
    %c1_i32_34 = arith.constant 1 : i32
    %66 = tpu.dynamic_rotate %65 by %c1_i32_34 dim 0 : vector<256x64xf32>, i32 -> vector<256x64xf32>
    %cst_35 = arith.constant 0.000000e+00 : f32
    %67 = vector.shape_cast %34 : vector<256x1xi1> to vector<256x1xi1>
    %68 = vector.broadcast %67 : vector<256x1xi1> to vector<256x64xi1>
    %69 = vector.broadcast %cst_35 : f32 to vector<256x64xf32>
    %70 = arith.select %68, %66, %69 : vector<256x64xi1>, vector<256x64xf32>
    %71 = arith.truncf %70 : vector<256x64xf32> to vector<256x64xbf16>
    %c3 = arith.constant 3 : index
    %c0_36 = arith.constant 0 : index
    %c0_37 = arith.constant 0 : index
    %72 = vector.load %arg4[%c3, %c0_36, %c0_37] : memref<9x64x64xbf16, #tpu.memory_space<vmem>>, vector<1x64x64xbf16>
    %73 = vector.shape_cast %72 : vector<1x64x64xbf16> to vector<64x64xbf16>
    %cst_38 = arith.constant dense<0.000000e+00> : vector<256x64xf32>
    %74 = tpu.matmul %71, %73, %cst_38 {dimension_numbers = #tpu.dot_dimension_numbers<[1], [0], [0], [1], [0, 0, 1, 1], [], []>} : vector<256x64xbf16>, vector<64x64xbf16>, vector<256x64xf32> -> vector<256x64xf32>
    %75 = arith.addf %63, %74 : vector<256x64xf32>
    %c4 = arith.constant 4 : index
    %c0_39 = arith.constant 0 : index
    %c0_40 = arith.constant 0 : index
    %76 = vector.load %arg4[%c4, %c0_39, %c0_40] : memref<9x64x64xbf16, #tpu.memory_space<vmem>>, vector<1x64x64xbf16>
    %77 = vector.shape_cast %76 : vector<1x64x64xbf16> to vector<64x64xbf16>
    %cst_41 = arith.constant dense<0.000000e+00> : vector<256x64xf32>
    %78 = tpu.matmul %64, %77, %cst_41 {dimension_numbers = #tpu.dot_dimension_numbers<[1], [0], [0], [1], [0, 0, 1, 1], [], []>} : vector<256x64xbf16>, vector<64x64xbf16>, vector<256x64xf32> -> vector<256x64xf32>
    %79 = arith.addf %75, %78 : vector<256x64xf32>
    %c255_i32_42 = arith.constant 255 : i32
    %80 = tpu.dynamic_rotate %65 by %c255_i32_42 dim 0 : vector<256x64xf32>, i32 -> vector<256x64xf32>
    %cst_43 = arith.constant 0.000000e+00 : f32
    %81 = vector.shape_cast %36 : vector<256x1xi1> to vector<256x1xi1>
    %82 = vector.broadcast %81 : vector<256x1xi1> to vector<256x64xi1>
    %83 = vector.broadcast %cst_43 : f32 to vector<256x64xf32>
    %84 = arith.select %82, %80, %83 : vector<256x64xi1>, vector<256x64xf32>
    %85 = arith.truncf %84 : vector<256x64xf32> to vector<256x64xbf16>
    %c5 = arith.constant 5 : index
    %c0_44 = arith.constant 0 : index
    %c0_45 = arith.constant 0 : index
    %86 = vector.load %arg4[%c5, %c0_44, %c0_45] : memref<9x64x64xbf16, #tpu.memory_space<vmem>>, vector<1x64x64xbf16>
    %87 = vector.shape_cast %86 : vector<1x64x64xbf16> to vector<64x64xbf16>
    %cst_46 = arith.constant dense<0.000000e+00> : vector<256x64xf32>
    %88 = tpu.matmul %85, %87, %cst_46 {dimension_numbers = #tpu.dot_dimension_numbers<[1], [0], [0], [1], [0, 0, 1, 1], [], []>} : vector<256x64xbf16>, vector<64x64xbf16>, vector<256x64xf32> -> vector<256x64xf32>
    %89 = arith.addf %79, %88 : vector<256x64xf32>
    %c48 = arith.constant 48 : index
    %c0_47 = arith.constant 0 : index
    %90 = vector.load %arg13[%c48, %c0_47] : memref<320x64xbf16, #tpu.memory_space<vmem>>, vector<256x64xbf16>
    %91 = arith.extf %90 : vector<256x64xbf16> to vector<256x64xf32>
    %c1_i32_48 = arith.constant 1 : i32
    %92 = tpu.dynamic_rotate %91 by %c1_i32_48 dim 0 : vector<256x64xf32>, i32 -> vector<256x64xf32>
    %cst_49 = arith.constant 0.000000e+00 : f32
    %93 = vector.shape_cast %34 : vector<256x1xi1> to vector<256x1xi1>
    %94 = vector.broadcast %93 : vector<256x1xi1> to vector<256x64xi1>
    %95 = vector.broadcast %cst_49 : f32 to vector<256x64xf32>
    %96 = arith.select %94, %92, %95 : vector<256x64xi1>, vector<256x64xf32>
    %97 = arith.truncf %96 : vector<256x64xf32> to vector<256x64xbf16>
    %c6 = arith.constant 6 : index
    %c0_50 = arith.constant 0 : index
    %c0_51 = arith.constant 0 : index
    %98 = vector.load %arg4[%c6, %c0_50, %c0_51] : memref<9x64x64xbf16, #tpu.memory_space<vmem>>, vector<1x64x64xbf16>
    %99 = vector.shape_cast %98 : vector<1x64x64xbf16> to vector<64x64xbf16>
    %cst_52 = arith.constant dense<0.000000e+00> : vector<256x64xf32>
    %100 = tpu.matmul %97, %99, %cst_52 {dimension_numbers = #tpu.dot_dimension_numbers<[1], [0], [0], [1], [0, 0, 1, 1], [], []>} : vector<256x64xbf16>, vector<64x64xbf16>, vector<256x64xf32> -> vector<256x64xf32>
    %101 = arith.addf %89, %100 : vector<256x64xf32>
    %c7 = arith.constant 7 : index
    %c0_53 = arith.constant 0 : index
    %c0_54 = arith.constant 0 : index
    %102 = vector.load %arg4[%c7, %c0_53, %c0_54] : memref<9x64x64xbf16, #tpu.memory_space<vmem>>, vector<1x64x64xbf16>
    %103 = vector.shape_cast %102 : vector<1x64x64xbf16> to vector<64x64xbf16>
    %cst_55 = arith.constant dense<0.000000e+00> : vector<256x64xf32>
    %104 = tpu.matmul %90, %103, %cst_55 {dimension_numbers = #tpu.dot_dimension_numbers<[1], [0], [0], [1], [0, 0, 1, 1], [], []>} : vector<256x64xbf16>, vector<64x64xbf16>, vector<256x64xf32> -> vector<256x64xf32>
    %105 = arith.addf %101, %104 : vector<256x64xf32>
    %c255_i32_56 = arith.constant 255 : i32
    %106 = tpu.dynamic_rotate %91 by %c255_i32_56 dim 0 : vector<256x64xf32>, i32 -> vector<256x64xf32>
    %cst_57 = arith.constant 0.000000e+00 : f32
    %107 = vector.shape_cast %36 : vector<256x1xi1> to vector<256x1xi1>
    %108 = vector.broadcast %107 : vector<256x1xi1> to vector<256x64xi1>
    %109 = vector.broadcast %cst_57 : f32 to vector<256x64xf32>
    %110 = arith.select %108, %106, %109 : vector<256x64xi1>, vector<256x64xf32>
    %111 = arith.truncf %110 : vector<256x64xf32> to vector<256x64xbf16>
    %c8 = arith.constant 8 : index
    %c0_58 = arith.constant 0 : index
    %c0_59 = arith.constant 0 : index
    %112 = vector.load %arg4[%c8, %c0_58, %c0_59] : memref<9x64x64xbf16, #tpu.memory_space<vmem>>, vector<1x64x64xbf16>
    %113 = vector.shape_cast %112 : vector<1x64x64xbf16> to vector<64x64xbf16>
    %cst_60 = arith.constant dense<0.000000e+00> : vector<256x64xf32>
    %114 = tpu.matmul %111, %113, %cst_60 {dimension_numbers = #tpu.dot_dimension_numbers<[1], [0], [0], [1], [0, 0, 1, 1], [], []>} : vector<256x64xbf16>, vector<64x64xbf16>, vector<256x64xf32> -> vector<256x64xf32>
    %115 = arith.addf %105, %114 : vector<256x64xf32>
    %c0_61 = arith.constant 0 : index
    %c0_62 = arith.constant 0 : index
    %116 = vector.load %arg5[%c0_61, %c0_62] : memref<1x64xf32, #tpu.memory_space<vmem>>, vector<1x64xf32>
    %117 = vector.broadcast %116 : vector<1x64xf32> to vector<256x64xf32>
    %118 = arith.addf %115, %117 : vector<256x64xf32>
    %cst_63 = arith.constant 0.000000e+00 : f32
    %119 = vector.broadcast %cst_63 : f32 to vector<256x64xf32>
    %120 = arith.maximumf %118, %119 : vector<256x64xf32>
    %121 = arith.truncf %120 : vector<256x64xf32> to vector<256x64xbf16>
    %c0_64 = arith.constant 0 : index
    %c0_65 = arith.constant 0 : index
    %122 = vector.load %arg6[%c0_64, %c0_65] : memref<64x128xbf16, #tpu.memory_space<vmem>>, vector<64x128xbf16>
    %cst_66 = arith.constant dense<0.000000e+00> : vector<256x128xf32>
    %123 = tpu.matmul %121, %122, %cst_66 {dimension_numbers = #tpu.dot_dimension_numbers<[1], [0], [0], [1], [0, 0, 1, 1], [], []>} : vector<256x64xbf16>, vector<64x128xbf16>, vector<256x128xf32> -> vector<256x128xf32>
    %c0_67 = arith.constant 0 : index
    %c0_68 = arith.constant 0 : index
    %124 = vector.load %arg7[%c0_67, %c0_68] : memref<1x128xf32, #tpu.memory_space<vmem>>, vector<1x128xf32>
    %125 = vector.broadcast %124 : vector<1x128xf32> to vector<256x128xf32>
    %126 = arith.addf %123, %125 : vector<256x128xf32>
    %c0_69 = arith.constant 0 : index
    %c0_70 = arith.constant 0 : index
    %127 = vector.load %arg14[%c0_69, %c0_70] : memref<256x128xf32, #tpu.memory_space<vmem>>, vector<256x128xf32>
    tpu.vector_store %arg14[%c0_69, %c0_70], %126 {strides = array<i32>} : memref<256x128xf32, #tpu.memory_space<vmem>>, vector<256x128xf32>,
    %cst_71 = arith.constant dense<0.000000e+00> : vector<128xf32>
    %128 = vector.multi_reduction <add>, %126, %cst_71 [0] : vector<256x128xf32> to vector<128xf32>
    %129 = vector.shape_cast %128 : vector<128xf32> to vector<1x128xf32>
    %c0_72 = arith.constant 0 : index
    %c0_73 = arith.constant 0 : index
    %130 = vector.load %arg8[%c0_72, %c0_73] : memref<128x8xf32, #tpu.memory_space<vmem>>, vector<128x8xf32>
    %cst_74 = arith.constant dense<0.000000e+00> : vector<1x8xf32>
    %131 = tpu.matmul %129, %130, %cst_74 {dimension_numbers = #tpu.dot_dimension_numbers<[1], [0], [0], [1], [0, 0, 1, 1], [], []>} : vector<1x128xf32>, vector<128x8xf32>, vector<1x8xf32> -> vector<1x8xf32>
    %c0_75 = arith.constant 0 : index
    %c0_76 = arith.constant 0 : index
    %132 = vector.load %arg9[%c0_75, %c0_76] : memref<1x8xf32, #tpu.memory_space<vmem>>, vector<1x8xf32>
    %133 = arith.addf %131, %132 : vector<1x8xf32>
    %cst_77 = arith.constant 0.000000e+00 : f32
    %134 = vector.broadcast %cst_77 : f32 to vector<1x8xf32>
    %135 = arith.maximumf %133, %134 : vector<1x8xf32>
    %c0_78 = arith.constant 0 : index
    %c0_79 = arith.constant 0 : index
    %136 = vector.load %arg10[%c0_78, %c0_79] : memref<8x128xf32, #tpu.memory_space<vmem>>, vector<8x128xf32>
    %cst_80 = arith.constant dense<0.000000e+00> : vector<1x128xf32>
    %137 = tpu.matmul %135, %136, %cst_80 {dimension_numbers = #tpu.dot_dimension_numbers<[1], [0], [0], [1], [0, 0, 1, 1], [], []>} : vector<1x8xf32>, vector<8x128xf32>, vector<1x128xf32> -> vector<1x128xf32>
    %c0_81 = arith.constant 0 : index
    %c0_82 = arith.constant 0 : index
    %138 = vector.load %arg11[%c0_81, %c0_82] : memref<1x128xf32, #tpu.memory_space<vmem>>, vector<1x128xf32>
    %139 = arith.addf %137, %138 : vector<1x128xf32>
    %140 = arith.negf %139 : vector<1x128xf32>
    %141 = math.exp %140 : vector<1x128xf32>
    %cst_83 = arith.constant 1.000000e+00 : f32
    %142 = vector.broadcast %cst_83 : f32 to vector<1x128xf32>
    %143 = arith.addf %142, %141 : vector<1x128xf32>
    %144 = arith.divf %142, %143 : vector<1x128xf32>
    %c0_84 = arith.constant 0 : index
    %c0_85 = arith.constant 0 : index
    %145 = vector.load %arg14[%c0_84, %c0_85] : memref<256x128xf32, #tpu.memory_space<vmem>>, vector<256x128xf32>
    %146 = vector.broadcast %144 : vector<1x128xf32> to vector<256x128xf32>
    %147 = arith.mulf %145, %146 : vector<256x128xf32>
    %c0_86 = arith.constant 0 : index
    %c0_87 = arith.constant 0 : index
    %c0_88 = arith.constant 0 : index
    %148 = vector.load %arg1[%c0_86, %c0_87, %c0_88] : memref<1x256x128xf32, #tpu.memory_space<vmem>>, vector<1x256x128xf32>
    %149 = vector.shape_cast %148 : vector<1x256x128xf32> to vector<256x128xf32>
    %150 = arith.addf %147, %149 : vector<256x128xf32>
    %cst_89 = arith.constant 0.000000e+00 : f32
    %151 = vector.broadcast %cst_89 : f32 to vector<256x128xf32>
    %152 = arith.maximumf %150, %151 : vector<256x128xf32>
    %c0_90 = arith.constant 0 : index
    %c0_91 = arith.constant 0 : index
    %c0_92 = arith.constant 0 : index
    %153 = vector.load %arg12[%c0_90, %c0_91, %c0_92] : memref<1x256x128xf32, #tpu.memory_space<vmem>>, vector<1x256x128xf32>
    %154 = vector.shape_cast %153 : vector<1x256x128xf32> to vector<256x128xf32>
    %155 = vector.shape_cast %152 : vector<256x128xf32> to vector<1x256x128xf32>
    tpu.vector_store %arg12[%c0_90, %c0_91, %c0_92], %155 {strides = array<i32>} : memref<1x256x128xf32, #tpu.memory_space<vmem>>, vector<1x256x128xf32>,
    return
  }
  func.func @transform_0(%arg0: i32) -> (i32, i32, i32) {
    %c0_i32 = arith.constant 0 : i32
    %c0_i32_0 = arith.constant 0 : i32
    %c0_i32_1 = arith.constant 0 : i32
    return %arg0, %c0_i32, %c0_i32_0 : i32, i32, i32
  }
  func.func @transform_1(%arg0: i32) -> (i32, i32) {
    %c0_i32 = arith.constant 0 : i32
    %c0_i32_0 = arith.constant 0 : i32
    %c0_i32_1 = arith.constant 0 : i32
    return %c0_i32, %c0_i32_0 : i32, i32
  }
  func.func @transform_2(%arg0: i32) -> (i32, i32) {
    %c0_i32 = arith.constant 0 : i32
    %c0_i32_0 = arith.constant 0 : i32
    %c0_i32_1 = arith.constant 0 : i32
    return %c0_i32, %c0_i32_0 : i32, i32
  }
  func.func @transform_3(%arg0: i32) -> (i32, i32, i32) {
    %c0_i32 = arith.constant 0 : i32
    %c0_i32_0 = arith.constant 0 : i32
    %c0_i32_1 = arith.constant 0 : i32
    %c0_i32_2 = arith.constant 0 : i32
    return %c0_i32, %c0_i32_0, %c0_i32_1 : i32, i32, i32
  }
  func.func @transform_4(%arg0: i32) -> (i32, i32) {
    %c0_i32 = arith.constant 0 : i32
    %c0_i32_0 = arith.constant 0 : i32
    %c0_i32_1 = arith.constant 0 : i32
    return %c0_i32, %c0_i32_0 : i32, i32
  }
  func.func @transform_5(%arg0: i32) -> (i32, i32) {
    %c0_i32 = arith.constant 0 : i32
    %c0_i32_0 = arith.constant 0 : i32
    %c0_i32_1 = arith.constant 0 : i32
    return %c0_i32, %c0_i32_0 : i32, i32
  }
  func.func @transform_6(%arg0: i32) -> (i32, i32) {
    %c0_i32 = arith.constant 0 : i32
    %c0_i32_0 = arith.constant 0 : i32
    %c0_i32_1 = arith.constant 0 : i32
    return %c0_i32, %c0_i32_0 : i32, i32
  }
  func.func @transform_7(%arg0: i32) -> (i32, i32) {
    %c0_i32 = arith.constant 0 : i32
    %c0_i32_0 = arith.constant 0 : i32
    %c0_i32_1 = arith.constant 0 : i32
    return %c0_i32, %c0_i32_0 : i32, i32
  }
  func.func @transform_8(%arg0: i32) -> (i32, i32) {
    %c0_i32 = arith.constant 0 : i32
    %c0_i32_0 = arith.constant 0 : i32
    %c0_i32_1 = arith.constant 0 : i32
    return %c0_i32, %c0_i32_0 : i32, i32
  }
  func.func @transform_9(%arg0: i32) -> (i32, i32) {
    %c0_i32 = arith.constant 0 : i32
    %c0_i32_0 = arith.constant 0 : i32
    %c0_i32_1 = arith.constant 0 : i32
    return %c0_i32, %c0_i32_0 : i32, i32
  }
  func.func @transform_10(%arg0: i32) -> (i32, i32) {
    %c0_i32 = arith.constant 0 : i32
    %c0_i32_0 = arith.constant 0 : i32
    %c0_i32_1 = arith.constant 0 : i32
    return %c0_i32, %c0_i32_0 : i32, i32
  }
  func.func @transform_11(%arg0: i32) -> (i32, i32, i32) {
    %c0_i32 = arith.constant 0 : i32
    %c0_i32_0 = arith.constant 0 : i32
    %c0_i32_1 = arith.constant 0 : i32
    return %arg0, %c0_i32, %c0_i32_0 : i32, i32, i32
  }
}

</mosaic_0001>

<bundles_post_ra>
// kernel: bottleneck_forward.1
= control target key start
LH: loop header
LB: loop body
LE: loop exit
PB: predicated region body
PF: predicated region fallthrough
CT: control target
= control target key end

     0   :  { %s9703_s0 = inlined_call_operand.hbm [shape: f32[2,256,128], index: 0, kind: input, shape index: {}]   ;;  %s9704_s1 = inlined_call_operand.vmem [shape: bf16[128,64], index: 1, kind: input, shape index: {}]   ;;  %s9705_s2 = inlined_call_operand.vmem [shape: f32[1,64], index: 2, kind: input, shape index: {}]   ;;  %s9706_s3 = inlined_call_operand.hbm [shape: bf16[9,64,64], index: 3, kind: input, shape index: {}]   ;;  %s9707_s4 = inlined_call_operand.vmem [shape: f32[1,64], index: 4, kind: input, shape index: {}]   ;;  %s9708_s5 = inlined_call_operand.vmem [shape: bf16[64,128], index: 5, kind: input, shape index: {}]   ;;  %s9709_s6 = inlined_call_operand.vmem [shape: f32[1,128], index: 6, kind: input, shape index: {}]   ;;  %s9710_s7 = inlined_call_operand.vmem [shape: f32[128,8], index: 7, kind: input, shape index: {}]   ;;  %s9711_s8 = inlined_call_operand.vmem [shape: f32[1,8], index: 8, kind: input, shape index: {}]   ;;  %s9712_s9 = inlined_call_operand.vmem [shape: f32[8,128], index: 9, kind: input, shape index: {}]   ;;  %s9713_s10 = inlined_call_operand.vmem [shape: f32[1,128], index: 10, kind: input, shape index: {}]   ;;  %s9714_s11 = inlined_call_operand.hbm [shape: f32[2,256,128], index: 11, kind: output, shape index: {}]  }
   0x1   :  { %9885 = sst [smem:[#allocation93_spill]] %s9714_s11 }
   0x2   :  { %16 = vsyncpa [#allocation5], 0 }
   0x3   :  { %18 = vsyncpa [#allocation5 + $0x1], 0 }
   0x4   :  { %19 = vsyncpa [#allocation8], 0 }
   0x5   :  { %20 = vsyncpa [#allocation6], 0 }
   0x6   :  { %22 = vsyncpa [#allocation6 + $0x1], 0  ;;  %s7043_s17 = smov 0   ;;  %s7045_s18 = smov 0  }
   0x7   :  { %s7047_s19 = smov 0   ;;  %s7049_s20 = smov 0  }
   0x8 LB: > { %9886 = sst [smem:[#allocation13_spill]] %s6956_s17  ;;  %s7064_s21 = sadd.s32 4294967295, %s6968_s20   ;;  %s6968_s20 = sphi %s7049_s20, %s10552_s20   ;;  %s6964_s19 = sphi %s7047_s19, %s10555_s19   ;;  %s6960_s18 = sphi %s7045_s18, %s10554_s18   ;;  %s6956_s17 = sphi %s7043_s17, %s10553_s17  }
   0x9   : > { %s5465_s22 = sadd.s32 4294967294, %s6968_s20   ;;  %p48_p0 = scmp.ne.s32.totalorder %s6960_s18, %s6956_s17 }
   0xa   : > { %p9718_p1 = scmp.eq.s32.totalorder %s7064_s21, 0  ;;  %p288_p3 = scmp.eq.s32.totalorder %s5465_s22, 1 }
   0xb   : > { %p5466_p5 = scmp.ge.s32.totalorder %s6968_s20, 1  ;;  %p295_p7 = scmp.lt.s32.totalorder %s6968_s20, 3 }
   0xc   : > { %p7073_p4 = por %p9718_p1, %p48_p0  ;;  %p7078_p6 = por %p288_p3, %p48_p0 }
   0xd   : > { %p7083_p8 = pnand %p5466_p5, %p295_p7  ;;  %s6970_s26 = smov [#allocation7]  }
   0xe   : > { %s9887_s23 = scalar_select %p7073_p4, 1, 0 }
   0xf   : > { %s9888_s24 = scalar_select %p7078_p6, 1, 0 }
  0x10   : > { %s9890_s25 = scalar_select %p7083_p8, 1, 0 }
  0x11   : > { %9889 = sst [smem:[#allocation14_spill]] %s9888_s24  ;;  %s313_s27 = sshll.u32 %s6970_s26, 4  ;;  %s7087_s27 = int_to_ptr.vmem [resolvable:$true] %s313_s27 }
  0x12   : > { %p6723_p9 = pneg %p7083_p8  ;;  %s7099_s29 = sadd.s32 1, %s6968_s20  }
  0x13   : > { %9892 = sst [smem:[#allocation15_spill]] %s7099_s29  ;;  %s35_s30 = sadd.s32 1, %s6964_s19 }
  0x14   : > { %p7094_p11 = pnand %p6723_p9, %p9718_p1  ;;  %s32_s12 = ssub.s32 %s6968_s20, %s7099_s29 }
  0x15   : > { %s6840_s15 = scalar_lea.hbm %s9706_s3, 4608 }
  0x16   : > { %p6841_p12 = scmp.ne.s32.totalorder %s9706_s3, %s6840_s15  ;;  %p6842_p13 = pneg %p7094_p11 }
  0x17   : > { %p6847_p5 = scmp.lt.u32.totalorder %s6840_s15, %s9706_s3 }
  0x18   : > { %p6843_p0 = pnand %p6842_p13, %p6841_p12 }
  0x1a   : > { %p6844_p3 = pneg %p6843_p0 }
  0x1c   : > { %p6849_p7 = pnand %p6847_p5, %p6844_p3 }
  0x1e   : > { %6852 = shalt.err (!%p6849_p7)
}
  0x1f   : > { %s6853_s29 = scalar_lea.vmem %s7087_s27, 4608  ;;  %p6861_p2 = scmp.lt.s32.totalorder %s7087_s27, %s7087_s27 }
  0x20   : > { %p6854_p9 = scmp.ne.s32.totalorder %s7087_s27, %s6853_s29  ;;  %p6862_p6 = scmp.lt.s32.totalorder %s6853_s29, %s6853_s29 }
  0x22   : > { %p6856_p10 = pnand %p6854_p9, %p6842_p13  ;;  %p6863_p4 = por %p6862_p6, %p6861_p2 }
  0x24   : > { %p6857_p1 = pneg %p6856_p10 }
  0x26   : > { %p6864_p8 = pnand %p6863_p4, %p6857_p1 }
  0x28   : > { %6867 = shalt.err (!%p6864_p8)
}
  0x29   : > { %s6971_s13 = smov 64   ;;  %s6972_s24 = smov 4  }
  0x2a   : > { %6726 = dma.hbm_to_vmem [thread:$0]  (!%p7094_p11), %s9706_s3, 4608, %s7087_s27, [#allocation8], %s6971_s13, %s6971_s13, %s6972_s24  }
  0x2b   : > { %p33_p2 = scmp.eq.s32.totalorder %s32_s12, 0  ;;  %p42_p1 = scmp.ne.s32.totalorder %s6964_s19, %s6960_s18 }
  0x2c   : > { %p43_p4 = scmp.eq.s32.totalorder %s6968_s20, 0  ;;  %p6736_p6 = scmp.lt.s32.totalorder %s6968_s20, 2 }
  0x2d   : > { %s7130_s29 = scalar_select %p33_p2, %s6964_s19, %s35_s30  }
  0x2e   : > { %p44_p8 = por %p43_p4, %p42_p1  ;;  %p9893_p10 = scmp.eq.s32.totalorder %s7064_s21, 1 }
  0x2f   : > { %s348_s22 = sand.u32 1, %s6964_s19   ;;  %s5694_s26 = sshll.u32 %s6968_s20, 12 }
  0x30   : > { %p7134_p12 = por %p9893_p10, %p42_p1  ;;  %s5469_s17 = sshll.u32 %s348_s22, 8 }
  0x31   : > { %s7143_s14 = scalar_lea.hbm %s9703_s0, %s5694_s26  ;;  %s352_s27 = scalar_lea.vmem [#allocation4], %s5469_s17 }
  0x32   : > { %s359_s30 = sshll.u32 %s352_s27, 4  ;;  %p7145_p11 = pnand %p6736_p6, %p44_p8  ;;  %s7149_s30 = int_to_ptr.vmem [resolvable:$true] %s359_s30 }
  0x33   : > { %s7151_s13 = scalar_lea.sflag [#allocation5], %s348_s22  ;;  %s6868_s24 = scalar_lea.hbm %s7143_s14, 4096 }
  0x34   : > { %p6869_p13 = scmp.ne.s32.totalorder %s7143_s14, %s6868_s24  ;;  %p6870_p0 = pneg %p7145_p11 }
  0x35   : > { %s6873_s15 = scalar_lea.hbm %s9703_s0, 8192  ;;  %p6874_p7 = scmp.lt.u32.totalorder %s7143_s14, %s9703_s0 }
  0x36   : > { %p6871_p3 = pnand %p6870_p0, %p6869_p13  ;;  %p6875_p9 = scmp.lt.u32.totalorder %s6873_s15, %s6868_s24 }
  0x37   : > { %p6877_p1 = scmp.lt.u32.totalorder %s6868_s24, %s7143_s14 }
  0x38   : > { %p6872_p5 = pneg %p6871_p3  ;;  %p6876_p2 = por %p6875_p9, %p6874_p7 }
  0x3a   : > { %p6878_p4 = por %p6877_p1, %p6876_p2 }
  0x3c   : > { %p6879_p6 = pnand %p6878_p4, %p6872_p5 }
  0x3e   : > { %6882 = shalt.err (!%p6879_p6)
}
  0x3f   : > { %s6883_s22 = scalar_lea.vmem %s7149_s30, 4096  ;;  %s6973_s27 = smov [#allocation4]  }
  0x40   : > { %p6884_p8 = scmp.ne.s32.totalorder %s7149_s30, %s6883_s22  ;;  %s6888_s11 = sshll.u32 %s6973_s27, 4  ;;  %s6889_s11 = int_to_ptr.vmem [resolvable:$false] %s6888_s11 }
  0x41   : > { %s6890_s17 = scalar_lea.vmem %s6889_s11, 8192  ;;  %p6891_p3 = scmp.lt.s32.totalorder %s7149_s30, %s6889_s11 }
  0x42   : > { %p6886_p10 = pnand %p6884_p8, %p6870_p0  ;;  %p6892_p7 = scmp.lt.s32.totalorder %s6890_s17, %s6883_s22 }
  0x44   : > { %p6887_p13 = pneg %p6886_p10  ;;  %p6893_p9 = por %p6892_p7, %p6891_p3 }
  0x46   : > { %p6894_p2 = pnand %p6893_p9, %p6887_p13 }
  0x48   : > { %6897 = shalt.err (!%p6894_p2)
}
  0x49   : > { %s6974_s24 = smov 128   ;;  %s6975_s15 = smov 8  }
  0x4a   : > { %6730 = dma.hbm_to_vmem [thread:$0]  (!%p7145_p11), %s7143_s14, 4096, %s7149_s30, %s7151_s13, %s6974_s24, %s6974_s24, %s6975_s15  }
  0x4b   : > { %p9896_p0 = scmp.ne.s32.totalorder %s9890_s25, 0 }
  0x4d   : > { %371 = sbr.rel (%p9896_p0) target bundleno = 1744 (0x6d0), region = 64 }
  0x54   : > { %s7182_s26 = sand.u32 1, %s6960_s18   ;;  %p9897_p5 = scmp.ne.s32.totalorder %s9887_s23, 0 }
  0x55   : > { %s5473_s28 = sshll.u32 %s7182_s26, 8  ;;  %s374_s22 = scalar_lea.sflag [#allocation5], %s7182_s26 }
  0x56   : > { %s7188_s27 = scalar_lea.vmem [#allocation4], %s5473_s28 }
  0x57   : > { %6943 = dma.done.wait (%p9897_p5), %s374_s22, 4096  }
  0x58   : > { %6945 = vsyncadd (%p9897_p5), %s374_s22, 4294963200  ;;  %p9898_p11 = scmp.eq.s32.totalorder %s7064_s21, 0 }
  0x5a   : > { %6947 = dma.done.wait (%p9898_p11), [#allocation8], 4608   ;;  %p9899_p1 = pmov %p9898_p11 }
  0x5b   : > { %v6782_v0 = vld [vmem:[%s9704_s1] sm:$0xff]   ;;  %v6783_v1 = vld [vmem:[%s9704_s1 + $0x8] sm:$0xff]   ;;  %v6784_v2 = vld [vmem:[%s9704_s1 + $0x10] sm:$0xff]   ;;  %vm9784_vm0 = vcmask 523264   ;;  %v6976_v59 = vmov 0   ;;  %s10547_s23 = sld [smem:[#allocation93_spill]] }
  0x5c   : > { %6949 = vsyncadd (%p9899_p1), [#allocation8], 4294962688  ;;  %5939 = vmatprep.subr.bf16.mxu0 %v6782_v0  ;;  %v6785_v3 = vld [vmem:[%s9704_s1 + $0x18] sm:$0xff]   ;;  %v421_v4 = vld [vmem:[%s7188_s27] sm:$0xff]  ;;  %735 = vst.msk [vmem:[#allocation2 + $0x8] sm:$0xff] %vm9784_vm0, %v6976_v59  ;;  %s5369_s11 = scalar_lea.sflag [#allocation6], %s7182_s26 }
  0x5d   : > { %5940 = vmatpush3.bf16.msra.mxu0 %v6782_v0  ;;  %v422_v5 = vld [vmem:[%s7188_s27 + $0x8] sm:$0xff]  ;;  %v6786_v7 = vld [vmem:[%s9704_s1 + $0x20] sm:$0xff]   ;;  %v6788_v9 = vld [vmem:[%s9704_s1 + $0x30] sm:$0xff]   ;;  %736 = vst.msk [vmem:[#allocation2 + $0x90] sm:$0xff] %vm9784_vm0, %v6976_v59  ;;  %s6980_s24 = smov [#allocation9]  }
  0x5e   : > { %5941 = vmatprep.subr.bf16.mxu0 %v6783_v1  ;;  %v453_v6 = vpack.c.bf16 %v422_v5, %v421_v4  ;;  %v6787_v8 = vld [vmem:[%s9704_s1 + $0x28] sm:$0xff]   ;;  %v6789_v10 = vld [vmem:[%s9704_s1 + $0x38] sm:$0xff]   ;;  %v423_v11 = vld [vmem:[%s7188_s27 + $0x10] sm:$0xff]  ;;  %v770_v4 = vlaneseq  ;;  %s6902_s15 = sshll.u32 %s6980_s24, 4  ;;  %s6903_s15 = int_to_ptr.vmem [resolvable:$false] %s6902_s15 }
  0x5f   : > { %v424_v12 = vld [vmem:[%s7188_s27 + $0x18] sm:$0xff]  ;;  %v425_v13 = vld [vmem:[%s7188_s27 + $0x20] sm:$0xff]  ;;  %v426_v14 = vld [vmem:[%s7188_s27 + $0x28] sm:$0xff]  ;;  %s6904_s22 = scalar_lea.vmem %s6903_s15, 8192 }
  0x60   : > { %5955 = vmatprep.mubr.bf16.mxu0 %v453_v6  ;;  %v454_v15 = vpack.c.bf16 %v424_v12, %v423_v11  ;;  %v455_v16 = vpack.c.bf16 %v426_v14, %v425_v13  ;;  %v427_v17 = vld [vmem:[%s7188_s27 + $0x30] sm:$0xff]  ;;  %v428_v18 = vld [vmem:[%s7188_s27 + $0x38] sm:$0xff]  ;;  %v429_v19 = vld [vmem:[%s7188_s27 + $0x40] sm:$0xff] }
  0x61   : > { %5942 = vmatpush3.bf16.msra.mxu0 %v6783_v1  ;;  %v430_v20 = vld [vmem:[%s7188_s27 + $0x48] sm:$0xff]  ;;  %v456_v21 = vpack.c.bf16 %v428_v18, %v427_v17  ;;  %v431_v23 = vld [vmem:[%s7188_s27 + $0x50] sm:$0xff]  ;;  %v432_v24 = vld [vmem:[%s7188_s27 + $0x58] sm:$0xff] }
  0x62   : > { %5943 = vmatprep.subr.bf16.mxu0 %v6784_v2  ;;  %v457_v22 = vpack.c.bf16 %v430_v20, %v429_v19  ;;  %v433_v25 = vld [vmem:[%s7188_s27 + $0x60] sm:$0xff]  ;;  %v434_v26 = vld [vmem:[%s7188_s27 + $0x68] sm:$0xff]  ;;  %v458_v27 = vpack.c.bf16 %v432_v24, %v431_v23  ;;  %v435_v29 = vld [vmem:[%s7188_s27 + $0x70] sm:$0xff] }
  0x63   : > { %v459_v28 = vpack.c.bf16 %v434_v26, %v433_v25  ;;  %v436_v30 = vld [vmem:[%s7188_s27 + $0x78] sm:$0xff]  ;;  %v437_v31 = vld [vmem:[%s7188_s27 + $0x80] sm:$0xff]  ;;  %v438_v32 = vld [vmem:[%s7188_s27 + $0x88] sm:$0xff] }
  0x64   : > { %v460_v33 = vpack.c.bf16 %v436_v30, %v435_v29  ;;  %v461_v34 = vpack.c.bf16 %v438_v32, %v437_v31  ;;  %v439_v35 = vld [vmem:[%s7188_s27 + $0x90] sm:$0xff]  ;;  %v440_v36 = vld [vmem:[%s7188_s27 + $0x98] sm:$0xff]  ;;  %v441_v37 = vld [vmem:[%s7188_s27 + $0xa0] sm:$0xff] }
  0x65   : > { %5944 = vmatpush3.bf16.msra.mxu0 %v6784_v2  ;;  %v442_v38 = vld [vmem:[%s7188_s27 + $0xa8] sm:$0xff]  ;;  %v462_v39 = vpack.c.bf16 %v440_v36, %v439_v35  ;;  %v443_v41 = vld [vmem:[%s7188_s27 + $0xb0] sm:$0xff]  ;;  %v444_v42 = vld [vmem:[%s7188_s27 + $0xb8] sm:$0xff] }
  0x66   : > { %5945 = vmatprep.subr.bf16.mxu0 %v6785_v3  ;;  %v463_v40 = vpack.c.bf16 %v442_v38, %v441_v37  ;;  %v445_v43 = vld [vmem:[%s7188_s27 + $0xc0] sm:$0xff]  ;;  %v446_v44 = vld [vmem:[%s7188_s27 + $0xc8] sm:$0xff]  ;;  %v464_v45 = vpack.c.bf16 %v444_v42, %v443_v41  ;;  %v447_v47 = vld [vmem:[%s7188_s27 + $0xd0] sm:$0xff] }
  0x67   : > { %v465_v46 = vpack.c.bf16 %v446_v44, %v445_v43  ;;  %v448_v48 = vld [vmem:[%s7188_s27 + $0xd8] sm:$0xff]  ;;  %v449_v49 = vld [vmem:[%s7188_s27 + $0xe0] sm:$0xff]  ;;  %v450_v50 = vld [vmem:[%s7188_s27 + $0xe8] sm:$0xff] }
  0x68   : > { %v466_v51 = vpack.c.bf16 %v448_v48, %v447_v47  ;;  %v467_v52 = vpack.c.bf16 %v450_v50, %v449_v49  ;;  %v451_v53 = vld [vmem:[%s7188_s27 + $0xf0] sm:$0xff]  ;;  %v452_v54 = vld [vmem:[%s7188_s27 + $0xf8] sm:$0xff]  ;;  %v6790_v56 = vld [vmem:[#allocation7 + $0x20] sm:$0xff]  }
  0x69   : > { %5946 = vmatpush3.bf16.msra.mxu0 %v6785_v3  ;;  %v468_v55 = vpack.c.bf16 %v452_v54, %v451_v53  ;;  %v6791_v57 = vld [vmem:[#allocation7 + $0x28] sm:$0xff]   ;;  %v6792_v58 = vld [vmem:[#allocation7 + $0x30] sm:$0xff]   ;;  %v6793_v60 = vld [vmem:[#allocation7 + $0x38] sm:$0xff]  }
  0x6a   : > { %5947 = vmatprep.subr.bf16.mxu0 %v6786_v7  ;;  %v7256_v61 = vld [vmem:[#allocation2 + $0x8] sm:$0xff]  ;;  %v6794_v62 = vld [vmem:[#allocation7 + $0x60] sm:$0xff]   ;;  %v6796_v0 = vld [vmem:[#allocation7 + $0x70] sm:$0xff]  }
  0x6b   : > { %9900 = vst [vmem:[#allocation16_spill] sm:$0xff] %v7256_v61  ;;  %6451 = vmatprep.subr.bf16.mxu1 %v6794_v62  ;;  %v6795_v63 = vld [vmem:[#allocation7 + $0x68] sm:$0xff]   ;;  %v6797_v1 = vld [vmem:[#allocation7 + $0x78] sm:$0xff]   ;;  %v7260_v2 = vld [vmem:[#allocation7 + $0x80] sm:$0xff]   ;;  %v9723_v20 = vunpack.c.h.bf16 %v7256_v61  ;;  %v1267_v23 = vunpack.c.l.bf16 %v7256_v61 }
  0x6c   : > { %6455 = vmatpush3.bf16.msra.mxu1 %v6794_v62  ;;  %v7263_v3 = vld [vmem:[#allocation7] sm:$0xff]  }
  0x6d   : > { %5948 = vmatpush3.bf16.msra.mxu0 %v6786_v7  ;;  %6452 = vmatprep.subr.bf16.mxu1 %v6795_v63  ;;  %v7269_v5 = vld [vmem:[%s9705_s2] ss:$0 sm:$0xff]  ;;  %v7289_v31 = vrot.slane %v9723_v20, 7  ;;  %v7296_v36 = vrot.slane %v1267_v23, 7  ;;  %v7298_v37 = vrot.slane %v1267_v23, 1 }
  0x6e   : > { %5949 = vmatprep.subr.bf16.mxu0 %v6787_v8 }
  0x6f   : > { %9901 = vst [vmem:[#allocation17_spill] sm:$0xff] %v7298_v37 }
  0x70   : > { %6456 = vmatpush3.bf16.msra.mxu1 %v6795_v63 }
  0x71   : > { %5950 = vmatpush3.bf16.msra.mxu0 %v6787_v8  ;;  %6453 = vmatprep.subr.bf16.mxu1 %v6796_v0 }
  0x72   : > { %5951 = vmatprep.subr.bf16.mxu0 %v6788_v9 }
  0x74   : > { %6457 = vmatpush3.bf16.msra.mxu1 %v6796_v0 }
  0x75   : > { %5952 = vmatpush3.bf16.msra.mxu0 %v6788_v9  ;;  %6454 = vmatprep.subr.bf16.mxu1 %v6797_v1  ;;  %v7272_v9 = vshrl.u32 %v770_v4, 7 }
  0x76   : > { %5953 = vmatprep.subr.bf16.mxu0 %v6789_v10 }
  0x77   : > { %v774_v17 = vadd.s32 24, %v7272_v9  ;;  %v7301_v38 = vadd.s32 64, %v7272_v9  ;;  %v7308_v41 = vadd.s32 96, %v7272_v9  ;;  %v7311_v42 = vadd.s32 48, %v7272_v9 }
  0x78   : > { %6458 = vmatpush3.bf16.msra.mxu1 %v6797_v1  ;;  %vm9775_vm2 = vcmp.lt.s32.totalorder %v7272_v9, 7  ;;  %v7325_v53 = vadd.s32 112, %v7272_v9  ;;  %v7328_v54 = vadd.s32 128, %v7272_v9  ;;  %vm9797_vm3 = vcmp.lt.s32.totalorder %v7272_v9, 1 }
  0x79   : > { %5954 = vmatpush3.bf16.msra.mxu0 %v6789_v10  ;;  %6147 = vmatprep.subr.bf16.mxu1 %v7260_v2  ;;  %v7368_v23 = vadd.s32 192, %v7272_v9  ;;  %v7444_v49 = vadd.s32 88, %v7272_v9  ;;  %v7451_v50 = vadd.s32 120, %v7272_v9 }
  0x7a   : > { %5987 = vmatprep.subr.bf16.mxu0 %v6790_v56 }
  0x7b   : > { %9913 = vst [vmem:[#allocation27_spill] sm:$0xff] %v7444_v49  ;;  %9914 = vst [vmem:[#allocation28_spill] sm:$0xff] %v7451_v50  ;;  %v9938_v49 = vmov 0 }
  0x7c   : > { %5956 = vmatmul.mubr.bf16.vlgmr.msra.gmra.mrb[0].mxu0 %v454_v15 }
  0x7d   : > { %5959 = vmatprep.mubr.bf16.mxu0 %v455_v16  ;;  %5988 = vmatpush3.bf16.msra.mxu0 %v6790_v56 }
  0x7e   : > { %5989 = vmatprep.subr.bf16.mxu0 %v6791_v57 }
  0x81   : > { %5990 = vmatpush3.bf16.msra.mxu0 %v6791_v57 }
  0x82   : > { %5991 = vmatprep.subr.bf16.mxu0 %v6792_v58 }
  0x84   : > { %5960 = vmatmul.mubr.bf16.gmra.mrb[4].mxu0 %v456_v21  ;;  %v7280_v21 = vadd.s32 16, %v7272_v9 }
  0x85   : > { %5963 = vmatprep.mubr.bf16.mxu0 %v457_v22  ;;  %5992 = vmatpush3.bf16.msra.mxu0 %v6792_v58 }
  0x86   : > { %5993 = vmatprep.subr.bf16.mxu0 %v6793_v60 }
  0x89   : > { %5994 = vmatpush3.bf16.msra.mxu0 %v6793_v60  ;;  %v6802_v60 = vld [vmem:[#allocation7 + $0x8] sm:$0xff]  }
  0x8a   : > { %6027 = vmatprep.subr.bf16.mxu0 %v7263_v3 }
  0x8c   : > { %5964 = vmatmul.mubr.bf16.gmra.mrb[8].mxu0 %v458_v27 }
  0x8d   : > { %5967 = vmatprep.mubr.bf16.mxu0 %v459_v28  ;;  %v828_v28 = vand.u32 15, %v774_v17 }
  0x8f   : > { %vm7313_vm1 = vcmp.lt.s32.totalorder %v828_v28, 15 }
  0x94   : > { %5968 = vmatmul.mubr.bf16.gmra.mrb[12].mxu0 %v460_v33  ;;  %v7293_v33 = vadd.s32 32, %v7272_v9 }
  0x95   : > { %5971 = vmatprep.mubr.bf16.mxu0 %v461_v34 }
  0x9c   : > { %5972 = vmatmul.mubr.bf16.gmra.mrb[16].mxu0 %v462_v39 }
  0x9d   : > { %5975 = vmatprep.mubr.bf16.mxu0 %v463_v40  ;;  %v7305_v40 = vadd.s32 80, %v7272_v9 }
  0x9f   : > { %v877_v58 = vand.u32 15, %v7305_v40 }
  0xa1   : > { %vm7514_vm5 = vcmp.ge.s32.totalorder %v877_v58, 1 }
  0xa4   : > { %5976 = vmatmul.mubr.bf16.gmra.mrb[20].mxu0 %v464_v45  ;;  %v9902_v45 = vmov 0 }
  0xa5   : > { %5979 = vmatprep.mubr.bf16.mxu0 %v465_v46  ;;  %v9903_v45 = vsel %vm7313_vm1, 4294967295, %v9902_v45  ;;  %v7319_v46 = vadd.s32 8, %v7272_v9 }
  0xa6   : > { %9904 = vst [vmem:[#allocation18_spill] sm:$0xff] %v9903_v45 }
  0xac   : > { %5980 = vmatmul.mubr.bf16.gmra.mrb[24].mxu0 %v466_v51 }
  0xad   : > { %5983 = vmatprep.mubr.bf16.mxu0 %v467_v52  ;;  %v863_v52 = vand.u32 15, %v7301_v38 }
  0xaf   : > { %vm7464_vm4 = vcmp.ge.s32.totalorder %v863_v52, 1 }
  0xb4   : > { %5984 = vmatmul.mubr.bf16.gmra.mrb[28].mxu0 %v468_v55 }
  0xb5   : > { %5995 = vmatprep.mubr.msk.bf16.mxu0 %vm9784_vm0, %v7256_v61 }
 0x14f   : > { %v5957_v6 = vpop.f32.mrb[0].mxu0 }
 0x150   : > { %v583_v7 = vadd.f32 %v5957_v6, %v7269_v5  ;;  %v574_v8 = vpop.f32.mrb[1].mxu0  ;;  %v7341_v6 = vadd.s32 144, %v7272_v9 }
 0x151   : > { %v575_v10 = vadd.f32 %v7269_v5, %v574_v8  ;;  %v5958_v11 = vpop.f32.mrb[2].mxu0 }
 0x152   : > { %v586_v12 = vadd.f32 %v5958_v11, %v7269_v5  ;;  %v577_v13 = vpop.f32.mrb[3].mxu0  ;;  %v703_v15 = vmax.f32 %v583_v7, 0.0  ;;  %v7432_v7 = vsel %vm9797_vm3, %v7296_v36, %v7289_v31 }
 0x153   : > { %v578_v14 = vadd.f32 %v7269_v5, %v577_v13  ;;  %v701_v18 = vmax.f32 %v575_v10, 0.0  ;;  %v7354_v13 = vadd.s32 176, %v7272_v9 }
 0x154   : > { %v704_v16 = vmax.f32 %v586_v12, 0.0  ;;  %v7351_v12 = vadd.s32 160, %v7272_v9 }
 0x155   : > { %v702_v19 = vmax.f32 %v578_v14, 0.0 }
 0x156   : > { %v739_v22 = vpack.c.bf16 %v704_v16, %v703_v15 }
 0x157   : > { %v738_v24 = vpack.c.bf16 %v702_v19, %v701_v18  ;;  %v5961_v25 = vpop.f32.mrb[4].mxu0 }
 0x158   : > { %755 = vst.msk [vmem:[#allocation2 + $0x18] sm:$0xff] %vm9784_vm0, %v739_v22  ;;  %v599_v26 = vadd.f32 %v5961_v25, %v7269_v5  ;;  %v590_v27 = vpop.f32.mrb[5].mxu0  ;;  %v7371_v25 = vadd.s32 208, %v7272_v9 }
 0x159   : > { %754 = vst.msk [vmem:[#allocation2 + $0x10] sm:$0xff] %vm9784_vm0, %v738_v24  ;;  %v591_v29 = vadd.f32 %v7269_v5, %v590_v27  ;;  %v5962_v30 = vpop.f32.mrb[6].mxu0  ;;  %v6803_v24 = vld [vmem:[#allocation7 + $0x10] sm:$0xff]  }
 0x15a   : > { %v602_v34 = vadd.f32 %v5962_v30, %v7269_v5  ;;  %v593_v35 = vpop.f32.mrb[7].mxu0  ;;  %v707_v43 = vmax.f32 %v599_v26, 0.0  ;;  %v7459_v30 = vadd.s32 136, %v7272_v9 }
 0x15b   : > { %v594_v39 = vadd.f32 %v7269_v5, %v593_v35  ;;  %v705_v47 = vmax.f32 %v591_v29, 0.0  ;;  %v7384_v35 = vadd.s32 224, %v7272_v9 }
 0x15c   : > { %v708_v44 = vmax.f32 %v602_v34, 0.0  ;;  %9915 = vst [vmem:[#allocation29_spill] sm:$0xff] %v7459_v30 }
 0x15d   : > { %v706_v48 = vmax.f32 %v594_v39, 0.0 }
 0x15e   : > { %v741_v51 = vpack.c.bf16 %v708_v44, %v707_v43 }
 0x15f   : > { %v740_v55 = vpack.c.bf16 %v706_v48, %v705_v47  ;;  %v5965_v56 = vpop.f32.mrb[8].mxu0  ;;  %v7330_v57 = vld [vmem:[#allocation2 + $0x18] sm:$0xff] }
 0x160   : > { %9905 = vst [vmem:[#allocation19_spill] sm:$0xff] %v7330_v57  ;;  %757 = vst.msk [vmem:[#allocation2 + $0x28] sm:$0xff] %vm9784_vm0, %v741_v51  ;;  %v615_v63 = vadd.f32 %v5965_v56, %v7269_v5  ;;  %v606_v0 = vpop.f32.mrb[9].mxu0  ;;  %v7337_v1 = vld [vmem:[#allocation2 + $0x10] sm:$0xff]  ;;  %v9727_v4 = vunpack.c.l.bf16 %v7330_v57 }
 0x161   : > { %9906 = vst [vmem:[#allocation20_spill] sm:$0xff] %v7337_v1  ;;  %756 = vst.msk [vmem:[#allocation2 + $0x20] sm:$0xff] %vm9784_vm0, %v740_v55  ;;  %v5966_v8 = vpop.f32.mrb[10].mxu0  ;;  %v9725_v10 = vunpack.c.l.bf16 %v7337_v1  ;;  %v9724_v11 = vunpack.c.h.bf16 %v7337_v1  ;;  %5996 = vmatmul.mubr.msk.bf16.vlgmr.msra.gmra.mrb[32].mxu0 %vm9784_vm0, %v7337_v1  ;;  %v607_v14 = vadd.f32 %v7269_v5, %v606_v0  ;;  %v7401_v0 = vadd.s32 240, %v7272_v9 }
 0x162   : > { %v618_v15 = vadd.f32 %v5966_v8, %v7269_v5  ;;  %v609_v16 = vpop.f32.mrb[11].mxu0  ;;  %5999 = vmatprep.mubr.msk.bf16.mxu0 %vm9784_vm0, %v7330_v57  ;;  %6028 = vmatpush3.bf16.msra.mxu0 %v7263_v3  ;;  %v711_v19 = vmax.f32 %v615_v63, 0.0  ;;  %v7378_v3 = vrot.slane %v9727_v4, 1  ;;  %v6805_v63 = vld [vmem:[#allocation7 + $0x18] sm:$0xff]  }
 0x163   : > { %v7365_v22 = vrot.slane %v9725_v10, 1  ;;  %6029 = vmatprep.subr.bf16.mxu0 %v6802_v60  ;;  %v1962_v27 = vrot.slane %v9724_v11, 1  ;;  %v610_v28 = vadd.f32 %v7269_v5, %v609_v16  ;;  %v709_v39 = vmax.f32 %v607_v14, 0.0 }
 0x164   : > { %v712_v26 = vmax.f32 %v618_v15, 0.0 }
 0x165   : > { %9907 = vst [vmem:[#allocation21_spill] sm:$0xff] %v7365_v22  ;;  %v710_v44 = vmax.f32 %v610_v28, 0.0  ;;  %v7389_v47 = vsel %vm9775_vm2, %v1962_v27, %v7378_v3  ;;  %v7394_v48 = vsel %vm9775_vm2, %v7365_v22, %v1962_v27 }
 0x166   : > { %v743_v43 = vpack.c.bf16 %v712_v26, %v711_v19  ;;  %9908 = vst [vmem:[#allocation22_spill] sm:$0xff] %v7389_v47  ;;  %6030 = vmatpush3.bf16.msra.mxu0 %v6802_v60  ;;  %9909 = vst [vmem:[#allocation23_spill] sm:$0xff] %v7394_v48  ;;  %v2091_v51 = vsel %vm7313_vm1, %v7389_v47, 0.0  ;;  %v9726_v26 = vunpack.c.h.bf16 %v7330_v57 }
 0x167   : > { %v5969_v55 = vpop.f32.mrb[12].mxu0  ;;  %6031 = vmatprep.subr.bf16.mxu0 %v6803_v24  ;;  %v742_v60 = vpack.c.bf16 %v710_v44, %v709_v39  ;;  %v7405_v8 = vpack.c.bf16 %v2091_v51, %v7394_v48  ;;  %v7414_v28 = vld [vmem:[#allocation2 + $0x28] sm:$0xff]  ;;  %v7421_v44 = vadd.s32 248, %v7272_v9  ;;  %v7435_v39 = vadd.s32 56, %v7272_v9 }
 0x168   : > { %759 = vst.msk [vmem:[#allocation2 + $0x38] sm:$0xff] %vm9784_vm0, %v743_v43  ;;  %v631_v14 = vadd.f32 %v5969_v55, %v7269_v5  ;;  %v622_v15 = vpop.f32.mrb[13].mxu0  ;;  %v7408_v16 = vld [vmem:[#allocation2 + $0x20] sm:$0xff]  ;;  %v7418_v43 = vadd.s32 40, %v7272_v9 }
 0x169   : > { %9910 = vst [vmem:[#allocation24_spill] sm:$0xff] %v7405_v8  ;;  %v5970_v27 = vpop.f32.mrb[14].mxu0  ;;  %6000 = vmatmul.mubr.msk.bf16.gmra.mrb[36].mxu0 %vm9784_vm0, %v7408_v16  ;;  %9911 = vst [vmem:[#allocation25_spill] sm:$0xff] %v7421_v44  ;;  %v623_v51 = vadd.f32 %v7269_v5, %v622_v15  ;;  %v7438_v15 = vld [vmem:[#allocation7 + $0x40] sm:$0xff]   ;;  %v9936_v44 = vunpack.c.l.bf16 %v7330_v57 }
 0x16a   : > { %758 = vst.msk [vmem:[#allocation2 + $0x30] sm:$0xff] %vm9784_vm0, %v742_v60  ;;  %v634_v55 = vadd.f32 %v5970_v27, %v7269_v5  ;;  %v625_v20 = vpop.f32.mrb[15].mxu0  ;;  %6003 = vmatprep.mubr.msk.bf16.mxu0 %vm9784_vm0, %v7414_v28  ;;  %6032 = vmatpush3.bf16.msra.mxu0 %v6803_v24  ;;  %9912 = vst [vmem:[#allocation26_spill] sm:$0xff] %v7438_v15  ;;  %v7441_v27 = vadd.s32 72, %v7272_v9  ;;  %v7447_v24 = vadd.s32 104, %v7272_v9  ;;  %v715_v19 = vmax.f32 %v631_v14, 0.0 }
 0x16b   : > { %6033 = vmatprep.subr.bf16.mxu0 %v6805_v63  ;;  %v626_v62 = vadd.f32 %v7269_v5, %v625_v20  ;;  %v7455_v60 = vrot.slane %v9726_v26, 1  ;;  %v713_v11 = vmax.f32 %v623_v51, 0.0  ;;  %v9916_v20 = vmov 0 }
 0x16c   : > { %v716_v56 = vmax.f32 %v634_v55, 0.0  ;;  %v9917_v20 = vsel %vm7464_vm4, 4294967295, %v9916_v20  ;;  %v9728_v26 = vunpack.c.h.bf16 %v7414_v28 }
 0x16d   : > { %v714_v14 = vmax.f32 %v626_v62, 0.0  ;;  %9918 = vst [vmem:[#allocation30_spill] sm:$0xff] %v9917_v20  ;;  %v7474_v62 = vadd.s32 152, %v7272_v9 }
 0x16e   : > { %v745_v10 = vpack.c.bf16 %v716_v56, %v715_v19  ;;  %6034 = vmatpush3.bf16.msra.mxu0 %v6805_v63 }
 0x16f   : > { %v5973_v34 = vpop.f32.mrb[16].mxu0  ;;  %6067 = vmatprep.subr.bf16.mxu0 %v7438_v15  ;;  %9919 = vst [vmem:[#allocation31_spill] sm:$0xff] %v7474_v62  ;;  %v744_v38 = vpack.c.bf16 %v714_v14, %v713_v11  ;;  %v7478_v63 = vld [vmem:[#allocation2 + $0x38] sm:$0xff]  ;;  %v7506_v11 = vrot.slane %v9728_v26, 7 }
 0x170   : > { %761 = vst.msk [vmem:[#allocation2 + $0x48] sm:$0xff] %vm9784_vm0, %v745_v10  ;;  %v647_v52 = vadd.f32 %v5973_v34, %v7269_v5  ;;  %v638_v56 = vpop.f32.mrb[17].mxu0  ;;  %v7489_v10 = vsel %vm9775_vm2, %v7378_v3, %v7455_v60  ;;  %v7493_v34 = vadd.s32 168, %v7272_v9  ;;  %v7502_v3 = vadd.s32 184, %v7272_v9 }
 0x171   : > { %v639_v55 = vadd.f32 %v7269_v5, %v638_v56  ;;  %v5974_v29 = vpop.f32.mrb[18].mxu0  ;;  %v7483_v18 = vld [vmem:[#allocation2 + $0x30] sm:$0xff]  ;;  %760 = vst.msk [vmem:[#allocation2 + $0x40] sm:$0xff] %vm9784_vm0, %v744_v38 }
 0x172   : > { %9920 = vst [vmem:[#allocation32_spill] sm:$0xff] %v7493_v34  ;;  %v650_v14 = vadd.f32 %v5974_v29, %v7269_v5  ;;  %v9731_v56 = vunpack.c.l.bf16 %v7483_v18  ;;  %v9730_v51 = vunpack.c.h.bf16 %v7483_v18  ;;  %6004 = vmatmul.mubr.msk.bf16.gmra.mrb[40].mxu0 %vm9784_vm0, %v7483_v18  ;;  %v641_v32 = vpop.f32.mrb[19].mxu0  ;;  %9921 = vst [vmem:[#allocation33_spill] sm:$0xff] %v7502_v3  ;;  %v9922_v29 = vmov 0 }
 0x173   : > { %v642_v19 = vadd.f32 %v7269_v5, %v641_v32  ;;  %6007 = vmatprep.mubr.msk.bf16.mxu0 %vm9784_vm0, %v7478_v63  ;;  %v9923_v29 = vsel %vm7514_vm5, 4294967295, %v9922_v29  ;;  %v719_v4 = vmax.f32 %v647_v52, 0.0  ;;  %v717_v38 = vmax.f32 %v639_v55, 0.0 }
 0x174   : > { %9924 = vst [vmem:[#allocation34_spill] sm:$0xff] %v9923_v29  ;;  %v720_v59 = vmax.f32 %v650_v14, 0.0  ;;  %v1309_v26 = vrot.slane %v9731_v56, 7  ;;  %v7523_v32 = vrot.slane %v9730_v51, 7  ;;  %v9927_v14 = vand.u32 15, %v7308_v41 }
 0x175   : > { %v718_v8 = vmax.f32 %v642_v19, 0.0  ;;  %v9928_v55 = vmov 0  ;;  %v9931_v51 = vunpack.c.l.bf16 %v7478_v63  ;;  %v7575_v3 = vrot.slane %v9936_v44, 7 }
 0x176   : > { %9925 = vst [vmem:[#allocation35_spill] sm:$0xff] %v7523_v32  ;;  %v747_v58 = vpack.c.bf16 %v720_v59, %v719_v4  ;;  %v7530_v17 = vsel %vm9797_vm3, %v1309_v26, %v7523_v32  ;;  %v7535_v52 = vsel %vm9797_vm3, %v7506_v11, %v1309_v26  ;;  %vm7539_vm6 = vcmp.ge.s32.totalorder %v9927_v14, 1 }
 0x177   : > { %9926 = vst [vmem:[#allocation36_spill] sm:$0xff] %v7530_v17  ;;  %v9929_v55 = vsel %vm7539_vm6, 4294967295, %v9928_v55  ;;  %v746_v4 = vpack.c.bf16 %v718_v8, %v717_v38  ;;  %v7547_v40 = vrot.slane %v9931_v51, 7  ;;  %v5977_v56 = vpop.f32.mrb[20].mxu0  ;;  %v2530_v26 = vsel %vm7464_vm4, %v7535_v52, 0.0  ;;  %v7552_v61 = vld [vmem:[#allocation2 + $0x48] sm:$0xff] }
 0x178   : > { %9930 = vst [vmem:[#allocation37_spill] sm:$0xff] %v9929_v55  ;;  %9933 = vst [vmem:[#allocation39_spill] sm:$0xff] %v7552_v61  ;;  %v663_v41 = vadd.f32 %v5977_v56, %v7269_v5  ;;  %v654_v14 = vpop.f32.mrb[21].mxu0  ;;  %v2558_v19 = vpack.c.bf16 %v7530_v17, %v2530_v26  ;;  %v7558_v8 = vadd.s32 200, %v7272_v9  ;;  %v7561_v51 = vadd.s32 216, %v7272_v9 }
 0x179   : > { %9932 = vst [vmem:[#allocation38_spill] sm:$0xff] %v7547_v40  ;;  %763 = vst.msk [vmem:[#allocation2 + $0x58] sm:$0xff] %vm9784_vm0, %v747_v58  ;;  %v9934_v38 = vunpack.c.h.bf16 %v7478_v63  ;;  %v655_v22 = vadd.f32 %v7269_v5, %v654_v14  ;;  %v5978_v37 = vpop.f32.mrb[22].mxu0  ;;  %v7567_v58 = vld [vmem:[#allocation2 + $0x40] sm:$0xff]  ;;  %v7571_v26 = vadd.s32 232, %v7272_v9  ;;  %v9937_v56 = vand.u32 15, %v7325_v53 }
 0x17a   : > { %762 = vst.msk [vmem:[#allocation2 + $0x50] sm:$0xff] %vm9784_vm0, %v746_v4  ;;  %9935 = vst [vmem:[#allocation40_spill] sm:$0xff] %v7567_v58  ;;  %v666_v34 = vadd.f32 %v5978_v37, %v7269_v5  ;;  %v9746_v4 = vunpack.c.l.bf16 %v7567_v58  ;;  %6008 = vmatmul.mubr.msk.bf16.gmra.mrb[44].mxu0 %vm9784_vm0, %v7567_v58  ;;  %6123 = vmatprep.mubr.msk.bf16.mxu1 %vm9784_vm0, %v2558_v19  ;;  %v657_v14 = vpop.f32.mrb[23].mxu0  ;;  %v9941_v44 = vunpack.c.l.bf16 %v7408_v16  ;;  %v723_v19 = vmax.f32 %v663_v41, 0.0 }
 0x17b   : > { %v1312_v59 = vrot.slane %v9934_v38, 7  ;;  %vm7585_vm7 = vcmp.ge.s32.totalorder %v9937_v56, 1  ;;  %v658_v37 = vadd.f32 %v7269_v5, %v657_v14  ;;  %6011 = vmatprep.mubr.msk.bf16.mxu0 %vm9784_vm0, %v7552_v61  ;;  %v7601_v53 = vsel %vm9797_vm3, %v7523_v32, %v7547_v40 }
 0x17c   : > { %v9939_v49 = vsel %vm7585_vm7, 4294967295, %v9938_v49  ;;  %v7591_v48 = vrot.slane %v9941_v44, 1  ;;  %9943 = vst [vmem:[#allocation43_spill] sm:$0xff] %v7601_v53  ;;  %v724_v56 = vmax.f32 %v666_v34, 0.0  ;;  %v1313_v62 = vrot.slane %v9746_v4, 7 }
 0x17d   : > { %9940 = vst [vmem:[#allocation41_spill] sm:$0xff] %v9939_v49  ;;  %v9944_v44 = vunpack.c.h.bf16 %v7567_v58  ;;  %v721_v14 = vmax.f32 %v655_v22, 0.0  ;;  %v722_v30 = vmax.f32 %v658_v37, 0.0  ;;  %v9945_v38 = vunpack.c.l.bf16 %v7552_v61 }
 0x17e   : > { %9942 = vst [vmem:[#allocation42_spill] sm:$0xff] %v7591_v48  ;;  %v7612_v15 = vsel %vm9797_vm3, %v7547_v40, %v1312_v59  ;;  %v9947_v32 = vand.u32 15, %v7328_v54  ;;  %v9948_v34 = vmov 0  ;;  %v749_v41 = vpack.c.bf16 %v724_v56, %v723_v19 }
 0x17f   : > { %v1314_v47 = vrot.slane %v9944_v44, 7  ;;  %v1315_v50 = vrot.slane %v9945_v38, 7  ;;  %9946 = vst [vmem:[#allocation44_spill] sm:$0xff] %v7612_v15  ;;  %v2532_v22 = vsel %vm7514_vm5, %v7601_v53, 0.0  ;;  %v7629_v38 = vsel %vm9797_vm3, %v1312_v59, %v1313_v62 }
 0x180   : > { %vm7616_vm8 = vcmp.ge.s32.totalorder %v9947_v32, 1  ;;  %9952 = vst [vmem:[#allocation47_spill] sm:$0xff] %v7629_v38  ;;  %v748_v44 = vpack.c.bf16 %v722_v30, %v721_v14  ;;  %v2559_v54 = vpack.c.bf16 %v7612_v15, %v2532_v22  ;;  %v5981_v32 = vpop.f32.mrb[24].mxu0  ;;  %v2534_v19 = vsel %vm7539_vm6, %v7629_v38, 0.0  ;;  %v7635_v56 = vld [vmem:[#allocation2 + $0x58] sm:$0xff]  ;;  %765 = vst.msk [vmem:[#allocation2 + $0x68] sm:$0xff] %vm9784_vm0, %v749_v41 }
 0x181   : > { %v9949_v34 = vsel %vm7616_vm8, 4294967295, %v9948_v34  ;;  %v7625_v37 = vsel %vm9797_vm3, %v1313_v62, %v1314_v47  ;;  %9953 = vst [vmem:[#allocation48_spill] sm:$0xff] %v7635_v56  ;;  %v9954_v4 = vand.u32 15, %v7341_v6  ;;  %v9955_v40 = vmov 0  ;;  %v670_v22 = vpop.f32.mrb[25].mxu0  ;;  %v7653_v15 = vld [vmem:[#allocation2 + $0x50] sm:$0xff] }
 0x182   : > { %9950 = vst [vmem:[#allocation45_spill] sm:$0xff] %v9949_v34  ;;  %9951 = vst [vmem:[#allocation46_spill] sm:$0xff] %v7625_v37  ;;  %v7647_v30 = vsel %vm9775_vm2, %v7455_v60, %v7591_v48  ;;  %v9959_v62 = vunpack.c.h.bf16 %v7552_v61  ;;  %v679_v14 = vadd.f32 %v5981_v32, %v7269_v5  ;;  %v2560_v6 = vpack.c.bf16 %v7625_v37, %v2534_v19  ;;  %v6799_v38 = vld [vmem:[#allocation7 + $0x88] sm:$0xff]   ;;  %v5982_v41 = vpop.f32.mrb[26].mxu0 }
 0x183   : > { %vm7639_vm9 = vcmp.ge.s32.totalorder %v9954_v4, 1  ;;  %9958 = vst [vmem:[#allocation50_spill] sm:$0xff] %v7647_v30  ;;  %9960 = vst [vmem:[#allocation51_spill] sm:$0xff] %v7653_v15  ;;  %v9761_v4 = vunpack.c.l.bf16 %v7635_v56  ;;  %v9961_v55 = vunpack.c.l.bf16 %v7337_v1  ;;  %6124 = vmatmul.mubr.msk.bf16.vlgmr.msra.gmra.mrb[0].mxu1 %vm9784_vm0, %v2559_v54  ;;  %v671_v60 = vadd.f32 %v7269_v5, %v670_v22  ;;  %6012 = vmatmul.mubr.msk.bf16.gmra.mrb[48].mxu0 %vm9784_vm0, %v7653_v15 }
 0x184   : > { %v9956_v40 = vsel %vm7639_vm9, 4294967295, %v9955_v40  ;;  %v1316_v59 = vrot.slane %v9959_v62, 7  ;;  %764 = vst.msk [vmem:[#allocation2 + $0x60] sm:$0xff] %vm9784_vm0, %v748_v44  ;;  %v9759_v32 = vunpack.c.l.bf16 %v7653_v15  ;;  %v9760_v62 = vunpack.c.h.bf16 %v7653_v15  ;;  %6148 = vmatpush3.bf16.msra.mxu1 %v7260_v2  ;;  %v673_v44 = vpop.f32.mrb[27].mxu0  ;;  %6127 = vmatprep.mubr.msk.bf16.mxu1 %vm9784_vm0, %v2560_v6 }
 0x185   : > { %9957 = vst [vmem:[#allocation49_spill] sm:$0xff] %v9956_v40  ;;  %v7659_v53 = vrot.slane %v9961_v55, 7  ;;  %v9962_v19 = vunpack.c.h.bf16 %v7337_v1  ;;  %v682_v55 = vadd.f32 %v5982_v41, %v7269_v5  ;;  %v7676_v54 = vsel %vm9797_vm3, %v1314_v47, %v1315_v50  ;;  %6015 = vmatprep.mubr.msk.bf16.mxu0 %vm9784_vm0, %v7635_v56  ;;  %v6800_v47 = vld [vmem:[#allocation7 + $0x90] sm:$0xff]   ;;  %6149 = vmatprep.subr.bf16.mxu1 %v6799_v38  ;;  %v7790_v40 = vld [vmem:[#allocation7 + $0xa0] sm:$0xff]  }
 0x186   : > { %9963 = vst [vmem:[#allocation52_spill] sm:$0xff] %v7676_v54  ;;  %v3185_v22 = vsel %vm7313_vm1, %v7647_v30, 0.0  ;;  %v1318_v2 = vrot.slane %v9760_v62, 7  ;;  %v1319_v1 = vrot.slane %v9761_v4, 7  ;;  %v727_v37 = vmax.f32 %v679_v14, 0.0 }
 0x187   : > { %v7668_v48 = vrot.slane %v9962_v19, 7  ;;  %v1317_v19 = vrot.slane %v9759_v32, 7  ;;  %v728_v45 = vmax.f32 %v682_v55, 0.0  ;;  %v674_v30 = vadd.f32 %v7269_v5, %v673_v44 }
 0x188   : > { %v7694_v32 = vsel %vm9797_vm3, %v1315_v50, %v1316_v59  ;;  %v9965_v6 = vand.u32 15, %v7280_v21  ;;  %v9966_v62 = vmov 0  ;;  %v725_v4 = vmax.f32 %v671_v60, 0.0  ;;  %6150 = vmatpush3.bf16.msra.mxu1 %v6799_v38 }
 0x189   : > { %9964 = vst [vmem:[#allocation53_spill] sm:$0xff] %v7694_v32  ;;  %v2536_v41 = vsel %vm7585_vm7, %v7676_v54, 0.0  ;;  %v7707_v14 = vsel %vm9797_vm3, %v1317_v19, %v1318_v2  ;;  %v7711_v50 = vsel %vm9797_vm3, %v1316_v59, %v1317_v19  ;;  %v9970_v55 = vand.u32 15, %v7351_v12  ;;  %v5985_v59 = vpop.f32.mrb[28].mxu0  ;;  %v7726_v12 = vld [vmem:[#allocation2 + $0x68] sm:$0xff]  ;;  %6151 = vmatprep.subr.bf16.mxu1 %v6800_v47 }
 0x18a   : > { %vm7698_vm10 = vcmp.ge.s32.totalorder %v9965_v6, 1  ;;  %9969 = vst [vmem:[#allocation55_spill] sm:$0xff] %v7707_v14  ;;  %v9971_v21 = vmov 0  ;;  %v751_v44 = vpack.c.bf16 %v728_v45, %v727_v37  ;;  %v726_v60 = vmax.f32 %v674_v30, 0.0  ;;  %9975 = vst [vmem:[#allocation57_spill] sm:$0xff] %v7726_v12 }
 0x18b   : > { %v9967_v62 = vsel %vm7698_vm10, 4294967295, %v9966_v62  ;;  %vm7715_vm11 = vcmp.ge.s32.totalorder %v9970_v55, 1  ;;  %v2561_v6 = vpack.c.bf16 %v7694_v32, %v2536_v41  ;;  %v2538_v54 = vsel %vm7616_vm8, %v7711_v50, 0.0  ;;  %v686_v41 = vpop.f32.mrb[29].mxu0 }
 0x18c   : > { %9968 = vst [vmem:[#allocation54_spill] sm:$0xff] %v9967_v62  ;;  %v9972_v21 = vsel %vm7715_vm11, 4294967295, %v9971_v21  ;;  %v9974_v49 = vunpack.c.h.bf16 %v7635_v56  ;;  %v2562_v19 = vpack.c.bf16 %v7707_v14, %v2538_v54  ;;  %v7730_v55 = vsel %vm9797_vm3, %v1318_v2, %v1319_v1  ;;  %767 = vst.msk [vmem:[#allocation2 + $0x78] sm:$0xff] %vm9784_vm0, %v751_v44  ;;  %v7747_v14 = vld [vmem:[#allocation2 + $0x60] sm:$0xff]  ;;  %v5986_v44 = vpop.f32.mrb[30].mxu0  ;;  %6152 = vmatpush3.bf16.msra.mxu1 %v6800_v47 }
 0x18d   : > { %9973 = vst [vmem:[#allocation56_spill] sm:$0xff] %v9972_v21  ;;  %9976 = vst [vmem:[#allocation58_spill] sm:$0xff] %v7730_v55  ;;  %v9977_v45 = vand.u32 15, %v7354_v13  ;;  %v9978_v37 = vmov 0  ;;  %v7739_v38 = vpack.c.bf16 %v3185_v22, %v7489_v10  ;;  %v750_v54 = vpack.c.bf16 %v726_v60, %v725_v4  ;;  %6128 = vmatmul.mubr.msk.bf16.gmra.mrb[4].mxu1 %vm9784_vm0, %v2561_v6  ;;  %6016 = vmatmul.mubr.msk.bf16.gmra.mrb[52].mxu0 %vm9784_vm0, %v7747_v14 }
 0x18e   : > { %v1320_v17 = vrot.slane %v9974_v49, 7  ;;  %v9982_v49 = vunpack.c.h.bf16 %v7330_v57  ;;  %v695_v2 = vadd.f32 %v5985_v59, %v7269_v5  ;;  %9983 = vst [vmem:[#allocation61_spill] sm:$0xff] %v7747_v14  ;;  %v7754_v22 = vsel %vm9797_vm3, %v7659_v53, %v7668_v48  ;;  %6131 = vmatprep.mubr.msk.bf16.mxu1 %vm9784_vm0, %v2562_v19  ;;  %6019 = vmatprep.mubr.msk.bf16.mxu0 %vm9784_vm0, %v7726_v12 }
 0x18f   : > { %vm7734_vm12 = vcmp.ge.s32.totalorder %v9977_v45, 1  ;;  %9981 = vst [vmem:[#allocation60_spill] sm:$0xff] %v7739_v38  ;;  %v6804_v45 = vld [vmem:[#allocation7 + $0x98] sm:$0xff]   ;;  %9984 = vst [vmem:[#allocation62_spill] sm:$0xff] %v7754_v22  ;;  %v9770_v4 = vunpack.c.l.bf16 %v7747_v14  ;;  %v687_v13 = vadd.f32 %v7269_v5, %v686_v41  ;;  %v698_v38 = vadd.f32 %v5986_v44, %v7269_v5 }
 0x190   : > { %v9979_v37 = vsel %vm7734_vm12, 4294967295, %v9978_v37  ;;  %v7743_v30 = vrot.slane %v9982_v49, 7  ;;  %766 = vst.msk [vmem:[#allocation2 + $0x70] sm:$0xff] %vm9784_vm0, %v750_v54  ;;  %v689_v49 = vpop.f32.mrb[31].mxu0  ;;  %v2540_v6 = vsel %vm7639_vm9, %v7730_v55, 0.0  ;;  %v9985_v59 = vunpack.c.h.bf16 %v7747_v14  ;;  %6153 = vmatprep.subr.bf16.mxu1 %v6804_v45 }
 0x191   : > { %9980 = vst [vmem:[#allocation59_spill] sm:$0xff] %v9979_v37  ;;  %v1321_v60 = vrot.slane %v9770_v4, 7  ;;  %v9986_v41 = vunpack.c.l.bf16 %v7726_v12  ;;  %v7780_v19 = vsel %vm9797_vm3, %v1319_v1, %v1320_v17  ;;  %v9988_v44 = vand.u32 15, %v7293_v33  ;;  %6154 = vmatpush3.bf16.msra.mxu1 %v6804_v45 }
 0x192   : > { %v1322_v54 = vrot.slane %v9985_v59, 7  ;;  %9987 = vst [vmem:[#allocation63_spill] sm:$0xff] %v7780_v19  ;;  %v9989_v55 = vmov 0  ;;  %v731_v4 = vmax.f32 %v695_v2, 0.0  ;;  %v732_v32 = vmax.f32 %v698_v38, 0.0  ;;  %6187 = vmatprep.subr.bf16.mxu1 %v7790_v40 }
 0x193   : > { %v1323_v57 = vrot.slane %v9986_v41, 7  ;;  %vm7784_vm13 = vcmp.ge.s32.totalorder %v9988_v44, 1  ;;  %v690_v59 = vadd.f32 %v7269_v5, %v689_v49  ;;  %v1361_v1 = vsel %vm9797_vm3, %v7289_v31, %v7659_v53 }
 0x194   : > { %v9990_v55 = vsel %vm7784_vm13, 4294967295, %v9989_v55  ;;  %v2563_v33 = vpack.c.bf16 %v7780_v19, %v2540_v6  ;;  %v7799_v47 = vsel %vm9797_vm3, %v1321_v60, %v1322_v54  ;;  %v7803_v38 = vsel %vm9797_vm3, %v1320_v17, %v1321_v60 }
 0x195   : > { %9991 = vst [vmem:[#allocation64_spill] sm:$0xff] %v9990_v55  ;;  %9992 = vst [vmem:[#allocation65_spill] sm:$0xff] %v7799_v47  ;;  %v9994_v5 = vand.u32 15, %v7311_v42  ;;  %v9995_v2 = vmov 0  ;;  %v729_v49 = vmax.f32 %v687_v13, 0.0  ;;  %v753_v44 = vpack.c.bf16 %v732_v32, %v731_v4  ;;  %v7825_v32 = vld [vmem:[#allocation2 + $0x78] sm:$0xff] }
 0x196   : > { %9993 = vst [vmem:[#allocation66_spill] sm:$0xff] %v7803_v38  ;;  %v730_v41 = vmax.f32 %v690_v59, 0.0  ;;  %v2542_v31 = vsel %vm7715_vm11, %v7803_v38, 0.0  ;;  %v9998_v6 = vand.u32 15, %v7368_v23  ;;  %v9999_v19 = vmov 0  ;;  %10004 = vst [vmem:[#allocation69_spill] sm:$0xff] %v7825_v32  ;;  %6132 = vmatmul.mubr.msk.bf16.gmra.mrb[8].mxu1 %vm9784_vm0, %v2563_v33 }
 0x197   : > { %vm7807_vm14 = vcmp.ge.s32.totalorder %v9994_v5, 1  ;;  %v10002_v17 = vunpack.c.h.bf16 %v7408_v16  ;;  %v10003_v60 = vunpack.c.l.bf16 %v7414_v28  ;;  %v2564_v13 = vpack.c.bf16 %v7799_v47, %v2542_v31  ;;  %769 = vst.msk [vmem:[#allocation2 + $0x88] sm:$0xff] %vm9784_vm0, %v753_v44 }
 0x198   : > { %v9996_v2 = vsel %vm7807_vm14, 4294967295, %v9995_v2  ;;  %vm7816_vm15 = vcmp.ge.s32.totalorder %v9998_v6, 1  ;;  %v7829_v4 = vsel %vm9797_vm3, %v1322_v54, %v1323_v57  ;;  %v10006_v23 = vand.u32 15, %v7371_v25 }
 0x199   : > { %9997 = vst [vmem:[#allocation67_spill] sm:$0xff] %v9996_v2  ;;  %v10000_v19 = vsel %vm7816_vm15, 4294967295, %v9999_v19  ;;  %v1306_v42 = vrot.slane %v10002_v17, 7  ;;  %v1307_v5 = vrot.slane %v10003_v60, 7  ;;  %10005 = vst [vmem:[#allocation70_spill] sm:$0xff] %v7829_v4  ;;  %v10007_v59 = vmov 0  ;;  %6135 = vmatprep.mubr.msk.bf16.mxu1 %vm9784_vm0, %v2564_v13 }
 0x19a   : > { %10001 = vst [vmem:[#allocation68_spill] sm:$0xff] %v10000_v19  ;;  %vm7833_vm2 = vcmp.ge.s32.totalorder %v10006_v23, 1  ;;  %v1430_v6 = vsel %vm7698_vm10, %v1361_v1, 0.0  ;;  %v752_v17 = vpack.c.bf16 %v730_v41, %v729_v49  ;;  %v10010_v31 = vunpack.c.h.bf16 %v7726_v12  ;;  %v7847_v23 = vld [vmem:[#allocation2 + $0x70] sm:$0xff] }
 0x19b   : > { %v10008_v59 = vsel %vm7833_vm2, 4294967295, %v10007_v59  ;;  %v9777_v47 = vunpack.c.l.bf16 %v7825_v32  ;;  %v10011_v25 = vunpack.c.l.bf16 %v7408_v16  ;;  %v9783_v49 = vunpack.c.l.bf16 %v7847_v23  ;;  %6020 = vmatmul.mubr.msk.bf16.gmra.mrb[56].mxu0 %vm9784_vm0, %v7847_v23 }
 0x19c   : > { %10009 = vst [vmem:[#allocation71_spill] sm:$0xff] %v10008_v59  ;;  %v1324_v60 = vrot.slane %v10010_v31, 7  ;;  %768 = vst.msk [vmem:[#allocation2 + $0x80] sm:$0xff] %vm9784_vm0, %v752_v17  ;;  %v9782_v44 = vunpack.c.h.bf16 %v7847_v23  ;;  %v2544_v33 = vsel %vm7734_vm12, %v7829_v4, 0.0  ;;  %v7865_v31 = vsel %vm9797_vm3, %v7575_v3, %v7743_v30  ;;  %6023 = vmatprep.mubr.msk.bf16.mxu0 %vm9784_vm0, %v7825_v32 }
 0x19d   : > { %v1305_v54 = vrot.slane %v10011_v25, 7  ;;  %10012 = vst [vmem:[#allocation72_spill] sm:$0xff] %v7865_v31  ;;  %v7869_v17 = vsel %vm9797_vm3, %v1306_v42, %v1307_v5  ;;  %v1327_v25 = vrot.slane %v9777_v47, 7  ;;  %v7876_v13 = vpack.c.bf16 %v7754_v22, %v1430_v6 }
 0x19e   : > { %10013 = vst [vmem:[#allocation73_spill] sm:$0xff] %v7869_v17  ;;  %v7882_v41 = vsel %vm9797_vm3, %v7668_v48, %v7575_v3  ;;  %v1325_v1 = vrot.slane %v9783_v49, 7  ;;  %v1326_v45 = vrot.slane %v9782_v44, 7  ;;  %v7891_v62 = vsel %vm9797_vm3, %v1323_v57, %v1324_v60 }
 0x19f   : > { %10014 = vst [vmem:[#allocation74_spill] sm:$0xff] %v7882_v41  ;;  %10015 = vst [vmem:[#allocation75_spill] sm:$0xff] %v7891_v62  ;;  %v10016_v6 = vunpack.c.l.bf16 %v7414_v28  ;;  %v10017_v4 = vunpack.c.h.bf16 %v7414_v28  ;;  %v2565_v3 = vpack.c.bf16 %v7891_v62, %v2544_v33  ;;  %v7905_v44 = vsel %vm9797_vm3, %v7743_v30, %v1305_v54 }
 0x1a0   : > { %10018 = vst [vmem:[#allocation76_spill] sm:$0xff] %v7905_v44  ;;  %v1436_v57 = vsel %vm7464_vm4, %v7869_v17, 0.0  ;;  %v7912_v49 = vsel %vm9797_vm3, %v1325_v1, %v1326_v45  ;;  %v10022_v33 = vmov 0  ;;  %v10025_v30 = vand.u32 15, %v7384_v35 }
 0x1a1   : > { %v7895_v22 = vrot.slane %v10016_v6, 1  ;;  %v7899_v48 = vrot.slane %v10017_v4, 1  ;;  %10019 = vst [vmem:[#allocation77_spill] sm:$0xff] %v7912_v49  ;;  %v7916_v6 = vsel %vm9797_vm3, %v1324_v60, %v1325_v1  ;;  %v10021_v4 = vand.u32 15, %v7272_v9 }
 0x1a2   : > { %10020 = vst [vmem:[#allocation78_spill] sm:$0xff] %v7916_v6  ;;  %vm7926_vm10 = vcmp.ge.s32.totalorder %v10025_v30, 1  ;;  %v10026_v47 = vmov 0  ;;  %v1432_v20 = vsel %vm7784_vm13, %v7882_v41, 0.0  ;;  %v2546_v60 = vsel %vm7816_vm15, %v7916_v6, 0.0  ;;  %v7946_v30 = vld [vmem:[#allocation2 + $0x88] sm:$0xff] }
 0x1a3   : > { %vm7920_vm0 = vcmp.ge.s32.totalorder %v10021_v4, 1  ;;  %v10027_v47 = vsel %vm7926_vm10, 4294967295, %v10026_v47  ;;  %v7938_v1 = vsel %vm9797_vm3, %v1326_v45, %v1327_v25  ;;  %v10030_v4 = vand.u32 15, %v7401_v0 }
 0x1a4   : > { %v10023_v33 = vsel %vm7920_vm0, 4294967295, %v10022_v33  ;;  %10028 = vst [vmem:[#allocation80_spill] sm:$0xff] %v10027_v47  ;;  %10029 = vst [vmem:[#allocation81_spill] sm:$0xff] %v7938_v1  ;;  %v10031_v35 = vmov 0  ;;  %v7950_v17 = vsel %vm9797_vm3, %v1305_v54, %v1306_v42  ;;  %v7955_v55 = vsel %vm9797_vm3, %v1307_v5, %v7506_v11  ;;  %v7973_v11 = vld [vmem:[#allocation2 + $0x80] sm:$0xff] }
 0x1a5   : > { %10024 = vst [vmem:[#allocation79_spill] sm:$0xff] %v10023_v33  ;;  %vm7942_vm4 = vcmp.ge.s32.totalorder %v10030_v4, 1  ;;  %10034 = vst [vmem:[#allocation83_spill] sm:$0xff] %v7950_v17  ;;  %v10036_v45 = vunpack.c.h.bf16 %v7825_v32  ;;  %v2566_v0 = vpack.c.bf16 %v7912_v49, %v2546_v60  ;;  %v1434_v6 = vsel %vm7807_vm14, %v7905_v44, 0.0 }
 0x1a6   : > { %v10032_v35 = vsel %vm7942_vm4, 4294967295, %v10031_v35  ;;  %10035 = vst [vmem:[#allocation84_spill] sm:$0xff] %v7955_v55  ;;  %v10037_v62 = vunpack.c.l.bf16 %v7483_v18  ;;  %v10039_v54 = vunpack.c.l.bf16 %v7478_v63  ;;  %vm10040_vm3 = vcmask 523264   ;;  %10041 = vst [vmem:[#allocation86_spill] sm:$0xff] %v7973_v11 }
 0x1a7   : > { %10033 = vst [vmem:[#allocation82_spill] sm:$0xff] %v10032_v35  ;;  %v1328_v41 = vrot.slane %v10036_v45, 7  ;;  %6136 = vmatmul.mubr.msk.bf16.gmra.mrb[12].mxu1 %vm10040_vm3, %v2565_v3  ;;  %v1462_v5 = vpack.c.bf16 %v7865_v31, %v1432_v20  ;;  %v7977_v60 = vpack.c.bf16 %v7955_v55, %v1436_v57  ;;  %v10042_v45 = vunpack.c.h.bf16 %v7478_v63  ;;  %vm10043_vm14 = vmmov %vm10040_vm3  ;;  %v10095_v35 = vld [vmem:[#allocation26_spill] sm:$0xff] }
 0x1a8   : > { %v7966_v42 = vrot.slane %v10037_v62, 1  ;;  %v7970_v19 = vrot.slane %v10039_v54, 1  ;;  %6024 = vmatmul.mubr.msk.bf16.gmra.mrb[60].mxu0 %vm10043_vm14, %v7973_v11  ;;  %vm10044_vm13 = vmmov %vm10040_vm3  ;;  %v2548_v20 = vsel %vm7833_vm2, %v7938_v1, 0.0  ;;  %v10045_v3 = vunpack.c.l.bf16 %v7567_v58 }
 0x1a9   : > { %v7981_v4 = vrot.slane %v10042_v45, 1  ;;  %6139 = vmatprep.mubr.msk.bf16.mxu1 %vm10044_vm13, %v2566_v0  ;;  %v10046_v54 = vunpack.c.h.bf16 %v7567_v58  ;;  %v10047_v62 = vunpack.c.l.bf16 %v7946_v30  ;;  %v8002_v55 = vpack.c.bf16 %v7950_v17, %v1434_v6 }
 0x1aa   : > { %10038 = vst [vmem:[#allocation85_spill] sm:$0xff] %v7966_v42  ;;  %v7993_v57 = vrot.slane %v10045_v3, 1  ;;  %v10048_v0 = vand.u32 15, %v7418_v43  ;;  %v10049_v31 = vmov 0  ;;  %v10052_v44 = vunpack.c.l.bf16 %v7973_v11 }
 0x1ab   : > { %v7997_v45 = vrot.slane %v10046_v54, 1  ;;  %v2488_v2 = vrot.slane %v10047_v62, 7  ;;  %v10053_v49 = vunpack.c.h.bf16 %v7973_v11  ;;  %vm10054_vm13 = vcmp.lt.s32.totalorder %v7272_v9, 1 }
 0x1ac   : > { %vm8006_vm3 = vcmp.lt.s32.totalorder %v10048_v0, 15  ;;  %v1329_v3 = vrot.slane %v10052_v44, 7  ;;  %v8016_v54 = vsel %vm10054_vm13, %v1327_v25, %v1328_v41  ;;  %v10056_v6 = vunpack.c.l.bf16 %v7552_v61  ;;  %vm10062_vm1 = vmmov %vm10054_vm13 }
 0x1ad   : > { %v10050_v31 = vsel %vm8006_vm3, 4294967295, %v10049_v31  ;;  %v1330_v1 = vrot.slane %v10053_v49, 7  ;;  %10055 = vst [vmem:[#allocation88_spill] sm:$0xff] %v8016_v54  ;;  %v10057_v43 = vunpack.c.h.bf16 %v7552_v61  ;;  %v10058_v59 = vunpack.c.l.bf16 %v7653_v15  ;;  %vm10064_vm2 = vmmov %vm10062_vm1 }
 0x1ae   : > { %10051 = vst [vmem:[#allocation87_spill] sm:$0xff] %v10050_v31  ;;  %v8021_v17 = vrot.slane %v10056_v6, 1  ;;  %v2567_v49 = vpack.c.bf16 %v8016_v54, %v2548_v20  ;;  %v10059_v37 = vand.u32 15, %v7319_v46  ;;  %v10060_v25 = vmov 0 }
 0x1af   : > { %v8025_v0 = vrot.slane %v10057_v43, 1  ;;  %v8029_v44 = vrot.slane %v10058_v59, 1  ;;  %v1363_v6 = vsel %vm10054_vm13, %v1330_v1, %v7296_v36  ;;  %v8043_v43 = vsel %vm10062_vm1, %v1329_v3, %v1330_v1 }
 0x1b0   : > { %vm8034_vm14 = vcmp.lt.s32.totalorder %v10059_v37, 15  ;;  %10063 = vst [vmem:[#allocation89_spill] sm:$0xff] %v8043_v43  ;;  %v8047_v59 = vsel %vm10064_vm2, %v1328_v41, %v1329_v3  ;;  %v10066_v20 = vand.u32 15, %v7441_v27  ;;  %v10067_v46 = vmov 0 }
 0x1b1   : > { %v10061_v25 = vsel %vm8034_vm14, 4294967295, %v10060_v25  ;;  %10065 = vst [vmem:[#allocation90_spill] sm:$0xff] %v8047_v59  ;;  %v10070_v37 = vunpack.c.h.bf16 %v7653_v15  ;;  %v1428_v36 = vsel %vm7920_vm0, %v1363_v6, 0.0  ;;  %v2550_v54 = vsel %vm7926_vm10, %v8047_v59, 0.0 }
 0x1b2   : > { %vm8051_vm15 = vcmp.lt.s32.totalorder %v10066_v20, 15  ;;  %v2491_v41 = vsel %vm10062_vm1, %v1330_v1, %v2488_v2  ;;  %v10071_v27 = vunpack.c.l.bf16 %v7635_v56  ;;  %v1460_v20 = vpack.c.bf16 %v7432_v7, %v1428_v36 }
 0x1b3   : > { %v10068_v46 = vsel %vm8051_vm15, 4294967295, %v10067_v46  ;;  %v8057_v62 = vrot.slane %v10070_v37, 1  ;;  %v2568_v15 = vpack.c.bf16 %v8043_v43, %v2550_v54  ;;  %v10072_v37 = vunpack.c.h.bf16 %v7946_v30  ;;  %v10093_v43 = vld [vmem:[#allocation43_spill] sm:$0xff] }
 0x1b4   : > { %10069 = vst [vmem:[#allocation91_spill] sm:$0xff] %v10068_v46  ;;  %v8068_v3 = vrot.slane %v10071_v27, 1  ;;  %v10073_v6 = vunpack.c.h.bf16 %v7635_v56  ;;  %vm10074_vm2 = vcmask 523264   ;;  %v1438_v1 = vsel %vm7514_vm5, %v7535_v52, 0.0  ;;  %v6810_v27 = vld [vmem:[#allocation7 + $0x48] sm:$0xff]   ;;  %v10100_v56 = vld [vmem:[#allocation47_spill] sm:$0xff] }
 0x1b5   : > { %v8074_v61 = vrot.slane %v10072_v37, 7  ;;  %6140 = vmatmul.mubr.msk.bf16.gmra.mrb[16].mxu1 %vm10074_vm2, %v2567_v49  ;;  %v10075_v59 = vand.u32 15, %v7447_v24  ;;  %v10076_v7 = vmov 0  ;;  %v10078_v54 = vunpack.c.l.bf16 %v7747_v14  ;;  %vm10080_vm1 = vmmov %vm10074_vm2 }
 0x1b6   : > { %v8078_v38 = vrot.slane %v10073_v6, 1  ;;  %v10079_v37 = vunpack.c.h.bf16 %v7747_v14  ;;  %6035 = vmatprep.mubr.msk.bf16.mxu0 %vm10080_vm1, %v1460_v20  ;;  %vm10081_vm2 = vmmov %vm10080_vm1  ;;  %v2552_v52 = vsel %vm7942_vm4, %v2491_v41, 0.0  ;;  %v10082_v24 = vand.u32 15, %v7435_v39 }
 0x1b7   : > { %vm8086_vm13 = vcmp.lt.s32.totalorder %v10075_v59, 15  ;;  %v8092_v36 = vrot.slane %v10078_v54, 1  ;;  %6143 = vmatprep.mubr.msk.bf16.mxu1 %vm10081_vm2, %v2568_v15  ;;  %v10083_v49 = vmov 0  ;;  %v10086_v59 = vunpack.c.l.bf16 %v7726_v12  ;;  %6036 = vmatmul.mubr.msk.bf16.vlgmr.msra.gmra.mrb[32].mxu0 %vm10080_vm1, %v7876_v13  ;;  %vm10091_vm4 = vmmov %vm10080_vm1  ;;  %v10096_v13 = vld [vmem:[#allocation28_spill] sm:$0xff] }
 0x1b8   : > { %v10077_v7 = vsel %vm8086_vm13, 4294967295, %v10076_v7  ;;  %v8096_v6 = vrot.slane %v10079_v37, 1  ;;  %vm8104_vm5 = vcmp.lt.s32.totalorder %v10082_v24, 15  ;;  %v10087_v37 = vunpack.c.h.bf16 %v7726_v12  ;;  %6039 = vmatprep.mubr.msk.bf16.mxu0 %vm10091_vm4, %v1462_v5  ;;  %6068 = vmatpush3.bf16.msra.mxu0 %v10095_v35 }
 0x1b9   : > { %v10084_v49 = vsel %vm8104_vm5, 4294967295, %v10083_v49  ;;  %v8110_v54 = vrot.slane %v10086_v59, 1  ;;  %v10088_v20 = vunpack.c.l.bf16 %v7825_v32  ;;  %v10089_v39 = vunpack.c.h.bf16 %v7825_v32  ;;  %v10092_v59 = vld [vmem:[#allocation36_spill] sm:$0xff]  ;;  %6069 = vmatprep.subr.bf16.mxu0 %v6810_v27 }
 0x1ba   : > { %10085 = vst [vmem:[#allocation92_spill] sm:$0xff] %v10084_v49  ;;  %v8114_v29 = vrot.slane %v10087_v37, 1  ;;  %vm10090_vm2 = vcmp.lt.s32.totalorder %v7272_v9, 1  ;;  %v8131_v37 = vpack.c.bf16 %v10092_v59, %v1438_v1  ;;  %v10097_v14 = vand.u32 15, %v10096_v13  ;;  %v6812_v1 = vld [vmem:[#allocation7 + $0x50] sm:$0xff]  }
 0x1bb   : > { %v8118_v15 = vrot.slane %v10088_v20, 1  ;;  %v8124_v41 = vrot.slane %v10089_v39, 1  ;;  %v2490_v24 = vsel %vm10090_vm2, %v2488_v2, %v8074_v61  ;;  %v1440_v20 = vsel %vm7539_vm6, %v10093_v43, 0.0  ;;  %v10104_v13 = vld [vmem:[#allocation50_spill] sm:$0xff]  ;;  %v10105_v43 = vld [vmem:[#allocation29_spill] sm:$0xff] }
 0x1bc   : > { %vm8139_vm1 = vcmp.lt.s32.totalorder %v10097_v14, 15  ;;  %v10098_v39 = vmov 0  ;;  %v2569_v32 = vpack.c.bf16 %v2490_v24, %v2552_v52  ;;  %v1442_v5 = vsel %vm7585_vm7, %v10100_v56, 0.0  ;;  %v10109_v56 = vld [vmem:[#allocation44_spill] sm:$0xff]  ;;  %6070 = vmatpush3.bf16.msra.mxu0 %v6810_v27  ;;  %v10119_v27 = vld [vmem:[#allocation23_spill] sm:$0xff] }
 0x1bd   : > { %v10099_v39 = vsel %vm8139_vm1, 4294967295, %v10098_v39  ;;  %v10102_v59 = vunpack.c.l.bf16 %v7847_v23  ;;  %v10103_v12 = vunpack.c.h.bf16 %v7847_v23  ;;  %v2093_v14 = vsel %vm8006_vm3, %v10104_v13, 0.0  ;;  %v10114_v13 = vld [vmem:[#allocation31_spill] sm:$0xff]  ;;  %6071 = vmatprep.subr.bf16.mxu0 %v6812_v1 }
 0x1be   : > { %v10106_v52 = vand.u32 15, %v10105_v43  ;;  %v1466_v2 = vpack.c.bf16 %v10109_v56, %v1440_v20  ;;  %v8165_v33 = vpack.c.bf16 %v2093_v14, %v7489_v10  ;;  %vm10113_vm2 = vcmp.lt.s32.totalorder %v7272_v9, 7  ;;  %v6813_v10 = vld [vmem:[#allocation7 + $0x58] sm:$0xff]  }
 0x1bf   : > { %v8148_v47 = vrot.slane %v10102_v59, 1  ;;  %v8152_v35 = vrot.slane %v10103_v12, 1  ;;  %v10111_v59 = vld [vmem:[#allocation46_spill] sm:$0xff]  ;;  %v2013_v43 = vsel %vm10113_vm2, %v7899_v48, %v7966_v42  ;;  %vm10118_vm6 = vcmask 523264   ;;  %vm10121_vm3 = vmmov %vm10113_vm2  ;;  %v10151_v42 = vld [vmem:[#allocation19_spill] sm:$0xff] }
 0x1c0   : > { %vm8159_vm4 = vcmp.lt.s32.totalorder %v10106_v52, 15  ;;  %10110 = vst [vmem:[#allocation36_spill] sm:$0xff] %v8165_v33  ;;  %v8168_v58 = vpack.c.bf16 %v10111_v59, %v1442_v5  ;;  %v10112_v12 = vld [vmem:[#allocation22_spill] sm:$0xff]  ;;  %v10115_v52 = vand.u32 15, %v10114_v13  ;;  %6144 = vmatmul.mubr.msk.bf16.gmra.mrb[20].mxu1 %vm10118_vm6, %v2569_v32  ;;  %v2014_v14 = vsel %vm10121_vm3, %v7895_v22, %v7899_v48  ;;  %v10122_v59 = vld [vmem:[#allocation27_spill] sm:$0xff]  ;;  %v10126_v32 = vld [vmem:[#allocation20_spill] sm:$0xff]  ;;  %6072 = vmatpush3.bf16.msra.mxu0 %v6812_v1 }
 0x1c1   : > { %v3183_v31 = vsel %vm8034_vm14, %v10112_v12, 0.0  ;;  %v2097_v56 = vsel %vm8051_vm15, %v2013_v43, 0.0  ;;  %v10123_v12 = vand.u32 15, %v10122_v59  ;;  %v10124_v13 = vmov 0  ;;  %6155 = vmatprep.mubr.msk.bf16.mxu1 %vm10118_vm6, %v10126_v32  ;;  %vm10128_vm14 = vmmov %vm10118_vm6  ;;  %6073 = vmatprep.subr.bf16.mxu0 %v6813_v10  ;;  %v10140_v32 = vld [vmem:[#allocation33_spill] sm:$0xff] }
 0x1c2   : > { %vm8179_vm7 = vcmp.lt.s32.totalorder %v10115_v52, 15  ;;  %v8185_v5 = vpack.c.bf16 %v3183_v31, %v10119_v27  ;;  %v8201_v52 = vpack.c.bf16 %v2097_v56, %v2014_v14  ;;  %6040 = vmatmul.mubr.msk.bf16.gmra.mrb[36].mxu0 %vm10128_vm14, %v8002_v55  ;;  %v10129_v31 = vld [vmem:[#allocation52_spill] sm:$0xff]  ;;  %v3189_v27 = vsel %vm8104_vm5, %v2013_v43, 0.0 }
 0x1c3   : > { %vm8195_vm2 = vcmp.lt.s32.totalorder %v10123_v12, 15  ;;  %v1444_v48 = vsel %vm7616_vm8, %v10129_v31, 0.0  ;;  %v2009_v59 = vsel %vm10121_vm3, %v7981_v4, %v7993_v57  ;;  %v10130_v12 = vld [vmem:[#allocation32_spill] sm:$0xff]  ;;  %6043 = vmatprep.mubr.msk.bf16.mxu0 %vm10128_vm14, %v7977_v60  ;;  %vm10135_vm8 = vmmov %vm10121_vm3  ;;  %v10138_v60 = vunpack.c.l.bf16 %v7973_v11 }
 0x1c4   : > { %10120 = vst [vmem:[#allocation26_spill] sm:$0xff] %v8185_v5  ;;  %v10125_v13 = vsel %vm8195_vm2, 4294967295, %v10124_v13  ;;  %10127 = vst [vmem:[#allocation28_spill] sm:$0xff] %v8201_v52  ;;  %v10131_v5 = vand.u32 15, %v10130_v12  ;;  %v2010_v43 = vsel %vm10135_vm8, %v7970_v19, %v7981_v4  ;;  %v2101_v31 = vsel %vm8086_vm13, %v2009_v59, 0.0  ;;  %6074 = vmatpush3.bf16.msra.mxu0 %v6813_v10  ;;  %v8283_v10 = vld [vmem:[#allocation7 + $0x60] sm:$0xff]  }
 0x1c5   : > { %v8233_v12 = vpack.c.bf16 %v2101_v31, %v2010_v43  ;;  %v8237_v34 = vrot.slane %v10138_v60, 1  ;;  %v2007_v1 = vsel %vm10121_vm3, %v7997_v45, %v8021_v17  ;;  %vm10139_vm8 = vmmov %vm10121_vm3  ;;  %v10141_v52 = vand.u32 15, %v10140_v32  ;;  %v6807_v60 = vld [vmem:[#allocation7 + $0xa8] sm:$0xff]   ;;  %v10146_v32 = vld [vmem:[#allocation58_spill] sm:$0xff]  ;;  %6107 = vmatprep.subr.bf16.mxu0 %v8283_v10 }
 0x1c6   : > { %vm8216_vm6 = vcmp.lt.s32.totalorder %v10131_v5, 15  ;;  %v8231_v5 = vpack.c.bf16 %v3189_v27, %v2014_v14  ;;  %v2008_v4 = vsel %vm10139_vm8, %v7993_v57, %v7997_v45  ;;  %v10144_v27 = vunpack.c.h.bf16 %v7973_v11  ;;  %v10145_v57 = vld [vmem:[#allocation53_spill] sm:$0xff]  ;;  %vm10147_vm8 = vmmov %vm10121_vm3 }
 0x1c7   : > { %10137 = vst [vmem:[#allocation50_spill] sm:$0xff] %v8233_v12  ;;  %vm8249_vm14 = vcmp.lt.s32.totalorder %v10141_v52, 15  ;;  %v2005_v12 = vsel %vm10121_vm3, %v8025_v0, %v8029_v44  ;;  %v1468_v45 = vpack.c.bf16 %v10145_v57, %v1444_v48  ;;  %v10148_v11 = vand.u32 15, %v7558_v8 }
 0x1c8   : > { %10136 = vst [vmem:[#allocation47_spill] sm:$0xff] %v8231_v5  ;;  %v8255_v31 = vrot.slane %v10144_v27, 1  ;;  %v2103_v5 = vsel %vm8139_vm1, %v2007_v1, 0.0  ;;  %v2006_v27 = vsel %vm10147_vm8, %v8021_v17, %v8025_v0  ;;  %vm10152_vm3 = vcmask 523264   ;;  %v8846_v0 = vld [vmem:[#allocation7 + $0xe0] sm:$0xff]  }
 0x1c9   : > { %v8267_v33 = vpack.c.bf16 %v2103_v5, %v2008_v4  ;;  %vm8275_vm15 = vcmp.lt.s32.totalorder %v10148_v11, 15  ;;  %6156 = vmatmul.mubr.msk.bf16.vlgmr.msra.gmra.mrb[24].mxu1 %vm10152_vm3, %v10151_v42  ;;  %v2105_v48 = vsel %vm8159_vm4, %v2005_v12, 0.0  ;;  %vm10153_vm8 = vmmov %vm10152_vm3  ;;  %v3193_v8 = vsel %vm8195_vm2, %v2009_v59, 0.0 }
 0x1ca   : > { %6188 = vmatpush3.bf16.msra.mxu1 %v7790_v40  ;;  %6159 = vmatprep.mubr.msk.bf16.mxu1 %vm10153_vm8, %v7408_v16  ;;  %v8291_v17 = vpack.c.bf16 %v2105_v48, %v2006_v27  ;;  %vm10154_vm3 = vcmp.lt.s32.totalorder %v7272_v9, 7  ;;  %v10155_v11 = vand.u32 15, %v7561_v51  ;;  %vm10158_vm10 = vmmov %vm10153_vm8  ;;  %v6808_v40 = vld [vmem:[#allocation7 + $0xb0] sm:$0xff]   ;;  %v8305_v5 = vpack.c.bf16 %v3193_v8, %v2010_v43  ;;  %v6811_v8 = vld [vmem:[#allocation7 + $0xb8] sm:$0xff]  }
 0x1cb   : > { %v2003_v42 = vsel %vm10154_vm3, %v8057_v62, %v8068_v3  ;;  %6044 = vmatmul.mubr.msk.bf16.gmra.mrb[40].mxu0 %vm10158_vm10, %v8131_v37  ;;  %6189 = vmatprep.subr.bf16.mxu1 %v6807_v60  ;;  %vm10159_vm8 = vmmov %vm10154_vm3  ;;  %v10160_v51 = vand.u32 15, %v7571_v26  ;;  %v3195_v43 = vsel %vm8086_vm13, %v2007_v1, 0.0  ;;  %v3197_v1 = vsel %vm8139_vm1, %v2005_v12, 0.0 }
 0x1cc   : > { %vm8299_vm5 = vcmp.lt.s32.totalorder %v10155_v11, 15  ;;  %v2004_v59 = vsel %vm10159_vm8, %v8029_v44, %v8057_v62  ;;  %v2107_v57 = vsel %vm8179_vm7, %v2003_v42, 0.0  ;;  %vm10163_vm2 = vmmov %vm10158_vm10  ;;  %v2002_v26 = vsel %vm10159_vm8, %v8068_v3, %v8078_v38 }
 0x1cd   : > { %vm8315_vm3 = vcmp.lt.s32.totalorder %v10160_v51, 15  ;;  %6047 = vmatprep.mubr.msk.bf16.mxu0 %vm10163_vm2, %v1466_v2  ;;  %v8320_v37 = vpack.c.bf16 %v2107_v57, %v2004_v59  ;;  %vm10164_vm10 = vmmov %vm10159_vm8  ;;  %v8332_v44 = vpack.c.bf16 %v3195_v43, %v2008_v4  ;;  %v10165_v57 = vld [vmem:[#allocation25_spill] sm:$0xff]  ;;  %v10167_v52 = vmov 0 }
 0x1ce   : > { %v2001_v62 = vsel %vm10164_vm10, %v8078_v38, %v8092_v36  ;;  %6190 = vmatpush3.bf16.msra.mxu1 %v6807_v60  ;;  %v10166_v51 = vand.u32 15, %v10165_v57  ;;  %v8346_v38 = vpack.c.bf16 %v3197_v1, %v2006_v27  ;;  %vm10169_vm10 = vmmov %vm10159_vm8  ;;  %v2000_v12 = vsel %vm10159_vm8, %v8092_v36, %v8096_v6 }
 0x1cf   : > { %v2109_v2 = vsel %vm8216_vm6, %v2001_v62, 0.0  ;;  %6191 = vmatprep.subr.bf16.mxu1 %v6808_v40  ;;  %v1999_v3 = vsel %vm10169_vm10, %v8096_v6, %v8110_v54  ;;  %vm10170_vm1 = vcmask 523264   ;;  %vm10171_vm13 = vmmov %vm10159_vm8  ;;  %v8376_v6 = vld [vmem:[#allocation7 + $0xc0] sm:$0xff]  }
 0x1d0   : > { %v8338_v11 = vpack.c.bf16 %v2109_v2, %v2002_v26  ;;  %vm8342_vm2 = vcmp.lt.s32.totalorder %v10166_v51, 15  ;;  %v2111_v4 = vsel %vm8249_vm14, %v1999_v3, 0.0  ;;  %v1997_v60 = vsel %vm10171_vm13, %v8114_v29, %v8148_v47  ;;  %vm10172_vm10 = vmmov %vm10159_vm8 }
 0x1d1   : > { %v10168_v52 = vsel %vm8342_vm2, 4294967295, %v10167_v52  ;;  %6160 = vmatmul.mubr.msk.bf16.gmra.mrb[28].mxu1 %vm10170_vm1, %v7414_v28  ;;  %v1998_v27 = vsel %vm10172_vm10, %v8110_v54, %v8114_v29  ;;  %vm10173_vm12 = vmmov %vm10170_vm1  ;;  %v3199_v28 = vsel %vm8159_vm4, %v2003_v42, 0.0  ;;  %v8372_v36 = vpack.c.bf16 %v2111_v4, %v2000_v12  ;;  %v10182_v4 = vld [vmem:[#allocation17_spill] sm:$0xff] }
 0x1d2   : > { %6163 = vmatprep.mubr.msk.bf16.mxu1 %vm10173_vm12, %v7483_v18  ;;  %6192 = vmatpush3.bf16.msra.mxu1 %v6808_v40  ;;  %v8378_v43 = vpack.c.bf16 %v3199_v28, %v2004_v59  ;;  %v3201_v29 = vsel %vm8179_vm7, %v2001_v62, 0.0  ;;  %v2113_v54 = vsel %vm8275_vm15, %v1997_v60, 0.0  ;;  %v3203_v40 = vsel %vm8216_vm6, %v1999_v3, 0.0  ;;  %vm10174_vm12 = vmmov %vm10170_vm1 }
 0x1d3   : > { %6048 = vmatmul.mubr.msk.bf16.gmra.mrb[44].mxu0 %vm10170_vm1, %v8168_v58  ;;  %6193 = vmatprep.subr.bf16.mxu1 %v6811_v8  ;;  %v8387_v42 = vpack.c.bf16 %v3201_v29, %v2002_v26  ;;  %v8389_v2 = vpack.c.bf16 %v2113_v54, %v1998_v27  ;;  %v8391_v58 = vpack.c.bf16 %v3203_v40, %v2000_v12  ;;  %vm10175_vm13 = vmmov %vm10159_vm8 }
 0x1d4   : > { %6051 = vmatprep.mubr.msk.bf16.mxu0 %vm10174_vm12, %v1468_v45  ;;  %v1995_v59 = vsel %vm10175_vm13, %v8152_v35, %v8118_v15  ;;  %v1996_v62 = vsel %vm10159_vm8, %v8148_v47, %v8152_v35  ;;  %v3205_v45 = vsel %vm8249_vm14, %v1997_v60, 0.0  ;;  %vm10176_vm10 = vmmov %vm10159_vm8  ;;  %v10185_v60 = vld [vmem:[#allocation55_spill] sm:$0xff] }
 0x1d5   : > { %v2115_v1 = vsel %vm8299_vm5, %v1995_v59, 0.0  ;;  %v1993_v26 = vsel %vm10176_vm10, %v8124_v41, %v8237_v34  ;;  %v8411_v51 = vpack.c.bf16 %v3205_v45, %v1998_v27  ;;  %vm10179_vm1 = vmmov %vm10159_vm8  ;;  %v3207_v12 = vsel %vm8275_vm15, %v1995_v59, 0.0  ;;  %v10196_v45 = vld [vmem:[#allocation63_spill] sm:$0xff] }
 0x1d6   : > { %6194 = vmatpush3.bf16.msra.mxu1 %v6811_v8  ;;  %v8409_v57 = vpack.c.bf16 %v2115_v1, %v1996_v62  ;;  %v1994_v47 = vsel %vm10179_vm1, %v8118_v15, %v8124_v41  ;;  %v2117_v35 = vsel %vm8315_vm3, %v1993_v26, 0.0  ;;  %vm10181_vm12 = vmmov %vm10179_vm1  ;;  %v10184_v41 = vsel %vm7639_vm9, %v7711_v50, 0.0  ;;  %v10193_v1 = vld [vmem:[#allocation40_spill] sm:$0xff] }
 0x1d7   : > { %10178 = vst [vmem:[#allocation44_spill] sm:$0xff] %v8411_v51  ;;  %6227 = vmatprep.subr.bf16.mxu1 %v8376_v6  ;;  %v8420_v3 = vpack.c.bf16 %v2117_v35, %v1994_v47  ;;  %v1992_v8 = vsel %vm10181_vm12, %v8237_v34, %v8255_v31  ;;  %vm10183_vm13 = vmmov %vm10179_vm1  ;;  %v1469_v27 = vpack.c.bf16 %v10185_v60, %v10184_v41  ;;  %v3209_v54 = vsel %vm8299_vm5, %v1993_v26, 0.0  ;;  %v10202_v41 = vld [vmem:[#allocation21_spill] sm:$0xff] }
 0x1d8   : > { %10177 = vst [vmem:[#allocation29_spill] sm:$0xff] %v8409_v57  ;;  %v2023_v15 = vsel %vm10183_vm13, %v8255_v31, %v10182_v4  ;;  %v8437_v28 = vpack.c.bf16 %v3207_v12, %v1996_v62  ;;  %vm10187_vm8 = vcmask 523264   ;;  %v8447_v40 = vpack.c.bf16 %v3209_v54, %v1994_v47  ;;  %v10205_v54 = vld [vmem:[#allocation66_spill] sm:$0xff]  ;;  %v10272_v47 = vld [vmem:[#allocation36_spill] sm:$0xff] }
 0x1d9   : > { %10180 = vst [vmem:[#allocation46_spill] sm:$0xff] %v8420_v3  ;;  %v2119_v29 = vsel %vm8342_vm2, %v2023_v15, 0.0  ;;  %6164 = vmatmul.mubr.msk.bf16.gmra.mrb[0].mxu1 %vm10187_vm8, %v7478_v63  ;;  %vm10190_vm10 = vcmp.lt.s32.totalorder %v7272_v9, 1  ;;  %v10192_v59 = vunpack.c.l.bf16 %v7946_v30  ;;  %vm10194_vm1 = vmmov %vm10187_vm8  ;;  %v10195_v63 = vsel %vm7715_vm11, %v10146_v32, 0.0 }
 0x1da   : > { %10186 = vst [vmem:[#allocation22_spill] sm:$0xff] %v8437_v28  ;;  %v8445_v34 = vpack.c.bf16 %v2119_v29, %v1992_v8  ;;  %10189 = vst [vmem:[#allocation23_spill] sm:$0xff] %v8447_v40  ;;  %v8453_v50 = vsel %vm10190_vm10, %v8074_v61, %v7659_v53  ;;  %6167 = vmatprep.mubr.msk.bf16.mxu1 %vm10194_vm1, %v10193_v1  ;;  %v1470_v26 = vpack.c.bf16 %v10196_v45, %v10195_v63  ;;  %v10209_v63 = vld [vmem:[#allocation70_spill] sm:$0xff]  ;;  %v10210_v45 = vld [vmem:[#allocation68_spill] sm:$0xff] }
 0x1db   : > { %10191 = vst [vmem:[#allocation27_spill] sm:$0xff] %v8453_v50  ;;  %v3148_v62 = vrot.slane %v10192_v59, 1  ;;  %v10198_v12 = vunpack.c.h.bf16 %v7946_v30  ;;  %vm10199_vm12 = vmmov %vm10194_vm1  ;;  %v10206_v59 = vld [vmem:[#allocation59_spill] sm:$0xff] }
 0x1dc   : > { %10188 = vst [vmem:[#allocation31_spill] sm:$0xff] %v8445_v34  ;;  %6052 = vmatmul.mubr.msk.bf16.gmra.mrb[48].mxu0 %vm10199_vm12, %v1469_v27  ;;  %vm10200_vm8 = vmmov %vm10194_vm1  ;;  %vm10207_vm12 = vnez %v10206_v59  ;;  %v8627_v50 = vld [vmem:[#allocation2 + $0x78] sm:$0xff] }
 0x1dd   : > { %v3149_v61 = vrot.slane %v10198_v12, 1  ;;  %v3151_v53 = vsel %vm10183_vm13, %v8255_v31, %v3148_v62  ;;  %6055 = vmatprep.mubr.msk.bf16.mxu0 %vm10200_vm8, %v1470_v26  ;;  %vm10201_vm10 = vmmov %vm10183_vm13  ;;  %v1450_v31 = vsel %vm10207_vm12, %v10205_v54, 0.0  ;;  %vm10211_vm13 = vnez %v10210_v45  ;;  %v10213_v12 = vld [vmem:[#allocation65_spill] sm:$0xff] }
 0x1de   : > { %v3211_v32 = vsel %vm8315_vm3, %v3151_v53, 0.0  ;;  %vm10203_vm1 = vmmov %vm10201_vm10  ;;  %v1452_v26 = vsel %vm10211_vm13, %v10209_v63, 0.0  ;;  %v10216_v53 = vld [vmem:[#allocation75_spill] sm:$0xff]  ;;  %v10222_v54 = vld [vmem:[#allocation81_spill] sm:$0xff]  ;;  %v10327_v20 = vunpack.c.h.bf16 %v8627_v50 }
 0x1df   : > { %v3150_v15 = vsel %vm10201_vm10, %v3148_v62, %v3149_v61  ;;  %v3181_v60 = vsel %vm10203_vm1, %v3149_v61, %v10202_v41  ;;  %v8481_v29 = vpack.c.bf16 %v3211_v32, %v1992_v8  ;;  %v10212_v62 = vld [vmem:[#allocation39_spill] sm:$0xff]  ;;  %v1471_v61 = vpack.c.bf16 %v10213_v12, %v1450_v31  ;;  %vm10215_vm10 = vmmov %vm10200_vm8  ;;  %v10223_v63 = vld [vmem:[#allocation80_spill] sm:$0xff] }
 0x1e0   : > { %v3213_v27 = vsel %vm8342_vm2, %v3181_v60, 0.0  ;;  %v10214_v8 = vld [vmem:[#allocation51_spill] sm:$0xff]  ;;  %v1472_v32 = vpack.c.bf16 %v10216_v53, %v1452_v26  ;;  %vm10217_vm1 = vmmov %vm10200_vm8  ;;  %vm10224_vm13 = vnez %v10223_v63  ;;  %v10227_v12 = vld [vmem:[#allocation48_spill] sm:$0xff] }
 0x1e1   : > { %10204 = vst [vmem:[#allocation20_spill] sm:$0xff] %v8481_v29  ;;  %v8488_v1 = vpack.c.bf16 %v3213_v27, %v3150_v15  ;;  %6168 = vmatmul.mubr.msk.bf16.gmra.mrb[4].mxu1 %vm10200_vm8, %v10212_v62  ;;  %vm10218_vm11 = vmmov %vm10217_vm1  ;;  %v10219_v15 = vld [vmem:[#allocation78_spill] sm:$0xff]  ;;  %v10220_v60 = vld [vmem:[#allocation71_spill] sm:$0xff]  ;;  %v1456_v35 = vsel %vm10224_vm13, %v10222_v54, 0.0  ;;  %v10235_v54 = vunpack.c.h.bf16 %v7483_v18 }
 0x1e2   : > { %6171 = vmatprep.mubr.msk.bf16.mxu1 %vm10215_vm10, %v10214_v8  ;;  %vm10221_vm12 = vnez %v10220_v60  ;;  %v10225_v62 = vld [vmem:[#allocation16_spill] sm:$0xff]  ;;  %vm10228_vm8 = vmmov %vm10217_vm1  ;;  %v10229_v8 = vld [vmem:[#allocation77_spill] sm:$0xff]  ;;  %v10233_v60 = vunpack.c.h.bf16 %v7408_v16 }
 0x1e3   : > { %10208 = vst [vmem:[#allocation52_spill] sm:$0xff] %v8488_v1  ;;  %v1454_v27 = vsel %vm10221_vm12, %v10219_v15, 0.0  ;;  %v10226_v45 = vunpack.c.h.bf16 %v10225_v62  ;;  %v10230_v53 = vld [vmem:[#allocation61_spill] sm:$0xff]  ;;  %vm10231_vm10 = vmmov %vm10217_vm1  ;;  %v8520_v63 = vrot.slane %v10235_v54, 1  ;;  %v10239_v62 = vld [vmem:[#allocation82_spill] sm:$0xff] }
 0x1e4   : > { %6056 = vmatmul.mubr.msk.bf16.gmra.mrb[52].mxu0 %vm10217_vm1, %v1471_v61  ;;  %v1473_v26 = vpack.c.bf16 %v10229_v8, %v1454_v27  ;;  %v10232_v61 = vld [vmem:[#allocation88_spill] sm:$0xff]  ;;  %v1966_v15 = vrot.slane %v10233_v60, 1  ;;  %v10238_v27 = vld [vmem:[#allocation90_spill] sm:$0xff]  ;;  %v8543_v60 = vld [vmem:[#allocation2 + $0x28] sm:$0xff] }
 0x1e5   : > { %6059 = vmatprep.mubr.msk.bf16.mxu0 %vm10218_vm11, %v1472_v32  ;;  %v1960_v31 = vrot.slane %v10226_v45, 1  ;;  %v1474_v32 = vpack.c.bf16 %v10232_v61, %v1456_v35  ;;  %vm10234_vm11 = vmmov %vm10217_vm1  ;;  %10236 = vst [vmem:[#allocation32_spill] sm:$0xff] %v8520_v63  ;;  %v10247_v8 = vld [vmem:[#allocation57_spill] sm:$0xff]  ;;  %v10264_v21 = vunpack.c.l.bf16 %v8543_v60  ;;  %v8614_v1 = vld [vmem:[#allocation2 + $0x70] sm:$0xff]  ;;  %v10276_v40 = vunpack.c.h.bf16 %v8543_v60 }
 0x1e6   : > { %10246 = vst [vmem:[#allocation53_spill] sm:$0xff] %v8543_v60  ;;  %v10254_v54 = vld [vmem:[#allocation85_spill] sm:$0xff]  ;;  %v10270_v29 = vld [vmem:[#allocation24_spill] sm:$0xff] }
 0x1e7   : > { %v4216_v55 = vrot.slane %v10264_v21, 1  ;;  %v10266_v21 = vld [vmem:[#allocation69_spill] sm:$0xff]  ;;  %v4217_v51 = vrot.slane %v10276_v40, 1 }
 0x1e8   : > { %v8669_v60 = vld [vmem:[#allocation2 + $0x88] sm:$0xff] }
 0x1e9   : > { %6172 = vmatmul.mubr.msk.bf16.gmra.mrb[8].mxu1 %vm10228_vm8, %v10227_v12  ;;  %vm10237_vm8 = vcmp.lt.s32.totalorder %v7272_v9, 7 }
 0x1ea   : > { %6175 = vmatprep.mubr.msk.bf16.mxu1 %vm10231_vm10, %v10230_v53  ;;  %v2021_v45 = vsel %vm10237_vm8, %v1960_v31, %v10202_v41  ;;  %vm10240_vm10 = vnez %v10239_v62  ;;  %vm10241_vm13 = vmmov %vm10237_vm8 }
 0x1eb   : > { %v1458_v12 = vsel %vm10240_vm10, %v10238_v27, 0.0  ;;  %v2022_v16 = vsel %vm10241_vm13, %v10182_v4, %v1960_v31  ;;  %vm10243_vm12 = vmmov %vm10237_vm8  ;;  %v8548_v31 = vld [vmem:[#allocation2 + $0x90] sm:$0xff]  ;;  %v8561_v27 = vld [vmem:[#allocation2 + $0x18] sm:$0xff] }
 0x1ec   : > { %6060 = vmatmul.mubr.msk.bf16.gmra.mrb[56].mxu0 %vm10234_vm11, %v1473_v26  ;;  %vm10242_vm11 = vnez %v10061_v25  ;;  %v2015_v18 = vsel %vm10243_vm12, %v1966_v15, %v7895_v22  ;;  %v10249_v26 = vld [vmem:[#allocation89_spill] sm:$0xff]  ;;  %v10251_v22 = vld [vmem:[#allocation42_spill] sm:$0xff]  ;;  %10256 = vst [vmem:[#allocation58_spill] sm:$0xff] %v8561_v27  ;;  %v10341_v46 = vunpack.c.h.bf16 %v8548_v31 }
 0x1ed   : > { %6063 = vmatprep.mubr.msk.bf16.mxu0 %vm10217_vm1, %v1474_v32  ;;  %v2089_v35 = vsel %vm10242_vm11, %v2021_v45, 0.0  ;;  %vm10244_vm1 = vmmov %vm10237_vm8  ;;  %vm10248_vm8 = vcmask 523264   ;;  %v1475_v4 = vpack.c.bf16 %v10249_v26, %v1458_v12  ;;  %v10257_v12 = vld [vmem:[#allocation87_spill] sm:$0xff]  ;;  %v6838_v25 = vld [vmem:[#allocation7 + $0x70] sm:$0xff]  }
 0x1ee   : > { %v8541_v41 = vsel %vm10244_vm1, %v8520_v63, %v7970_v19  ;;  %vm10250_vm13 = vmmov %vm10248_vm8  ;;  %v2120_v53 = vpack.c.bf16 %v2089_v35, %v2022_v16  ;;  %vm10258_vm9 = vnez %v10257_v12  ;;  %v10297_v12 = vld [vmem:[#allocation28_spill] sm:$0xff] }
 0x1ef   : > { %10245 = vst [vmem:[#allocation33_spill] sm:$0xff] %v8541_v41  ;;  %vm10252_vm12 = vmmov %vm10244_vm1  ;;  %vm10253_vm1 = vnez %v10084_v49  ;;  %v8581_v49 = vld [vmem:[#allocation2 + $0x40] sm:$0xff] }
 0x1f0   : > { %v2016_v61 = vsel %vm10252_vm12, %v10251_v22, %v1966_v15  ;;  %v2095_v32 = vsel %vm10253_vm1, %v2015_v18, 0.0  ;;  %vm10255_vm10 = vmmov %vm10252_vm12  ;;  %v10260_v15 = vld [vmem:[#allocation91_spill] sm:$0xff] }
 0x1f1   : > { %6176 = vmatmul.mubr.msk.bf16.gmra.mrb[12].mxu1 %vm10248_vm8, %v10247_v8  ;;  %v2012_v45 = vsel %vm10255_vm10, %v10254_v54, %v8520_v63  ;;  %vm10261_vm12 = vnez %v10260_v15  ;;  %v8572_v8 = vld [vmem:[#allocation2 + $0x20] sm:$0xff]  ;;  %vm10263_vm10 = vmmov %vm10248_vm8  ;;  %v8583_v63 = vld [vmem:[#allocation2 + $0x48] sm:$0xff]  ;;  %v10271_v54 = vunpack.c.h.bf16 %v8561_v27 }
 0x1f2   : > { %6179 = vmatprep.mubr.msk.bf16.mxu1 %vm10250_vm13, %v7847_v23  ;;  %v3187_v23 = vsel %vm10258_vm9, %v2015_v18, 0.0  ;;  %vm10259_vm13 = vnez %v10125_v13  ;;  %v3191_v35 = vsel %vm10261_vm12, %v8541_v41, 0.0  ;;  %10262 = vst [vmem:[#allocation19_spill] sm:$0xff] %v8572_v8  ;;  %v8595_v22 = vld [vmem:[#allocation2 + $0x58] sm:$0xff]  ;;  %v8612_v18 = vld [vmem:[#allocation2 + $0x68] sm:$0xff]  ;;  %v10274_v34 = vunpack.c.l.bf16 %v8572_v8 }
 0x1f3   : > { %v2099_v16 = vsel %vm10259_vm13, %v8541_v41, 0.0  ;;  %v8586_v62 = vpack.c.bf16 %v3187_v23, %v2016_v61  ;;  %v8590_v26 = vpack.c.bf16 %v3191_v35, %v2012_v45  ;;  %v8601_v41 = vld [vmem:[#allocation2 + $0x30] sm:$0xff]  ;;  %v8604_v23 = vld [vmem:[#allocation2 + $0x60] sm:$0xff] }
 0x1f4   : > { %6064 = vmatmul.mubr.msk.bf16.gmra.mrb[60].mxu0 %vm10248_vm8, %v1475_v4  ;;  %v8577_v4 = vpack.c.bf16 %v2095_v32, %v2016_v61  ;;  %v8588_v59 = vpack.c.bf16 %v2099_v16, %v2012_v45  ;;  %v8593_v32 = vld [vmem:[#allocation2 + $0x50] sm:$0xff]  ;;  %10265 = vst [vmem:[#allocation25_spill] sm:$0xff] %v8601_v41  ;;  %v8606_v45 = vld [vmem:[#allocation2 + $0x38] sm:$0xff]  ;;  %v4214_v28 = vrot.slane %v10274_v34, 1  ;;  %v10278_v34 = vunpack.c.l.bf16 %v8601_v41 }
 0x1f5   : > { %6075 = vmatprep.mubr.msk.bf16.mxu0 %vm10263_vm10, %v2120_v53  ;;  %v10267_v35 = vld [vmem:[#allocation86_spill] sm:$0xff]  ;;  %vm10268_vm10 = vmmov %vm10248_vm8  ;;  %v4213_v53 = vrot.slane %v10271_v54, 1 }
 0x1f6   : > { %v10283_v41 = vld [vmem:[#allocation18_spill] sm:$0xff] }
 0x1f9   : > { %6180 = vmatmul.mubr.msk.bf16.gmra.mrb[16].mxu1 %vm10248_vm8, %v10266_v21  ;;  %v10269_v21 = vunpack.c.l.bf16 %v8561_v27 }
 0x1fa   : > { %6183 = vmatprep.mubr.msk.bf16.mxu1 %vm10268_vm10, %v10267_v35  ;;  %vm10273_vm10 = vmmov %vm10248_vm8  ;;  %v6837_v35 = vld [vmem:[#allocation7 + $0x68] sm:$0xff]  }
 0x1fb   : > { %v8631_v61 = vrot.slane %v10269_v21, 1  ;;  %v8659_v21 = vrot.slane %v10278_v34, 1 }
 0x1fc   : > { %6076 = vmatmul.mubr.msk.bf16.vlgmr.msra.gmra.mrb[32].mxu0 %vm10248_vm8, %v10270_v29  ;;  %v10275_v29 = vunpack.c.h.bf16 %v8572_v8  ;;  %vm10277_vm8 = vcmp.lt.s32.totalorder %v7272_v9, 7 }
 0x1fd   : > { %6079 = vmatprep.mubr.msk.bf16.mxu0 %vm10273_vm10, %v10272_v47  ;;  %6108 = vmatpush3.bf16.msra.mxu0 %v8283_v10  ;;  %v8652_v47 = vld [vmem:[#allocation2 + $0x80] sm:$0xff]  ;;  %v4274_v10 = vsel %vm10277_vm8, %v8631_v61, %v4213_v53  ;;  %vm10279_vm10 = vmmov %vm10277_vm8 }
 0x1fe   : > { %v4215_v16 = vrot.slane %v10275_v29, 1  ;;  %6109 = vmatprep.subr.bf16.mxu0 %v6837_v35  ;;  %v4273_v29 = vsel %vm10279_vm10, %v4213_v53, %v4214_v28  ;;  %vm10280_vm1 = vmmov %vm10277_vm8  ;;  %vm10284_vm8 = vnez %v10283_v41  ;;  %v3546_v3 = vunpack.c.l.bf16 %v8652_v47  ;;  %v6815_v41 = vld [vmem:[#allocation7 + $0xc8] sm:$0xff]  }
 0x1ff   : > { %vm10281_vm0 = vmmov %vm10280_vm1  ;;  %v4277_v8 = vsel %vm10242_vm11, %v4273_v29, 0.0  ;;  %v10291_v29 = vunpack.c.h.bf16 %v8581_v49 }
 0x200   : > { %v4271_v40 = vsel %vm10280_vm1, %v4215_v16, %v4216_v55  ;;  %v4272_v54 = vsel %vm10281_vm0, %v4214_v28, %v4215_v16  ;;  %vm10282_vm2 = vmmov %vm10281_vm0  ;;  %v8679_v57 = vpack.c.bf16 %v4277_v8, %v4274_v10  ;;  %v10288_v8 = vunpack.c.l.bf16 %v8581_v49 }
 0x201   : > { %v4270_v27 = vsel %vm10282_vm2, %v4216_v55, %v4217_v51  ;;  %v4279_v34 = vsel %vm10284_vm8, %v4271_v40, 0.0  ;;  %vm10285_vm10 = vmmov %vm10281_vm0  ;;  %6110 = vmatpush3.bf16.msra.mxu0 %v6837_v35  ;;  %vm10286_vm0 = vcmask 523264   ;;  %v10292_v40 = vunpack.c.l.bf16 %v8583_v63 }
 0x202   : > { %v4269_v53 = vsel %vm10285_vm10, %v4217_v51, %v8659_v21  ;;  %v8681_v28 = vpack.c.bf16 %v4279_v34, %v4272_v54  ;;  %6184 = vmatmul.mubr.msk.bf16.gmra.mrb[20].mxu1 %vm10286_vm0, %v7946_v30  ;;  %6111 = vmatprep.subr.bf16.mxu0 %v6838_v25  ;;  %v10287_v51 = vunpack.c.h.bf16 %v8606_v45  ;;  %v4222_v10 = vrot.slane %v10288_v8, 1  ;;  %v10289_v54 = vld [vmem:[#allocation26_spill] sm:$0xff]  ;;  %vm10290_vm2 = vmmov %vm10286_vm0 }
 0x203   : > { %v4281_v55 = vsel %vm10258_vm9, %v4269_v53, 0.0  ;;  %6195 = vmatprep.mubr.msk.bf16.mxu1 %vm10290_vm2, %v10289_v54  ;;  %v4223_v30 = vrot.slane %v10291_v29, 1  ;;  %v4224_v34 = vrot.slane %v10292_v40, 1  ;;  %vm10294_vm9 = vmmov %vm10286_vm0  ;;  %v10296_v54 = vunpack.c.l.bf16 %v8593_v32 }
 0x204   : > { %v8688_v16 = vpack.c.bf16 %v4281_v55, %v4270_v27  ;;  %v4221_v35 = vrot.slane %v10287_v51, 1  ;;  %v10293_v27 = vunpack.c.h.bf16 %v8583_v63  ;;  %6080 = vmatmul.mubr.msk.bf16.gmra.mrb[36].mxu0 %vm10294_vm9, %v8577_v4  ;;  %vm10295_vm11 = vmmov %vm10280_vm1 }
 0x205   : > { %v4226_v29 = vrot.slane %v10296_v54, 1  ;;  %vm10298_vm8 = vmmov %vm10286_vm0  ;;  %6112 = vmatpush3.bf16.msra.mxu0 %v6838_v25  ;;  %v10303_v25 = vunpack.c.h.bf16 %v8593_v32 }
 0x206   : > { %v4225_v53 = vrot.slane %v10293_v27, 1  ;;  %v4265_v51 = vsel %vm10295_vm11, %v4221_v35, %v4222_v10  ;;  %v4266_v8 = vsel %vm10280_vm1, %v7970_v19, %v4221_v35  ;;  %6083 = vmatprep.mubr.msk.bf16.mxu0 %vm10298_vm8, %v10297_v12  ;;  %vm10299_vm10 = vmmov %vm10280_vm1  ;;  %v6839_v19 = vld [vmem:[#allocation7 + $0x78] sm:$0xff]  }
 0x207   : > { %v4285_v40 = vsel %vm10261_vm12, %v4265_v51, 0.0  ;;  %v4263_v4 = vsel %vm10299_vm10, %v4223_v30, %v4224_v34  ;;  %vm10300_vm0 = vmmov %vm10280_vm1  ;;  %6113 = vmatprep.subr.bf16.mxu0 %v6839_v19  ;;  %v4227_v51 = vrot.slane %v10303_v25, 1  ;;  %vm10304_vm12 = vnez %v10077_v7 }
 0x208   : > { %v4264_v27 = vsel %vm10300_vm0, %v4222_v10, %v4223_v30  ;;  %vm10301_vm2 = vmmov %vm10300_vm0  ;;  %v8723_v35 = vpack.c.bf16 %v4285_v40, %v4266_v8  ;;  %v4287_v12 = vsel %vm10259_vm13, %v4263_v4, 0.0  ;;  %v10305_v30 = vunpack.c.l.bf16 %v8595_v22 }
 0x209   : > { %v4262_v55 = vsel %vm10301_vm2, %v4224_v34, %v4225_v53  ;;  %vm10302_vm9 = vmmov %vm10300_vm0  ;;  %v8731_v54 = vpack.c.bf16 %v4287_v12, %v4264_v27  ;;  %v10306_v8 = vunpack.c.h.bf16 %v8595_v22  ;;  %v10308_v4 = vunpack.c.l.bf16 %v8604_v23  ;;  %6114 = vmatpush3.bf16.msra.mxu0 %v6839_v19 }
 0x20a   : > { %v4261_v15 = vsel %vm10302_vm9, %v4225_v53, %v4226_v29  ;;  %v4228_v34 = vrot.slane %v10305_v30, 1  ;;  %vm10307_vm13 = vmmov %vm10300_vm0  ;;  %v10309_v27 = vunpack.c.h.bf16 %v8604_v23  ;;  %v10312_v30 = vunpack.c.l.bf16 %v8612_v18 }
 0x20b   : > { %v4289_v10 = vsel %vm10304_vm12, %v4261_v15, 0.0  ;;  %v4229_v40 = vrot.slane %v10306_v8, 1  ;;  %v4260_v53 = vsel %vm10307_vm13, %v4226_v29, %v4227_v51  ;;  %v4230_v25 = vrot.slane %v10308_v4, 1  ;;  %vm10310_vm11 = vmmov %vm10300_vm0  ;;  %v10314_v29 = vld [vmem:[#allocation60_spill] sm:$0xff] }
 0x20c   : > { %v8739_v13 = vpack.c.bf16 %v4289_v10, %v4262_v55  ;;  %v4231_v12 = vrot.slane %v10309_v27, 1  ;;  %v4259_v7 = vsel %vm10310_vm11, %v4227_v51, %v4228_v34  ;;  %vm10311_vm1 = vmmov %vm10300_vm0  ;;  %v4232_v55 = vrot.slane %v10312_v30, 1  ;;  %6196 = vmatmul.mubr.msk.bf16.vlgmr.msra.gmra.mrb[24].mxu1 %vm10298_vm8, %v10314_v29 }
 0x20d   : > { %v4258_v15 = vsel %vm10311_vm1, %v4228_v34, %v4229_v40  ;;  %v10313_v10 = vunpack.c.h.bf16 %v8612_v18  ;;  %vm10315_vm10 = vnez %v10099_v39  ;;  %v4257_v19 = vsel %vm10300_vm0, %v4229_v40, %v4230_v25  ;;  %vm10316_vm2 = vmmov %vm10300_vm0  ;;  %6228 = vmatpush3.bf16.msra.mxu1 %v8376_v6 }
 0x20e   : > { %v4291_v4 = vsel %vm10315_vm10, %v4259_v7, 0.0  ;;  %v4256_v51 = vsel %vm10316_vm2, %v4230_v25, %v4231_v12  ;;  %v10317_v34 = vunpack.c.l.bf16 %v8614_v1  ;;  %vm10318_vm9 = vmmov %vm10298_vm8  ;;  %v4293_v39 = vsel %vm8159_vm4, %v4257_v19, 0.0  ;;  %6229 = vmatprep.subr.bf16.mxu1 %v6815_v41  ;;  %v6816_v25 = vld [vmem:[#allocation7 + $0xd0] sm:$0xff]  }
 0x20f   : > { %v4233_v8 = vrot.slane %v10313_v10, 1  ;;  %6199 = vmatprep.mubr.msk.bf16.mxu1 %vm10318_vm9, %v8586_v62  ;;  %v8768_v30 = vpack.c.bf16 %v4291_v4, %v4260_v53  ;;  %vm10319_vm12 = vmmov %vm10300_vm0  ;;  %v8778_v6 = vpack.c.bf16 %v4293_v39, %v4258_v15  ;;  %v10323_v53 = vunpack.c.h.bf16 %v8614_v1 }
 0x210   : > { %v4234_v27 = vrot.slane %v10317_v34, 1  ;;  %v4255_v7 = vsel %vm10319_vm12, %v4231_v12, %v4232_v55  ;;  %vm10320_vm13 = vmmov %vm10300_vm0  ;;  %v10324_v12 = vld [vmem:[#allocation50_spill] sm:$0xff]  ;;  %v10326_v15 = vunpack.c.l.bf16 %v8627_v50  ;;  %v4237_v4 = vrot.slane %v10327_v20, 1 }
 0x211   : > { %v4254_v40 = vsel %vm10320_vm13, %v4232_v55, %v4233_v8  ;;  %vm10321_vm11 = vmmov %vm10298_vm8  ;;  %v4295_v62 = vsel %vm8179_vm7, %v4255_v7, 0.0  ;;  %v4235_v10 = vrot.slane %v10323_v53, 1  ;;  %v4238_v34 = vrot.slane %v3546_v3, 1  ;;  %6230 = vmatpush3.bf16.msra.mxu1 %v6815_v41 }
 0x212   : > { %6084 = vmatmul.mubr.msk.bf16.gmra.mrb[40].mxu0 %vm10321_vm11, %v8588_v59  ;;  %vm10322_vm1 = vmmov %vm10300_vm0  ;;  %v8788_v55 = vpack.c.bf16 %v4295_v62, %v4256_v51  ;;  %v4236_v29 = vrot.slane %v10326_v15, 1  ;;  %v10329_v51 = vunpack.c.h.bf16 %v8652_v47  ;;  %v10332_v62 = vunpack.c.l.bf16 %v8669_v60  ;;  %6231 = vmatprep.subr.bf16.mxu1 %v6816_v25 }
 0x213   : > { %v4253_v24 = vsel %vm10322_vm1, %v4233_v8, %v4234_v27  ;;  %vm10325_vm4 = vmmov %vm10298_vm8 }
 0x214   : > { %6087 = vmatprep.mubr.msk.bf16.mxu0 %vm10325_vm4, %v10324_v12  ;;  %v4297_v59 = vsel %vm8216_vm6, %v4253_v24, 0.0  ;;  %vm10328_vm7 = vmmov %vm10300_vm0  ;;  %v4239_v39 = vrot.slane %v10329_v51, 1  ;;  %v10333_v24 = vunpack.c.h.bf16 %v8669_v60 }
 0x215   : > { %v8796_v19 = vpack.c.bf16 %v4297_v59, %v4254_v40  ;;  %v4252_v8 = vsel %vm10328_vm7, %v4234_v27, %v4235_v10  ;;  %vm10330_vm6 = vmmov %vm10300_vm0  ;;  %v4240_v40 = vrot.slane %v10332_v62, 1  ;;  %v6817_v27 = vld [vmem:[#allocation7 + $0xd8] sm:$0xff]   ;;  %v10335_v59 = vunpack.c.l.bf16 %v8548_v31  ;;  %6232 = vmatpush3.bf16.msra.mxu1 %v6816_v25 }
 0x216   : > { %v4251_v56 = vsel %vm10330_vm6, %v4235_v10, %v4236_v29  ;;  %vm10331_vm8 = vmmov %vm10300_vm0  ;;  %v4241_v53 = vrot.slane %v10333_v24, 1  ;;  %v4248_v10 = vsel %vm10300_vm0, %v4238_v34, %v4239_v39  ;;  %v4243_v62 = vrot.slane %v10341_v46, 1  ;;  %6233 = vmatprep.subr.bf16.mxu1 %v6817_v27 }
 0x217   : > { %v4250_v7 = vsel %vm10331_vm8, %v4236_v29, %v4237_v4  ;;  %v4299_v12 = vsel %vm8249_vm14, %v4251_v56, 0.0  ;;  %vm10334_vm10 = vmmov %vm10300_vm0  ;;  %v4242_v15 = vrot.slane %v10335_v59, 1  ;;  %v10338_v56 = vld [vmem:[#allocation47_spill] sm:$0xff]  ;;  %v10381_v59 = vld [vmem:[#allocation64_spill] sm:$0xff] }
 0x218   : > { %v4249_v41 = vsel %vm10334_vm10, %v4237_v4, %v4238_v34  ;;  %v8820_v29 = vpack.c.bf16 %v4299_v12, %v4252_v8  ;;  %vm10336_vm2 = vmmov %vm10300_vm0  ;;  %v10379_v12 = vmov %v10341_v46  ;;  %v10389_v46 = vld [vmem:[#allocation83_spill] sm:$0xff] }
 0x219   : > { %v4301_v20 = vsel %vm8275_vm15, %v4249_v41, 0.0  ;;  %v4247_v51 = vsel %vm10336_vm2, %v4239_v39, %v4240_v40  ;;  %vm10337_vm9 = vmmov %vm10300_vm0  ;;  %6234 = vmatpush3.bf16.msra.mxu1 %v6817_v27  ;;  %v8905_v41 = vrot.slane %v10379_v12, 7  ;;  %v10404_v12 = vld [vmem:[#allocation84_spill] sm:$0xff] }
 0x21a   : > { %v4246_v14 = vsel %vm10337_vm9, %v4240_v40, %v4241_v53  ;;  %vm10339_vm14 = vmmov %vm10325_vm4  ;;  %v8830_v4 = vpack.c.bf16 %v4301_v20, %v4250_v7  ;;  %v4303_v34 = vsel %vm8299_vm5, %v4247_v51, 0.0  ;;  %6267 = vmatprep.subr.bf16.mxu1 %v8846_v0  ;;  %v10383_v20 = vld [vmem:[#allocation23_spill] sm:$0xff]  ;;  %v10385_v51 = vld [vmem:[#allocation72_spill] sm:$0xff] }
 0x21b   : > { %6200 = vmatmul.mubr.msk.bf16.gmra.mrb[28].mxu1 %vm10339_vm14, %v10338_v56  ;;  %vm10340_vm12 = vmmov %vm10300_vm0  ;;  %v8840_v39 = vpack.c.bf16 %v4303_v34, %v4248_v10  ;;  %v10380_v10 = vld [vmem:[#allocation76_spill] sm:$0xff] }
 0x21c   : > { %v4245_v8 = vsel %vm10340_vm12, %v4241_v53, %v4242_v15  ;;  %vm10342_vm15 = vmmov %vm10325_vm4 }
 0x21d   : > { %6203 = vmatprep.mubr.msk.bf16.mxu1 %vm10342_vm15, %v8590_v26  ;;  %v4305_v40 = vsel %vm8315_vm3, %v4245_v8, 0.0  ;;  %vm10343_vm13 = vmmov %vm10325_vm4  ;;  %vm10347_vm3 = vnez %v10168_v52  ;;  %v10360_v52 = vld [vmem:[#allocation46_spill] sm:$0xff]  ;;  %v10387_v8 = vld [vmem:[#allocation20_spill] sm:$0xff] }
 0x21e   : > { %6088 = vmatmul.mubr.msk.bf16.gmra.mrb[44].mxu0 %vm10343_vm13, %v8267_v33  ;;  %v8848_v7 = vpack.c.bf16 %v4305_v40, %v4246_v14  ;;  %vm10344_vm5 = vmmov %vm10300_vm0  ;;  %v10358_v33 = vld [vmem:[#allocation29_spill] sm:$0xff] }
 0x21f   : > { %v4244_v24 = vsel %vm10344_vm5, %v4242_v15, %v4243_v62  ;;  %vm10345_vm11 = vmmov %vm10300_vm0 }
 0x220   : > { %v4275_v26 = vsel %vm10345_vm11, %v4243_v62, %v8631_v61  ;;  %vm10346_vm1 = vmmov %vm10325_vm4  ;;  %v10377_v61 = vld [vmem:[#allocation58_spill] sm:$0xff] }
 0x221   : > { %6091 = vmatprep.mubr.msk.bf16.mxu0 %vm10346_vm1, %v8291_v17  ;;  %v4307_v48 = vsel %vm10347_vm3, %v4275_v26, 0.0  ;;  %vm10348_vm4 = vmmov %vm10346_vm1  ;;  %v10362_v17 = vld [vmem:[#allocation44_spill] sm:$0xff]  ;;  %v10378_v53 = vunpack.c.l.bf16 %v10377_v61  ;;  %v10386_v56 = vunpack.c.h.bf16 %v10377_v61 }
 0x222   : > { %v8859_v25 = vpack.c.bf16 %v4307_v48, %v4244_v24  ;;  %vm10349_vm7 = vmmov %vm10346_vm1  ;;  %v10392_v24 = vld [vmem:[#allocation19_spill] sm:$0xff] }
 0x223   : > { %6204 = vmatmul.mubr.msk.bf16.gmra.mrb[0].mxu1 %vm10348_vm4, %v8305_v5  ;;  %vm10350_vm6 = vmmov %vm10346_vm1  ;;  %v10364_v5 = vld [vmem:[#allocation22_spill] sm:$0xff]  ;;  %v3552_v27 = vrot.slane %v10378_v53, 7  ;;  %v3553_v34 = vrot.slane %v10386_v56, 7  ;;  %v10393_v26 = vunpack.c.l.bf16 %v10392_v24  ;;  %v10401_v53 = vld [vmem:[#allocation52_spill] sm:$0xff] }
 0x224   : > { %6207 = vmatprep.mubr.msk.bf16.mxu1 %vm10349_vm7, %v8332_v44  ;;  %vm10351_vm8 = vmmov %vm10346_vm1  ;;  %v10368_v44 = vld [vmem:[#allocation27_spill] sm:$0xff] }
 0x225   : > { %vm10352_vm10 = vmmov %vm10346_vm1  ;;  %v3554_v48 = vrot.slane %v10393_v26, 7  ;;  %v6819_v26 = vld [vmem:[#allocation7 + $0xe8] sm:$0xff]  }
 0x226   : > { %6092 = vmatmul.mubr.msk.bf16.gmra.mrb[48].mxu0 %vm10350_vm6, %v8320_v37  ;;  %vm10353_vm0 = vmmov %vm10346_vm1  ;;  %v10366_v37 = vld [vmem:[#allocation79_spill] sm:$0xff]  ;;  %vm10382_vm6 = vnez %v10381_v59 }
 0x227   : > { %6095 = vmatprep.mubr.msk.bf16.mxu0 %vm10351_vm8, %v8338_v11  ;;  %vm10354_vm2 = vmmov %vm10353_vm0  ;;  %vm10367_vm1 = vnez %v10366_v37  ;;  %v2526_v15 = vsel %vm10382_vm6, %v10380_v10, 0.0 }
 0x228   : > { %vm10355_vm9 = vmmov %vm10353_vm0  ;;  %v10369_v11 = vsel %vm10367_vm1, %v10368_v44, 0.0  ;;  %v2556_v62 = vpack.c.bf16 %v10389_v46, %v2526_v15 }
 0x229   : > { %vm10356_vm14 = vmmov %vm10353_vm0 }
 0x22a   : > { %vm10357_vm12 = vmmov %vm10353_vm0 }
 0x22b   : > { %6208 = vmatmul.mubr.msk.bf16.gmra.mrb[4].mxu1 %vm10352_vm10, %v8346_v38  ;;  %vm10359_vm15 = vmmov %vm10353_vm0  ;;  %v10370_v38 = vld [vmem:[#allocation62_spill] sm:$0xff] }
 0x22c   : > { %6211 = vmatprep.mubr.msk.bf16.mxu1 %vm10353_vm0, %v8378_v43  ;;  %vm10361_vm13 = vmmov %vm10353_vm0  ;;  %v10371_v43 = vld [vmem:[#allocation31_spill] sm:$0xff] }
 0x22d   : > { %vm10363_vm5 = vmmov %vm10353_vm0 }
 0x22e   : > { %6096 = vmatmul.mubr.msk.bf16.gmra.mrb[52].mxu0 %vm10354_vm2, %v8372_v36  ;;  %vm10365_vm11 = vmmov %vm10353_vm0  ;;  %v2554_v36 = vpack.c.bf16 %v10370_v38, %v10369_v11  ;;  %v10398_v11 = vunpack.c.h.bf16 %v10392_v24 }
 0x22f   : > { %6099 = vmatprep.mubr.msk.bf16.mxu0 %vm10355_vm9, %v8389_v2  ;;  %vm10372_vm3 = vmmov %vm10353_vm0  ;;  %v10375_v2 = vld [vmem:[#allocation54_spill] sm:$0xff] }
 0x230   : > { %vm10373_vm4 = vmmov %vm10353_vm0  ;;  %vm10376_vm7 = vnez %v10375_v2  ;;  %v3555_v38 = vrot.slane %v10398_v11, 7  ;;  %v10416_v2 = vunpack.c.h.bf16 %v8606_v45 }
 0x231   : > { %vm10384_vm8 = vmmov %vm10353_vm0 }
 0x232   : > { %vm10388_vm10 = vmmov %vm10353_vm0  ;;  %vm10390_vm0 = vcmp.lt.s32.totalorder %v7272_v9, 1  ;;  %v3561_v59 = vrot.slane %v10416_v2, 7 }
 0x233   : > { %6212 = vmatmul.mubr.msk.bf16.gmra.mrb[8].mxu1 %vm10356_vm14, %v8387_v42  ;;  %v10374_v42 = vld [vmem:[#allocation74_spill] sm:$0xff]  ;;  %v3615_v40 = vsel %vm10390_vm0, %v8905_v41, %v3552_v27  ;;  %vm10391_vm9 = vmmov %vm10354_vm2 }
 0x234   : > { %6215 = vmatprep.mubr.msk.bf16.mxu1 %vm10357_vm12, %v8391_v58  ;;  %v2524_v58 = vsel %vm10376_vm7, %v10374_v42, 0.0  ;;  %vm10394_vm14 = vmmov %vm10390_vm0 }
 0x235   : > { %v2555_v14 = vpack.c.bf16 %v10385_v51, %v2524_v58 }
 0x236   : > { %6100 = vmatmul.mubr.msk.bf16.gmra.mrb[56].mxu0 %vm10359_vm15, %v10358_v33  ;;  %v3614_v33 = vsel %vm10394_vm14, %v3552_v27, %v3553_v34  ;;  %vm10402_vm15 = vmmov %vm10354_vm2 }
 0x237   : > { %6103 = vmatprep.mubr.msk.bf16.mxu0 %vm10361_vm13, %v10360_v52  ;;  %v3616_v52 = vsel %vm10367_vm1, %v3615_v40, 0.0  ;;  %vm10403_vm13 = vmmov %vm10390_vm0 }
 0x238   : > { %v3648_v58 = vpack.c.bf16 %v3614_v33, %v3616_v52  ;;  %v3613_v27 = vsel %vm10403_vm13, %v3553_v34, %v3554_v48  ;;  %vm10407_vm1 = vmmov %vm10354_vm2  ;;  %v10410_v34 = vld [vmem:[#allocation25_spill] sm:$0xff]  ;;  %v6820_v52 = vld [vmem:[#allocation7 + $0xf0] sm:$0xff]  }
 0x23b   : > { %6216 = vmatmul.mubr.msk.bf16.gmra.mrb[12].mxu1 %vm10363_vm5, %v10362_v17  ;;  %v10395_v17 = vld [vmem:[#allocation73_spill] sm:$0xff]  ;;  %vm10405_vm5 = vmmov %vm10354_vm2 }
 0x23c   : > { %6219 = vmatprep.mubr.msk.bf16.mxu1 %vm10365_vm11, %v10364_v5  ;;  %v10396_v5 = vld [vmem:[#allocation67_spill] sm:$0xff]  ;;  %vm10406_vm11 = vmmov %vm10390_vm0 }
 0x23d   : > { %vm10397_vm12 = vnez %v10396_v5 }
 0x23e   : > { %6104 = vmatmul.mubr.msk.bf16.gmra.mrb[60].mxu0 %vm10372_vm3, %v10371_v43  ;;  %v2528_v44 = vsel %vm10397_vm12, %v10395_v17, 0.0  ;;  %vm10409_vm3 = vmmov %vm10390_vm0  ;;  %v10417_v17 = vld [vmem:[#allocation35_spill] sm:$0xff] }
 0x23f   : > { %6115 = vmatprep.mubr.msk.bf16.mxu0 %vm10373_vm4, %v2554_v36  ;;  %v10399_v36 = vld [vmem:[#allocation53_spill] sm:$0xff]  ;;  %v2557_v37 = vpack.c.bf16 %v10404_v12, %v2528_v44  ;;  %v3612_v51 = vsel %vm10409_vm3, %v3554_v48, %v3555_v38  ;;  %vm10412_vm4 = vmmov %vm10390_vm0  ;;  %v10424_v12 = vunpack.c.l.bf16 %v8583_v63 }
 0x240   : > { %v10400_v43 = vunpack.c.l.bf16 %v10399_v36  ;;  %v10408_v15 = vunpack.c.h.bf16 %v10399_v36 }
 0x242   : > { %v3556_v42 = vrot.slane %v10400_v43, 7  ;;  %v10420_v43 = vld [vmem:[#allocation30_spill] sm:$0xff] }
 0x243   : > { %6220 = vmatmul.mubr.msk.bf16.gmra.mrb[16].mxu1 %vm10384_vm8, %v10383_v20  ;;  %v3557_v20 = vrot.slane %v10408_v15, 7  ;;  %vm10413_vm8 = vmmov %vm10407_vm1  ;;  %v10425_v15 = vld [vmem:[#allocation38_spill] sm:$0xff] }
 0x244   : > { %6223 = vmatprep.mubr.msk.bf16.mxu1 %vm10388_vm10, %v10387_v8  ;;  %v3611_v10 = vsel %vm10406_vm11, %v3555_v38, %v3556_v42  ;;  %v10411_v8 = vunpack.c.l.bf16 %v10410_v34  ;;  %vm10414_vm10 = vmmov %vm10390_vm0  ;;  %v10419_v38 = vld [vmem:[#allocation43_spill] sm:$0xff] }
 0x245   : > { %v3620_v56 = vsel %vm10382_vm6, %v3611_v10, 0.0  ;;  %v3610_v40 = vsel %vm10412_vm4, %v3556_v42, %v3557_v20  ;;  %vm10418_vm6 = vmmov %vm10390_vm0  ;;  %vm10421_vm0 = vnez %v10420_v43 }
 0x246   : > { %6116 = vmatmul.mubr.msk.bf16.vlgmr.msra.gmra.mrb[32].mxu0 %vm10354_vm2, %v2555_v14  ;;  %v3618_v14 = vsel %vm10376_vm7, %v3613_v27, 0.0  ;;  %v3558_v46 = vrot.slane %v10411_v8, 7  ;;  %v3650_v33 = vpack.c.bf16 %v3610_v40, %v3620_v56  ;;  %vm10415_vm7 = vmmov %vm10407_vm1  ;;  %v3624_v42 = vsel %vm10421_vm0, %v10419_v38, 0.0 }
 0x247   : > { %6119 = vmatprep.mubr.msk.bf16.mxu0 %vm10391_vm9, %v2556_v62  ;;  %v3649_v62 = vpack.c.bf16 %v3612_v51, %v3618_v14  ;;  %vm10426_vm2 = vmmov %vm10409_vm3  ;;  %v10431_v8 = vunpack.c.h.bf16 %v8583_v63 }
 0x248   : > { %v3609_v48 = vsel %vm10414_vm10, %v3557_v20, %v3558_v46  ;;  %v3608_v44 = vsel %vm10418_vm6, %v3558_v46, %v10417_v17  ;;  %v3606_v5 = vsel %vm10426_vm2, %v10425_v15, %v3561_v59  ;;  %v6821_v20 = vld [vmem:[#allocation7 + $0xf8] sm:$0xff]   ;;  %vm10427_vm9 = vmmov %vm10407_vm1 }
 0x249   : > { %v3622_v11 = vsel %vm10397_vm12, %v3609_v48, 0.0  ;;  %v3652_v51 = vpack.c.bf16 %v3606_v5, %v3624_v42  ;;  %vm10428_vm14 = vmmov %vm10426_vm2  ;;  %v3565_v46 = vrot.slane %v10431_v8, 7  ;;  %v10435_v48 = vld [vmem:[#allocation37_spill] sm:$0xff] }
 0x24a   : > { %v3651_v10 = vpack.c.bf16 %v3608_v44, %v3622_v11  ;;  %vm10429_vm12 = vmmov %vm10407_vm1  ;;  %vm10436_vm11 = vnez %v10435_v48  ;;  %v10439_v11 = vunpack.c.l.bf16 %v8595_v22  ;;  %v10449_v5 = vld [vmem:[#allocation45_spill] sm:$0xff] }
 0x24b   : > { %6224 = vmatmul.mubr.msk.bf16.gmra.mrb[20].mxu1 %vm10402_vm15, %v10401_v53  ;;  %v10423_v53 = vunpack.c.h.bf16 %v8581_v49  ;;  %vm10430_vm15 = vmmov %vm10426_vm2  ;;  %vm10450_vm0 = vnez %v10449_v5 }
 0x24c   : > { %6235 = vmatprep.mubr.msk.bf16.mxu1 %vm10405_vm5, %v3648_v58  ;;  %vm10432_vm13 = vmmov %vm10426_vm2  ;;  %v3568_v38 = vrot.slane %v10439_v11, 7  ;;  %v10461_v11 = vld [vmem:[#allocation49_spill] sm:$0xff] }
 0x24d   : > { %v3563_v27 = vrot.slane %v10423_v53, 7  ;;  %vm10441_vm3 = vmmov %vm10415_vm7 }
 0x24e   : > { %6120 = vmatmul.mubr.msk.bf16.gmra.mrb[36].mxu0 %vm10407_vm1, %v2557_v37  ;;  %v3564_v37 = vrot.slane %v10424_v12, 7  ;;  %vm10440_vm1 = vmmov %vm10426_vm2 }
 0x24f   : > { %vm10442_vm4 = vmmov %vm10440_vm1 }
 0x250   : > { %v3603_v56 = vsel %vm10430_vm15, %v3563_v27, %v3564_v37  ;;  %v3602_v42 = vsel %vm10440_vm1, %v3564_v37, %v3565_v46  ;;  %vm10444_vm10 = vmmov %vm10440_vm1  ;;  %v10447_v37 = vld [vmem:[#allocation41_spill] sm:$0xff] }
 0x251   : > { %v3628_v2 = vsel %vm10436_vm11, %v3603_v56, 0.0  ;;  %vm10448_vm6 = vnez %v10447_v37  ;;  %v10452_v56 = vunpack.c.h.bf16 %v8604_v23  ;;  %vm10454_vm2 = vmmov %vm10440_vm1 }
 0x252   : > { %vm10458_vm15 = vmmov %vm10440_vm1 }
 0x253   : > { %6236 = vmatmul.mubr.msk.bf16.vlgmr.msra.gmra.mrb[24].mxu1 %vm10413_vm8, %v3649_v62  ;;  %v8989_v62 = vld [vmem:[#allocation7 + $0x100] sm:$0xff]   ;;  %vm10443_vm8 = vmmov %vm10441_vm3  ;;  %v3571_v8 = vrot.slane %v10452_v56, 7 }
 0x254   : > { %6268 = vmatpush3.bf16.msra.mxu1 %v8846_v0  ;;  %6239 = vmatprep.mubr.msk.bf16.mxu1 %vm10415_vm7, %v3650_v33  ;;  %v10422_v0 = vunpack.c.l.bf16 %v8581_v49  ;;  %vm10446_vm7 = vmmov %vm10440_vm1 }
 0x255   : > { %6269 = vmatprep.subr.bf16.mxu1 %v6819_v26 }
 0x256   : > { %v3562_v58 = vrot.slane %v10422_v0, 7  ;;  %v3654_v0 = vpack.c.bf16 %v3602_v42, %v3628_v2 }
 0x258   : > { %6270 = vmatpush3.bf16.msra.mxu1 %v6819_v26  ;;  %v3605_v14 = vsel %vm10428_vm14, %v3561_v59, %v3562_v58  ;;  %v3604_v40 = vsel %vm10432_vm13, %v3562_v58, %v3563_v27  ;;  %v10433_v26 = vld [vmem:[#allocation34_spill] sm:$0xff]  ;;  %v10437_v59 = vunpack.c.l.bf16 %v8593_v32  ;;  %v10445_v27 = vunpack.c.h.bf16 %v8595_v22  ;;  %vm10456_vm14 = vmmov %vm10440_vm1 }
 0x259   : > { %6271 = vmatprep.subr.bf16.mxu1 %v6820_v52  ;;  %vm10434_vm5 = vnez %v10433_v26  ;;  %vm10460_vm13 = vmmov %vm10440_vm1 }
 0x25a   : > { %v3626_v33 = vsel %vm10434_vm5, %v3605_v14, 0.0  ;;  %v3566_v17 = vrot.slane %v10437_v59, 7  ;;  %v3569_v12 = vrot.slane %v10445_v27, 7  ;;  %vm10462_vm5 = vnez %v10461_v11 }
 0x25b   : > { %6240 = vmatmul.mubr.msk.bf16.gmra.mrb[28].mxu1 %vm10427_vm9, %v3651_v10  ;;  %v3653_v43 = vpack.c.bf16 %v3604_v40, %v3626_v33  ;;  %vm10455_vm9 = vmmov %vm10441_vm3 }
 0x25c   : > { %6243 = vmatprep.mubr.msk.bf16.mxu1 %vm10429_vm12, %v3652_v51  ;;  %6272 = vmatpush3.bf16.msra.mxu1 %v6820_v52  ;;  %v10438_v52 = vunpack.c.h.bf16 %v8593_v32  ;;  %v3601_v58 = vsel %vm10442_vm4, %v3565_v46, %v3566_v17  ;;  %v10451_v51 = vunpack.c.l.bf16 %v8604_v23  ;;  %v10453_v46 = vunpack.c.l.bf16 %v8612_v18  ;;  %vm10457_vm12 = vmmov %vm10441_vm3 }
 0x25d   : > { %6273 = vmatprep.subr.bf16.mxu1 %v6821_v20  ;;  %v3630_v15 = vsel %vm10448_vm6, %v3601_v58, 0.0  ;;  %v3598_v33 = vsel %vm10454_vm2, %v3568_v38, %v3569_v12  ;;  %vm10468_vm4 = vmmov %vm10440_vm1 }
 0x25e   : > { %v3567_v44 = vrot.slane %v10438_v52, 7  ;;  %v3570_v14 = vrot.slane %v10451_v51, 7  ;;  %v3572_v40 = vrot.slane %v10453_v46, 7  ;;  %v10473_v46 = vld [vmem:[#allocation59_spill] sm:$0xff]  ;;  %vm10479_vm2 = vmmov %vm10440_vm1 }
 0x25f   : > { %vm10474_vm6 = vnez %v10473_v46 }
 0x260   : > { %6274 = vmatpush3.bf16.msra.mxu1 %v6821_v20  ;;  %v3599_v53 = vsel %vm10444_vm10, %v3567_v44, %v3568_v38  ;;  %v3600_v10 = vsel %vm10446_vm7, %v3566_v17, %v3567_v44  ;;  %v3597_v2 = vsel %vm10456_vm14, %v3569_v12, %v3570_v14  ;;  %v3595_v59 = vsel %vm10458_vm15, %v3571_v8, %v3572_v40  ;;  %vm10470_vm10 = vmmov %vm10440_vm1 }
 0x261   : > { %6307 = vmatprep.subr.bf16.mxu1 %v8989_v62  ;;  %v3632_v20 = vsel %vm10450_vm0, %v3599_v53, 0.0  ;;  %v3655_v26 = vpack.c.bf16 %v3600_v10, %v3630_v15  ;;  %v10459_v17 = vunpack.c.h.bf16 %v8612_v18  ;;  %v3596_v44 = vsel %vm10460_vm13, %v3570_v14, %v3571_v8  ;;  %vm10472_vm7 = vmmov %vm10440_vm1 }
 0x262   : > { %v3656_v48 = vpack.c.bf16 %v3598_v33, %v3632_v20  ;;  %v3634_v38 = vsel %vm10462_vm5, %v3597_v2, 0.0  ;;  %v10466_v53 = vunpack.c.h.bf16 %v8614_v1  ;;  %v10467_v12 = vunpack.c.l.bf16 %v8627_v50  ;;  %vm10481_vm14 = vmmov %vm10440_vm1 }
 0x263   : > { %6244 = vmatmul.mubr.msk.bf16.gmra.mrb[0].mxu1 %vm10441_vm3, %v3653_v43  ;;  %v3573_v52 = vrot.slane %v10459_v17, 7  ;;  %v10463_v43 = vld [vmem:[#allocation56_spill] sm:$0xff]  ;;  %v3657_v37 = vpack.c.bf16 %v3596_v44, %v3634_v38  ;;  %v10471_v14 = vunpack.c.h.bf16 %v8627_v50  ;;  %v10477_v2 = vunpack.c.h.bf16 %v8652_v47  ;;  %vm10483_vm15 = vmmov %vm10440_vm1 }
 0x264   : > { %6247 = vmatprep.mubr.msk.bf16.mxu1 %vm10443_vm8, %v3654_v0  ;;  %vm10464_vm11 = vnez %v10463_v43  ;;  %v10465_v0 = vunpack.c.l.bf16 %v8614_v1  ;;  %v3575_v27 = vrot.slane %v10466_v53, 7  ;;  %v3576_v10 = vrot.slane %v10467_v12, 7  ;;  %vm10469_vm8 = vmmov %vm10441_vm3  ;;  %v10486_v53 = vld [vmem:[#allocation71_spill] sm:$0xff]  ;;  %v10488_v12 = vld [vmem:[#allocation80_spill] sm:$0xff] }
 0x265   : > { %v3636_v42 = vsel %vm10464_vm11, %v3595_v59, 0.0  ;;  %v3594_v15 = vsel %vm10440_vm1, %v3572_v40, %v3573_v52  ;;  %v3577_v56 = vrot.slane %v10471_v14, 7  ;;  %v3579_v59 = vrot.slane %v10477_v2, 7  ;;  %vm10485_vm13 = vmmov %vm10440_vm1 }
 0x266   : > { %v3574_v58 = vrot.slane %v10465_v0, 7  ;;  %v3658_v5 = vpack.c.bf16 %v3594_v15, %v3636_v42  ;;  %v3591_v51 = vsel %vm10470_vm10, %v3575_v27, %v3576_v10  ;;  %v10478_v17 = vunpack.c.l.bf16 %v8669_v60  ;;  %vm10493_vm10 = vmmov %vm10440_vm1 }
 0x267   : > { %v3590_v11 = vsel %vm10479_vm2, %v3576_v10, %v3577_v56  ;;  %v10484_v42 = vunpack.c.h.bf16 %v8669_v60  ;;  %vm10487_vm5 = vnez %v10486_v53  ;;  %vm10489_vm11 = vnez %v10488_v12 }
 0x268   : > { %v3593_v20 = vsel %vm10468_vm4, %v3573_v52, %v3574_v58  ;;  %v3592_v8 = vsel %vm10472_vm7, %v3574_v58, %v3575_v27  ;;  %v3580_v52 = vrot.slane %v10478_v17, 7  ;;  %vm10491_vm4 = vmmov %vm10440_vm1 }
 0x269   : > { %v3638_v40 = vsel %vm10474_vm6, %v3593_v20, 0.0  ;;  %v3581_v0 = vrot.slane %v10484_v42, 7  ;;  %vm10496_vm6 = vmmov %vm10441_vm3  ;;  %v9234_v42 = vld [vmem:[%s9707_s4] ss:$0 sm:$0xff] }
 0x26a   : > { %v3659_v44 = vpack.c.bf16 %v3592_v8, %v3638_v40  ;;  %v10494_v8 = vld [vmem:[#allocation82_spill] sm:$0xff] }
 0x26b   : > { %6248 = vmatmul.mubr.msk.bf16.gmra.mrb[4].mxu1 %vm10455_vm9, %v3655_v26  ;;  %v10475_v26 = vld [vmem:[#allocation68_spill] sm:$0xff]  ;;  %vm10480_vm9 = vmmov %vm10441_vm3  ;;  %v3586_v20 = vsel %vm10440_vm1, %v3580_v52, %v3581_v0  ;;  %vm10495_vm7 = vnez %v10494_v8 }
 0x26c   : > { %6251 = vmatprep.mubr.msk.bf16.mxu1 %vm10457_vm12, %v3656_v48  ;;  %vm10476_vm0 = vnez %v10475_v26  ;;  %v3578_v48 = vrot.slane %v3546_v3, 7  ;;  %vm10482_vm12 = vmmov %vm10441_vm3  ;;  %v3587_v3 = vsel %vm10483_vm15, %v3579_v59, %v3580_v52  ;;  %v6823_v26 = vld [vmem:[#allocation7 + $0x108] sm:$0xff]  }
 0x26d   : > { %v3640_v33 = vsel %vm10476_vm0, %v3591_v51, 0.0  ;;  %v3644_v10 = vsel %vm10489_vm11, %v3587_v3, 0.0  ;;  %vm10497_vm0 = vmmov %vm10441_vm3 }
 0x26e   : > { %v3660_v38 = vpack.c.bf16 %v3590_v11, %v3640_v33  ;;  %v3589_v43 = vsel %vm10481_vm14, %v3577_v56, %v3578_v48  ;;  %v3588_v58 = vsel %vm10485_vm13, %v3578_v48, %v3579_v59  ;;  %v3662_v51 = vpack.c.bf16 %v3586_v20, %v3644_v10  ;;  %vm10498_vm2 = vmmov %vm10497_vm0  ;;  %v6825_v33 = vld [vmem:[#allocation7 + $0x118] sm:$0xff]  }
 0x26f   : > { %v3642_v27 = vsel %vm10487_vm5, %v3589_v43, 0.0  ;;  %vm10500_vm14 = vmmov %vm10497_vm0  ;;  %v6829_v43 = vld [vmem:[%s9708_s5 + $0x18] sm:$0xff]  }
 0x270   : > { %vm10502_vm15 = vmmov %vm10497_vm0 }
 0x271   : > { %vm10503_vm13 = vmmov %vm10497_vm0 }
 0x272   : > { %vm10504_vm5 = vmmov %vm10497_vm0 }
 0x273   : > { %6252 = vmatmul.mubr.msk.bf16.gmra.mrb[8].mxu1 %vm10441_vm3, %v3657_v37  ;;  %v10490_v37 = vunpack.c.l.bf16 %v8548_v31  ;;  %vm10505_vm11 = vmmov %vm10497_vm0 }
 0x274   : > { %6255 = vmatprep.mubr.msk.bf16.mxu1 %vm10469_vm8, %v3658_v5  ;;  %v3661_v5 = vpack.c.bf16 %v3588_v58, %v3642_v27  ;;  %vm10492_vm8 = vmmov %vm10441_vm3 }
 0x275   : > { %v3582_v15 = vrot.slane %v10490_v37, 7  ;;  %vm10506_vm1 = vmmov %vm10497_vm0 }
 0x277   : > { %v3585_v14 = vsel %vm10491_vm4, %v3581_v0, %v3582_v15  ;;  %v3584_v56 = vsel %vm10493_vm10, %v3582_v15, %v8905_v41  ;;  %v6824_v41 = vld [vmem:[#allocation7 + $0x110] sm:$0xff]   ;;  %vm10508_vm4 = vmmov %vm10497_vm0 }
 0x278   : > { %v3646_v46 = vsel %vm10495_vm7, %v3585_v14, 0.0  ;;  %vm10510_vm10 = vmmov %vm10497_vm0 }
 0x279   : > { %v3663_v40 = vpack.c.bf16 %v3584_v56, %v3646_v46  ;;  %vm10511_vm7 = vmmov %vm10497_vm0 }
 0x27b   : > { %6256 = vmatmul.mubr.msk.bf16.gmra.mrb[12].mxu1 %vm10480_vm9, %v3659_v44  ;;  %vm10499_vm9 = vmmov %vm10497_vm0 }
 0x27c   : > { %6259 = vmatprep.mubr.msk.bf16.mxu1 %vm10482_vm12, %v3660_v38  ;;  %vm10501_vm12 = vmmov %vm10497_vm0  ;;  %v6828_v38 = vld [vmem:[%s9708_s5 + $0x10] sm:$0xff]  }
 0x283   : > { %6260 = vmatmul.mubr.msk.bf16.gmra.mrb[16].mxu1 %vm10441_vm3, %v3661_v5  ;;  %vm10507_vm3 = vmmov %vm10497_vm0 }
 0x284   : > { %6263 = vmatprep.mubr.msk.bf16.mxu1 %vm10492_vm8, %v3662_v51  ;;  %vm10509_vm8 = vmmov %vm10497_vm0 }
 0x28b   : > { %6264 = vmatmul.mubr.msk.bf16.gmra.mrb[20].mxu1 %vm10496_vm6, %v3663_v40  ;;  %vm10512_vm6 = vmmov %vm10497_vm0 }
 0x28c   : > { %6275 = vmatprep.mubr.msk.bf16.mxu1 %vm10497_vm0, %v10377_v61  ;;  %v6826_v61 = vld [vmem:[%s9708_s5] sm:$0xff]  }
 0x28d   : > { %6347 = vmatprep.subr.bf16.mxu0 %v6826_v61 }
 0x28e   : > { %6348 = vmatpush3.bf16.msra.mxu0 %v6826_v61 }
 0x293   : > { %6276 = vmatmul.mubr.msk.bf16.vlgmr.msra.gmra.mrb[24].mxu1 %vm10498_vm2, %v10392_v24  ;;  %vm10513_vm2 = vmmov %vm10497_vm0 }
 0x294   : > { %6308 = vmatpush3.bf16.msra.mxu1 %v8989_v62  ;;  %6279 = vmatprep.mubr.msk.bf16.mxu1 %vm10499_vm9, %v10399_v36  ;;  %vm10514_vm9 = vmmov %vm10497_vm0 }
 0x295   : > { %6309 = vmatprep.subr.bf16.mxu1 %v6823_v26 }
 0x298   : > { %6310 = vmatpush3.bf16.msra.mxu1 %v6823_v26 }
 0x299   : > { %6311 = vmatprep.subr.bf16.mxu1 %v6824_v41 }
 0x29b   : > { %6280 = vmatmul.mubr.msk.bf16.gmra.mrb[28].mxu1 %vm10500_vm14, %v10410_v34  ;;  %vm10516_vm14 = vcmp.lt.s32.totalorder %v7272_v9, 7 }
 0x29c   : > { %6283 = vmatprep.mubr.msk.bf16.mxu1 %vm10501_vm12, %v8606_v45  ;;  %6312 = vmatpush3.bf16.msra.mxu1 %v6824_v41 }
 0x29d   : > { %6313 = vmatprep.subr.bf16.mxu1 %v6825_v33 }
 0x2a0   : > { %6314 = vmatpush3.bf16.msra.mxu1 %v6825_v33 }
 0x2a3   : > { %6284 = vmatmul.mubr.msk.bf16.gmra.mrb[0].mxu1 %vm10502_vm15, %v8581_v49  ;;  %v10515_v49 = vld [vmem:[#allocation32_spill] sm:$0xff]  ;;  %vm10520_vm15 = vmmov %vm10497_vm0 }
 0x2a4   : > { %6287 = vmatprep.mubr.msk.bf16.mxu1 %vm10503_vm13, %v8583_v63  ;;  %v10518_v63 = vld [vmem:[#allocation92_spill] sm:$0xff]  ;;  %vm10521_vm13 = vmmov %vm10497_vm0 }
 0x2a5   : > { %vm10519_vm12 = vnez %v10518_v63 }
 0x2ab   : > { %6288 = vmatmul.mubr.msk.bf16.gmra.mrb[4].mxu1 %vm10504_vm5, %v8593_v32  ;;  %vm10522_vm5 = vmmov %vm10497_vm0 }
 0x2ac   : > { %6291 = vmatprep.mubr.msk.bf16.mxu1 %vm10505_vm11, %v8595_v22  ;;  %vm10523_vm11 = vmmov %vm10497_vm0 }
 0x2b3   : > { %6292 = vmatmul.mubr.msk.bf16.gmra.mrb[8].mxu1 %vm10506_vm1, %v8604_v23  ;;  %vm10524_vm1 = vmmov %vm10497_vm0 }
 0x2b4   : > { %6295 = vmatprep.mubr.msk.bf16.mxu1 %vm10507_vm3, %v8612_v18  ;;  %vm10525_vm3 = vmmov %vm10497_vm0 }
 0x2bb   : > { %6296 = vmatmul.mubr.msk.bf16.gmra.mrb[12].mxu1 %vm10508_vm4, %v8614_v1  ;;  %v10517_v1 = vld [vmem:[#allocation33_spill] sm:$0xff]  ;;  %vm10526_vm4 = vmmov %vm10497_vm0 }
 0x2bc   : > { %6299 = vmatprep.mubr.msk.bf16.mxu1 %vm10509_vm8, %v8627_v50  ;;  %v4268_v50 = vsel %vm10516_vm14, %v8659_v21, %v10515_v49  ;;  %vm10527_vm8 = vmmov %vm10497_vm0 }
 0x2bd   : > { %vm10533_vm14 = vmmov %vm10497_vm0 }
 0x2c3   : > { %6300 = vmatmul.mubr.msk.bf16.gmra.mrb[16].mxu1 %vm10510_vm10, %v8652_v47  ;;  %vm10528_vm10 = vmmov %vm10497_vm0 }
 0x2c4   : > { %6303 = vmatprep.mubr.msk.bf16.mxu1 %vm10511_vm7, %v8669_v60  ;;  %v4283_v60 = vsel %vm10519_vm12, %v10517_v1, 0.0  ;;  %vm10529_vm7 = vmmov %vm10497_vm0 }
 0x2c5   : > { %v4311_v22 = vpack.c.bf16 %v4283_v60, %v4268_v50  ;;  %vm10534_vm12 = vmmov %vm10497_vm0 }
 0x2cb   : > { %6304 = vmatmul.mubr.msk.bf16.gmra.mrb[20].mxu1 %vm10512_vm6, %v8548_v31  ;;  %vm10530_vm6 = vmmov %vm10497_vm0 }
 0x2cc   : > { %6315 = vmatprep.mubr.msk.bf16.mxu1 %vm10497_vm0, %v8679_v57 }
 0x2d3   : > { %6316 = vmatmul.mubr.msk.bf16.vlgmr.msra.gmra.mrb[24].mxu1 %vm10513_vm2, %v8681_v28  ;;  %vm10531_vm2 = vmmov %vm10497_vm0 }
 0x2d4   : > { %6319 = vmatprep.mubr.msk.bf16.mxu1 %vm10514_vm9, %v8688_v16  ;;  %vm10532_vm9 = vmmov %vm10497_vm0 }
 0x2db   : > { %6320 = vmatmul.mubr.msk.bf16.gmra.mrb[28].mxu1 %vm10520_vm15, %v4311_v22  ;;  %vm10535_vm15 = vmmov %vm10497_vm0 }
 0x2dc   : > { %6323 = vmatprep.mubr.msk.bf16.mxu1 %vm10521_vm13, %v8723_v35  ;;  %vm10536_vm13 = vmmov %vm10497_vm0 }
 0x2e3   : > { %6324 = vmatmul.mubr.msk.bf16.gmra.mrb[0].mxu1 %vm10522_vm5, %v8731_v54  ;;  %vm10537_vm5 = vmmov %vm10497_vm0 }
 0x2e4   : > { %6327 = vmatprep.mubr.msk.bf16.mxu1 %vm10523_vm11, %v8739_v13  ;;  %vm10538_vm11 = vmmov %vm10497_vm0 }
 0x2e5   : > { %v9156_v57 = vpop.f32.mrb[40].mxu0 }
 0x2e6   : > { %v9158_v31 = vpop.f32.mrb[41].mxu0 }
 0x2e7   : > { %v9160_v18 = vpop.f32.mrb[42].mxu0 }
 0x2e8   : > { %v9164_v32 = vpop.f32.mrb[43].mxu0 }
 0x2eb   : > { %6328 = vmatmul.mubr.msk.bf16.gmra.mrb[4].mxu1 %vm10524_vm1, %v8768_v30  ;;  %vm10539_vm1 = vmmov %vm10497_vm0 }
 0x2ec   : > { %6331 = vmatprep.mubr.msk.bf16.mxu1 %vm10525_vm3, %v8778_v6  ;;  %vm10540_vm3 = vmmov %vm10497_vm0 }
 0x2f1   : > { %v9168_v23 = vpop.f32.mrb[44].mxu0 }
 0x2f2   : > { %v9170_v45 = vpop.f32.mrb[45].mxu0 }
 0x2f3   : > { %v9172_v21 = vpop.f32.mrb[46].mxu0  ;;  %6332 = vmatmul.mubr.msk.bf16.gmra.mrb[8].mxu1 %vm10526_vm4, %v8788_v55  ;;  %vm10541_vm4 = vmmov %vm10497_vm0 }
 0x2f4   : > { %v9176_v47 = vpop.f32.mrb[47].mxu0  ;;  %6335 = vmatprep.mubr.msk.bf16.mxu1 %vm10527_vm8, %v8796_v19  ;;  %vm10542_vm8 = vmmov %vm10497_vm0 }
 0x2f9   : > { %v9180_v28 = vpop.f32.mrb[48].mxu0 }
 0x2fa   : > { %v9182_v16 = vpop.f32.mrb[49].mxu0 }
 0x2fb   : > { %v9184_v35 = vpop.f32.mrb[50].mxu0  ;;  %6336 = vmatmul.mubr.msk.bf16.gmra.mrb[12].mxu1 %vm10528_vm10, %v8820_v29  ;;  %vm10543_vm10 = vmmov %vm10497_vm0 }
 0x2fc   : > { %v9188_v54 = vpop.f32.mrb[51].mxu0  ;;  %6339 = vmatprep.mubr.msk.bf16.mxu1 %vm10529_vm7, %v8830_v4  ;;  %vm10544_vm7 = vmmov %vm10497_vm0 }
 0x301   : > { %v9192_v13 = vpop.f32.mrb[52].mxu0 }
 0x302   : > { %v9194_v30 = vpop.f32.mrb[53].mxu0 }
 0x303   : > { %v9196_v6 = vpop.f32.mrb[54].mxu0  ;;  %6340 = vmatmul.mubr.msk.bf16.gmra.mrb[16].mxu1 %vm10530_vm6, %v8840_v39  ;;  %vm10545_vm6 = vmmov %vm10497_vm0 }
 0x304   : > { %v9200_v55 = vpop.f32.mrb[55].mxu0  ;;  %6343 = vmatprep.mubr.msk.bf16.mxu1 %vm10497_vm0, %v8848_v7 }
 0x309   : > { %v9204_v19 = vpop.f32.mrb[56].mxu0 }
 0x30a   : > { %v9206_v29 = vpop.f32.mrb[57].mxu0 }
 0x30b   : > { %v9208_v24 = vpop.f32.mrb[58].mxu0  ;;  %6344 = vmatmul.mubr.msk.bf16.gmra.mrb[20].mxu1 %vm10531_vm2, %v8859_v25  ;;  %v6827_v25 = vld [vmem:[%s9708_s5 + $0x8] sm:$0xff]   ;;  %vm10546_vm2 = vmmov %vm10497_vm0 }
 0x30c   : > { %v9212_v4 = vpop.f32.mrb[59].mxu0  ;;  %6349 = vmatprep.subr.bf16.mxu0 %v6827_v25 }
 0x30d   : > { %6350 = vmatpush3.bf16.msra.mxu0 %v6827_v25 }
 0x30e   : > { %6351 = vmatprep.subr.bf16.mxu0 %v6828_v38 }
 0x311   : > { %v9214_v36 = vpop.f32.mrb[60].mxu0  ;;  %6352 = vmatpush3.bf16.msra.mxu0 %v6828_v38 }
 0x312   : > { %v9216_v34 = vpop.f32.mrb[61].mxu0  ;;  %6353 = vmatprep.subr.bf16.mxu0 %v6829_v43 }
 0x313   : > { %v9218_v39 = vpop.f32.mrb[62].mxu0 }
 0x314   : > { %v9220_v62 = vpop.f32.mrb[63].mxu0 }
 0x315   : > { %6354 = vmatpush3.bf16.msra.mxu0 %v6829_v43 }
 0x319   : > { %v6117_v7 = vpop.f32.mrb[32].mxu0 }
 0x31a   : > { %v2685_v48 = vpop.f32.mrb[33].mxu0 }
 0x31b   : > { %v6118_v2 = vpop.f32.mrb[34].mxu0 }
 0x31c   : > { %v2688_v59 = vpop.f32.mrb[35].mxu0 }
 0x321   : > { %v6121_v17 = vpop.f32.mrb[36].mxu0 }
 0x322   : > { %v2701_v52 = vpop.f32.mrb[37].mxu0 }
 0x323   : > { %v6122_v44 = vpop.f32.mrb[38].mxu0 }
 0x324   : > { %v2704_v11 = vpop.f32.mrb[39].mxu0 }
 0x3a6   : > { %v6317_v3 = vpop.f32.mrb[24].mxu1 }
 0x3a7   : > { %v6459_v0 = vadd.f32 %v6317_v3, %v6117_v7  ;;  %v4439_v58 = vpop.f32.mrb[25].mxu1 }
 0x3a8   : > { %v6460_v53 = vadd.f32 %v4439_v58, %v2685_v48  ;;  %v6318_v27 = vpop.f32.mrb[26].mxu1 }
 0x3a9   : > { %v4607_v12 = vadd.f32 %v6459_v0, %v9234_v42  ;;  %v6461_v10 = vadd.f32 %v6318_v27, %v6118_v2  ;;  %v4442_v37 = vpop.f32.mrb[27].mxu1 }
 0x3aa   : > { %v4605_v15 = vadd.f32 %v6460_v53, %v9234_v42  ;;  %v6462_v5 = vadd.f32 %v4442_v37, %v2688_v59 }
 0x3ab   : > { %v4608_v20 = vadd.f32 %v6461_v10, %v9234_v42  ;;  %v4639_v14 = vmax.f32 %v4607_v12, 0.0 }
 0x3ac   : > { %v4606_v51 = vadd.f32 %v6462_v5, %v9234_v42  ;;  %v4637_v8 = vmax.f32 %v4605_v15, 0.0 }
 0x3ad   : > { %v4640_v56 = vmax.f32 %v4608_v20, 0.0 }
 0x3ae   : > { %v4638_v46 = vmax.f32 %v4606_v51, 0.0  ;;  %v6321_v40 = vpop.f32.mrb[28].mxu1 }
 0x3af   : > { %v4670_v26 = vpack.c.bf16 %v4640_v56, %v4639_v14  ;;  %v6463_v41 = vadd.f32 %v6321_v40, %v6121_v17  ;;  %v4455_v33 = vpop.f32.mrb[29].mxu1 }
 0x3b0   : > { %v4669_v61 = vpack.c.bf16 %v4638_v46, %v4637_v8  ;;  %v6464_v49 = vadd.f32 %v4455_v33, %v2701_v52  ;;  %v6322_v50 = vpop.f32.mrb[30].mxu1 }
 0x3b1   : > { %v4611_v1 = vadd.f32 %v6463_v41, %v9234_v42  ;;  %v6465_v63 = vadd.f32 %v6322_v50, %v6122_v44  ;;  %v4458_v60 = vpop.f32.mrb[31].mxu1 }
 0x3b2   : > { %v4609_v22 = vadd.f32 %v6464_v49, %v9234_v42  ;;  %v6466_v7 = vadd.f32 %v4458_v60, %v2704_v11  ;;  %6355 = vmatprep.mubr.msk.bf16.mxu0 %vm10532_vm9, %v4669_v61  ;;  %vm6978_vm9 = vmmov 0  }
 0x3b3   : > { %v4612_v48 = vadd.f32 %v6465_v63, %v9234_v42  ;;  %6356 = vmatmul.mubr.msk.bf16.vlgmr.msra.gmra.mrb[64].mxu0 %vm10533_vm14, %v4670_v26  ;;  %v4643_v59 = vmax.f32 %v4611_v1, 0.0  ;;  %vm5092_vm14 = vcmask 64512  }
 0x3b4   : > { %v4610_v2 = vadd.f32 %v6466_v7, %v9234_v42  ;;  %v4641_v25 = vmax.f32 %v4609_v22, 0.0 }
 0x3b5   : > { %v4644_v17 = vmax.f32 %v4612_v48, 0.0 }
 0x3b6   : > { %v4642_v52 = vmax.f32 %v4610_v2, 0.0  ;;  %v6325_v38 = vpop.f32.mrb[0].mxu1 }
 0x3b7   : > { %v4672_v43 = vpack.c.bf16 %v4644_v17, %v4643_v59  ;;  %v6467_v44 = vadd.f32 %v6325_v38, %v9156_v57  ;;  %v4471_v3 = vpop.f32.mrb[1].mxu1 }
 0x3b8   : > { %v4671_v0 = vpack.c.bf16 %v4642_v52, %v4641_v25  ;;  %v6468_v11 = vadd.f32 %v4471_v3, %v9158_v31  ;;  %v6326_v58 = vpop.f32.mrb[2].mxu1 }
 0x3b9   : > { %v4615_v53 = vadd.f32 %v6467_v44, %v9234_v42  ;;  %v6469_v27 = vadd.f32 %v6326_v58, %v9160_v18  ;;  %v4474_v12 = vpop.f32.mrb[3].mxu1 }
 0x3ba   : > { %v4613_v10 = vadd.f32 %v6468_v11, %v9234_v42  ;;  %v6470_v37 = vadd.f32 %v4474_v12, %v9164_v32  ;;  %6359 = vmatprep.mubr.msk.bf16.mxu0 %vm10534_vm12, %v4671_v0 }
 0x3bb   : > { %v4616_v15 = vadd.f32 %v6469_v27, %v9234_v42  ;;  %6360 = vmatmul.mubr.msk.bf16.gmra.mrb[68].mxu0 %vm10535_vm15, %v4672_v43  ;;  %v4647_v5 = vmax.f32 %v4615_v53, 0.0 }
 0x3bc   : > { %v4614_v57 = vadd.f32 %v6470_v37, %v9234_v42  ;;  %v4645_v20 = vmax.f32 %v4613_v10, 0.0 }
 0x3bd   : > { %v4648_v31 = vmax.f32 %v4616_v15, 0.0 }
 0x3be   : > { %v4646_v51 = vmax.f32 %v4614_v57, 0.0  ;;  %v6329_v14 = vpop.f32.mrb[4].mxu1 }
 0x3bf   : > { %v4674_v56 = vpack.c.bf16 %v4648_v31, %v4647_v5  ;;  %v6471_v18 = vadd.f32 %v6329_v14, %v9168_v23  ;;  %v4487_v8 = vpop.f32.mrb[5].mxu1 }
 0x3c0   : > { %v4673_v46 = vpack.c.bf16 %v4646_v51, %v4645_v20  ;;  %v6472_v32 = vadd.f32 %v4487_v8, %v9170_v45  ;;  %v6330_v40 = vpop.f32.mrb[6].mxu1 }
 0x3c1   : > { %v4619_v26 = vadd.f32 %v6471_v18, %v9234_v42  ;;  %v6473_v41 = vadd.f32 %v6330_v40, %v9172_v21  ;;  %v4490_v33 = vpop.f32.mrb[7].mxu1 }
 0x3c2   : > { %v4617_v61 = vadd.f32 %v6472_v32, %v9234_v42  ;;  %v6474_v49 = vadd.f32 %v4490_v33, %v9176_v47  ;;  %6363 = vmatprep.mubr.msk.bf16.mxu0 %vm10536_vm13, %v4673_v46 }
 0x3c3   : > { %v4620_v50 = vadd.f32 %v6473_v41, %v9234_v42  ;;  %6364 = vmatmul.mubr.msk.bf16.gmra.mrb[72].mxu0 %vm10537_vm5, %v4674_v56  ;;  %v4651_v1 = vmax.f32 %v4619_v26, 0.0 }
 0x3c4   : > { %v4618_v23 = vadd.f32 %v6474_v49, %v9234_v42  ;;  %v4649_v63 = vmax.f32 %v4617_v61, 0.0 }
 0x3c5   : > { %v4652_v45 = vmax.f32 %v4620_v50, 0.0 }
 0x3c6   : > { %v4650_v60 = vmax.f32 %v4618_v23, 0.0  ;;  %v6333_v22 = vpop.f32.mrb[8].mxu1 }
 0x3c7   : > { %v4676_v7 = vpack.c.bf16 %v4652_v45, %v4651_v1  ;;  %v6475_v21 = vadd.f32 %v6333_v22, %v9180_v28  ;;  %v4503_v48 = vpop.f32.mrb[9].mxu1 }
 0x3c8   : > { %v4675_v2 = vpack.c.bf16 %v4650_v60, %v4649_v63  ;;  %v6476_v47 = vadd.f32 %v4503_v48, %v9182_v16  ;;  %v6334_v59 = vpop.f32.mrb[10].mxu1 }
 0x3c9   : > { %v4623_v17 = vadd.f32 %v6475_v21, %v9234_v42  ;;  %v6477_v25 = vadd.f32 %v6334_v59, %v9184_v35  ;;  %v4506_v52 = vpop.f32.mrb[11].mxu1 }
 0x3ca   : > { %v4621_v38 = vadd.f32 %v6476_v47, %v9234_v42  ;;  %v6478_v43 = vadd.f32 %v4506_v52, %v9188_v54  ;;  %6367 = vmatprep.mubr.msk.bf16.mxu0 %vm10538_vm11, %v4675_v2 }
 0x3cb   : > { %v4624_v44 = vadd.f32 %v6477_v25, %v9234_v42  ;;  %6368 = vmatmul.mubr.msk.bf16.gmra.mrb[76].mxu0 %vm10539_vm1, %v4676_v7  ;;  %v4655_v3 = vmax.f32 %v4623_v17, 0.0 }
 0x3cc   : > { %v4622_v28 = vadd.f32 %v6478_v43, %v9234_v42  ;;  %v4653_v0 = vmax.f32 %v4621_v38, 0.0 }
 0x3cd   : > { %v4656_v16 = vmax.f32 %v4624_v44, 0.0 }
 0x3ce   : > { %v4654_v11 = vmax.f32 %v4622_v28, 0.0  ;;  %v6337_v58 = vpop.f32.mrb[12].mxu1 }
 0x3cf   : > { %v4678_v53 = vpack.c.bf16 %v4656_v16, %v4655_v3  ;;  %v6479_v35 = vadd.f32 %v6337_v58, %v9192_v13  ;;  %v4519_v27 = vpop.f32.mrb[13].mxu1  ;;  %v5004_v16 = vld [vmem:[%s9710_s7 + $0x10] sm:$0xff]  ;;  %v5006_v58 = vld [vmem:[%s9710_s7 + $0x20] sm:$0xff] }
 0x3d0   : > { %v4677_v12 = vpack.c.bf16 %v4654_v11, %v4653_v0  ;;  %v6480_v54 = vadd.f32 %v4519_v27, %v9194_v30  ;;  %v6338_v10 = vpop.f32.mrb[14].mxu1  ;;  %v5005_v0 = vld [vmem:[%s9710_s7 + $0x18] sm:$0xff]  ;;  %v5008_v27 = vld [vmem:[%s9710_s7 + $0x30] sm:$0xff] }
 0x3d1   : > { %v4627_v37 = vadd.f32 %v6479_v35, %v9234_v42  ;;  %v6481_v15 = vadd.f32 %v6338_v10, %v9196_v6  ;;  %v4522_v57 = vpop.f32.mrb[15].mxu1  ;;  %v6431_v11 = vpack.c.bf16 %v5005_v0, %v5004_v16  ;;  %v5010_v10 = vld [vmem:[%s9710_s7 + $0x40] sm:$0xff] }
 0x3d2   : > { %v4625_v5 = vadd.f32 %v6480_v54, %v9234_v42  ;;  %v6482_v31 = vadd.f32 %v4522_v57, %v9200_v55  ;;  %6371 = vmatprep.mubr.msk.bf16.mxu0 %vm10540_vm3, %v4677_v12  ;;  %v5009_v12 = vld [vmem:[%s9710_s7 + $0x38] sm:$0xff]  ;;  %v5012_v57 = vld [vmem:[%s9710_s7 + $0x50] sm:$0xff] }
 0x3d3   : > { %v4628_v20 = vadd.f32 %v6481_v15, %v9234_v42  ;;  %6372 = vmatmul.mubr.msk.bf16.gmra.mrb[80].mxu0 %vm10541_vm4, %v4678_v53  ;;  %v4659_v51 = vmax.f32 %v4627_v37, 0.0  ;;  %v5007_v53 = vld [vmem:[%s9710_s7 + $0x28] sm:$0xff]  ;;  %v6437_v54 = vpack.c.bf16 %v5009_v12, %v5008_v27 }
 0x3d4   : > { %v4626_v13 = vadd.f32 %v6482_v31, %v9234_v42  ;;  %v4657_v14 = vmax.f32 %v4625_v5, 0.0  ;;  %v6434_v35 = vpack.c.bf16 %v5007_v53, %v5006_v58  ;;  %v5011_v37 = vld [vmem:[%s9710_s7 + $0x48] sm:$0xff]  ;;  %v5013_v5 = vld [vmem:[%s9710_s7 + $0x58] sm:$0xff] }
 0x3d5   : > { %v4660_v30 = vmax.f32 %v4628_v20, 0.0  ;;  %v6440_v15 = vpack.c.bf16 %v5011_v37, %v5010_v10  ;;  %v6443_v31 = vpack.c.bf16 %v5013_v5, %v5012_v57  ;;  %v5014_v20 = vld [vmem:[%s9710_s7 + $0x60] sm:$0xff] }
 0x3d6   : > { %v4658_v56 = vmax.f32 %v4626_v13, 0.0  ;;  %v6341_v18 = vpop.f32.mrb[16].mxu1  ;;  %v5015_v13 = vld [vmem:[%s9710_s7 + $0x68] sm:$0xff] }
 0x3d7   : > { %v4680_v8 = vpack.c.bf16 %v4660_v30, %v4659_v51  ;;  %v6483_v6 = vadd.f32 %v6341_v18, %v9204_v19  ;;  %v4535_v46 = vpop.f32.mrb[17].mxu1  ;;  %v6446_v51 = vpack.c.bf16 %v5015_v13, %v5014_v20  ;;  %v5016_v30 = vld [vmem:[%s9710_s7 + $0x70] sm:$0xff] }
 0x3d8   : > { %v4679_v32 = vpack.c.bf16 %v4658_v56, %v4657_v14  ;;  %v6484_v55 = vadd.f32 %v4535_v46, %v9206_v29  ;;  %v6342_v40 = vpop.f32.mrb[18].mxu1  ;;  %v5017_v14 = vld [vmem:[%s9710_s7 + $0x78] sm:$0xff]  ;;  %v6979_v56 = vmov 0.0  }
 0x3d9   : > { %v4631_v26 = vadd.f32 %v6483_v6, %v9234_v42  ;;  %v6485_v41 = vadd.f32 %v6342_v40, %v9208_v24  ;;  %v4538_v33 = vpop.f32.mrb[19].mxu1  ;;  %v6449_v18 = vpack.c.bf16 %v5017_v14, %v5016_v30  ;;  %v9362_v6 = vld [vmem:[%s9709_s6] ss:$0 sm:$0xff] }
 0x3da   : > { %v4629_v61 = vadd.f32 %v6484_v55, %v9234_v42  ;;  %v6486_v49 = vadd.f32 %v4538_v33, %v9212_v4  ;;  %6375 = vmatprep.mubr.msk.bf16.mxu0 %vm10542_vm8, %v4679_v32 }
 0x3db   : > { %v4632_v50 = vadd.f32 %v6485_v41, %v9234_v42  ;;  %6376 = vmatmul.mubr.msk.bf16.gmra.mrb[84].mxu0 %vm10543_vm10, %v4680_v8  ;;  %v4663_v23 = vmax.f32 %v4631_v26, 0.0 }
 0x3dc   : > { %v4630_v19 = vadd.f32 %v6486_v49, %v9234_v42  ;;  %v4661_v1 = vmax.f32 %v4629_v61, 0.0 }
 0x3dd   : > { %v4664_v29 = vmax.f32 %v4632_v50, 0.0 }
 0x3de   : > { %v4662_v45 = vmax.f32 %v4630_v19, 0.0  ;;  %v6345_v63 = vpop.f32.mrb[20].mxu1 }
 0x3df   : > { %v4682_v60 = vpack.c.bf16 %v4664_v29, %v4663_v23  ;;  %v6487_v24 = vadd.f32 %v6345_v63, %v9214_v36  ;;  %v4551_v22 = vpop.f32.mrb[21].mxu1 }
 0x3e0   : > { %v4681_v7 = vpack.c.bf16 %v4662_v45, %v4661_v1  ;;  %v6488_v4 = vadd.f32 %v4551_v22, %v9216_v34  ;;  %v6346_v21 = vpop.f32.mrb[22].mxu1 }
 0x3e1   : > { %v4635_v48 = vadd.f32 %v6487_v24, %v9234_v42  ;;  %v6489_v2 = vadd.f32 %v6346_v21, %v9218_v39  ;;  %v4554_v47 = vpop.f32.mrb[23].mxu1  ;;  %v6977_v39 = vmov 0.0|0.0  }
 0x3e2   : > { %v4633_v59 = vadd.f32 %v6488_v4, %v9234_v42  ;;  %v6490_v17 = vadd.f32 %v4554_v47, %v9220_v62  ;;  %6379 = vmatprep.mubr.msk.bf16.mxu0 %vm10544_vm7, %v4681_v7  ;;  %6427 = vmatprep.subr.bf16.mxu0 %v6977_v39  ;;  %v5002_v62 = vld [vmem:[%s9710_s7] sm:$0xff] }
 0x3e3   : > { %v4636_v25 = vadd.f32 %v6489_v2, %v9234_v42  ;;  %6380 = vmatmul.mubr.msk.bf16.gmra.mrb[88].mxu0 %vm10545_vm6, %v4682_v60  ;;  %v4667_v52 = vmax.f32 %v4635_v48, 0.0 }
 0x3e4   : > { %v4634_v36 = vadd.f32 %v6490_v17, %v9234_v42  ;;  %v4665_v38 = vmax.f32 %v4633_v59, 0.0  ;;  %v5003_v42 = vld [vmem:[%s9710_s7 + $0x8] sm:$0xff] }
 0x3e5   : > { %v4668_v34 = vmax.f32 %v4636_v25, 0.0  ;;  %v6428_v3 = vpack.c.bf16 %v5003_v42, %v5002_v62 }
 0x3e6   : > { %v4666_v43 = vmax.f32 %v4634_v36, 0.0 }
 0x3e7   : > { %v4684_v44 = vpack.c.bf16 %v4668_v34, %v4667_v52  ;;  %6429 = vmatpush3.bf16.msra.mxu0 %v6428_v3 }
 0x3e8   : > { %v4683_v28 = vpack.c.bf16 %v4666_v43, %v4665_v38  ;;  %6430 = vmatprep.subr.bf16.mxu0 %v6977_v39 }
 0x3ea   : > { %6383 = vmatprep.mubr.msk.bf16.mxu0 %vm10497_vm0, %v4683_v28 }
 0x3eb   : > { %6384 = vmatmul.mubr.msk.bf16.gmra.mrb[92].mxu0 %vm10546_vm2, %v4684_v44 }
 0x3ec   : > { %6432 = vmatpush3.bf16.msra.mxu0 %v6431_v11  ;;  %6419 = vmatprep.mubr.msk.f32.mxu0 %vm6978_vm9, %v6979_v56 }
 0x3ed   : > { %6433 = vmatprep.subr.bf16.mxu0 %v6977_v39 }
 0x3f0   : > { %6435 = vmatpush3.bf16.msra.mxu0 %v6434_v35 }
 0x3f1   : > { %6436 = vmatprep.subr.bf16.mxu0 %v6977_v39 }
 0x3f4   : > { %6438 = vmatpush3.bf16.msra.mxu0 %v6437_v54 }
 0x3f5   : > { %6439 = vmatprep.subr.bf16.mxu0 %v6977_v39 }
 0x3f8   : > { %6441 = vmatpush3.bf16.msra.mxu0 %v6440_v15 }
 0x3f9   : > { %6442 = vmatprep.subr.bf16.mxu0 %v6977_v39 }
 0x3fc   : > { %6444 = vmatpush3.bf16.msra.mxu0 %v6443_v31 }
 0x3fd   : > { %6445 = vmatprep.subr.bf16.mxu0 %v6977_v39 }
 0x400   : > { %6447 = vmatpush3.bf16.msra.mxu0 %v6446_v51 }
 0x401   : > { %6448 = vmatprep.subr.bf16.mxu0 %v6977_v39 }
 0x404   : > { %6450 = vmatpush3.bf16.msra.mxu0 %v6449_v18 }
 0x405   : > { %6422 = vmatprep.subr.mxu0 %v6979_v56 }
 0x486   : > { %v6357_v8 = vpop.f32.mrb[64].mxu0 }
 0x487   : > { %v4806_v46 = vpop.f32.mrb[65].mxu0  ;;  %v9371_v41 = vadd.f32 %v6357_v8, %v9362_v6 }
 0x488   : > { %v6358_v32 = vpop.f32.mrb[66].mxu0  ;;  %v9365_v40 = vadd.f32 %v9362_v6, %v4806_v46 }
 0x489   : > { %v4809_v55 = vpop.f32.mrb[67].mxu0  ;;  %v9376_v61 = vadd.f32 %v6358_v32, %v9362_v6 }
 0x48a   : > { %v9368_v26 = vadd.f32 %v9362_v6, %v4809_v55 }
 0x48c   : > { %v4965_v33 = vadd.f32 %v9368_v26, %v9365_v40 }
 0x48e   : > { %v4966_v49 = vadd.f32 %v4965_v33, %v9371_v41  ;;  %v6361_v50 = vpop.f32.mrb[68].mxu0 }
 0x48f   : > { %v4822_v19 = vpop.f32.mrb[69].mxu0  ;;  %v9388_v24 = vadd.f32 %v6361_v50, %v9362_v6 }
 0x490   : > { %v9380_v23 = vadd.f32 %v9362_v6, %v4822_v19  ;;  %v4967_v29 = vadd.f32 %v4966_v49, %v9376_v61  ;;  %v6362_v1 = vpop.f32.mrb[70].mxu0 }
 0x491   : > { %v4825_v45 = vpop.f32.mrb[71].mxu0  ;;  %v9392_v7 = vadd.f32 %v6362_v1, %v9362_v6 }
 0x492   : > { %v4968_v63 = vadd.f32 %v4967_v29, %v9380_v23  ;;  %v9385_v60 = vadd.f32 %v9362_v6, %v4825_v45 }
 0x494   : > { %v4969_v22 = vadd.f32 %v4968_v63, %v9385_v60 }
 0x496   : > { %v4970_v4 = vadd.f32 %v4969_v22, %v9388_v24  ;;  %v6365_v21 = vpop.f32.mrb[72].mxu0 }
 0x497   : > { %v4838_v48 = vpop.f32.mrb[73].mxu0  ;;  %v9404_v52 = vadd.f32 %v6365_v21, %v9362_v6 }
 0x498   : > { %v9396_v2 = vadd.f32 %v9362_v6, %v4838_v48  ;;  %v4971_v47 = vadd.f32 %v4970_v4, %v9392_v7  ;;  %v6366_v59 = vpop.f32.mrb[74].mxu0 }
 0x499   : > { %v4841_v17 = vpop.f32.mrb[75].mxu0  ;;  %v9408_v38 = vadd.f32 %v6366_v59, %v9362_v6 }
 0x49a   : > { %v4972_v25 = vadd.f32 %v4971_v47, %v9396_v2  ;;  %v9401_v36 = vadd.f32 %v9362_v6, %v4841_v17 }
 0x49c   : > { %v4973_v34 = vadd.f32 %v4972_v25, %v9401_v36 }
 0x49e   : > { %v4974_v43 = vadd.f32 %v4973_v34, %v9404_v52  ;;  %v6369_v44 = vpop.f32.mrb[76].mxu0 }
 0x49f   : > { %v4854_v28 = vpop.f32.mrb[77].mxu0  ;;  %v9420_v11 = vadd.f32 %v6369_v44, %v9362_v6 }
 0x4a0   : > { %v9412_v39 = vadd.f32 %v9362_v6, %v4854_v28  ;;  %v4975_v62 = vadd.f32 %v4974_v43, %v9408_v38  ;;  %v6370_v42 = vpop.f32.mrb[78].mxu0 }
 0x4a1   : > { %v4857_v3 = vpop.f32.mrb[79].mxu0  ;;  %v9424_v53 = vadd.f32 %v6370_v42, %v9362_v6 }
 0x4a2   : > { %v4976_v16 = vadd.f32 %v4975_v62, %v9412_v39  ;;  %v9417_v0 = vadd.f32 %v9362_v6, %v4857_v3 }
 0x4a4   : > { %v4977_v58 = vadd.f32 %v4976_v16, %v9417_v0 }
 0x4a6   : > { %v4978_v35 = vadd.f32 %v4977_v58, %v9420_v11  ;;  %v6373_v27 = vpop.f32.mrb[80].mxu0 }
 0x4a7   : > { %v4870_v12 = vpop.f32.mrb[81].mxu0  ;;  %v9436_v31 = vadd.f32 %v6373_v27, %v9362_v6 }
 0x4a8   : > { %v9428_v54 = vadd.f32 %v9362_v6, %v4870_v12  ;;  %v4979_v10 = vadd.f32 %v4978_v35, %v9424_v53  ;;  %v6374_v37 = vpop.f32.mrb[82].mxu0 }
 0x4a9   : > { %v4873_v15 = vpop.f32.mrb[83].mxu0  ;;  %v9440_v13 = vadd.f32 %v6374_v37, %v9362_v6 }
 0x4aa   : > { %v4980_v57 = vadd.f32 %v4979_v10, %v9428_v54  ;;  %v9433_v5 = vadd.f32 %v9362_v6, %v4873_v15 }
 0x4ac   : > { %v4981_v20 = vadd.f32 %v4980_v57, %v9433_v5 }
 0x4ae   : > { %v4982_v51 = vadd.f32 %v4981_v20, %v9436_v31  ;;  %v6377_v30 = vpop.f32.mrb[84].mxu0 }
 0x4af   : > { %v4886_v14 = vpop.f32.mrb[85].mxu0  ;;  %v9452_v49 = vadd.f32 %v6377_v30, %v9362_v6 }
 0x4b0   : > { %v9444_v18 = vadd.f32 %v9362_v6, %v4886_v14  ;;  %v4983_v8 = vadd.f32 %v4982_v51, %v9440_v13  ;;  %v6378_v46 = vpop.f32.mrb[86].mxu0 }
 0x4b1   : > { %v4889_v32 = vpop.f32.mrb[87].mxu0  ;;  %v9456_v19 = vadd.f32 %v6378_v46, %v9362_v6 }
 0x4b2   : > { %v4984_v55 = vadd.f32 %v4983_v8, %v9444_v18  ;;  %v9449_v33 = vadd.f32 %v9362_v6, %v4889_v32  ;;  %v5090_v8 = vld [vmem:[%s9712_s9] sm:$0xff] }
 0x4b4   : > { %v4985_v50 = vadd.f32 %v4984_v55, %v9449_v33 }
 0x4b6   : > { %v4986_v29 = vadd.f32 %v4985_v50, %v9452_v49  ;;  %v6381_v1 = vpop.f32.mrb[88].mxu0 }
 0x4b7   : > { %v4902_v45 = vpop.f32.mrb[89].mxu0  ;;  %v9468_v59 = vadd.f32 %v6381_v1, %v9362_v6 }
 0x4b8   : > { %v9460_v63 = vadd.f32 %v9362_v6, %v4902_v45  ;;  %v4987_v22 = vadd.f32 %v4986_v29, %v9456_v19  ;;  %v6382_v4 = vpop.f32.mrb[90].mxu0  ;;  %v5091_v29 = vld [vmem:[%s9713_s10] sm:$0x1] }
 0x4b9   : > { %v4905_v21 = vpop.f32.mrb[91].mxu0  ;;  %v9472_v25 = vadd.f32 %v6382_v4, %v9362_v6 }
 0x4ba   : > { %v4988_v48 = vadd.f32 %v4987_v22, %v9460_v63  ;;  %v9465_v47 = vadd.f32 %v9362_v6, %v4905_v21 }
 0x4bc   : > { %v4989_v17 = vadd.f32 %v4988_v48, %v9465_v47  ;;  %v5206_v48 = vsub.s32 0, %v7272_v9 }
 0x4be   : > { %v4990_v34 = vadd.f32 %v4989_v17, %v9468_v59  ;;  %v6385_v43 = vpop.f32.mrb[92].mxu0 }
 0x4bf   : > { %v4918_v44 = vpop.f32.mrb[93].mxu0  ;;  %v9484_v35 = vadd.f32 %v6385_v43, %v9362_v6 }
 0x4c0   : > { %v9476_v28 = vadd.f32 %v9362_v6, %v4918_v44  ;;  %v4991_v62 = vadd.f32 %v4990_v34, %v9472_v25  ;;  %v6386_v42 = vpop.f32.mrb[94].mxu0 }
 0x4c1   : > { %v4921_v3 = vpop.f32.mrb[95].mxu0  ;;  %v9488_v12 = vadd.f32 %v6386_v42, %v9362_v6 }
 0x4c2   : > { %v4992_v16 = vadd.f32 %v4991_v62, %v9476_v28  ;;  %v9481_v58 = vadd.f32 %v9362_v6, %v4921_v3  ;;  %v5018_v6 = vld [vmem:[%s9711_s8] sm:$0x1] }
 0x4c4   : > { %v4993_v27 = vadd.f32 %v4992_v16, %v9481_v58 }
 0x4c6   : > { %v4994_v10 = vadd.f32 %v4993_v27, %v9484_v35 }
 0x4c8   : > { %v4995_v37 = vadd.f32 %v4994_v10, %v9488_v12  ;;  %v5242_v10 = vld [vmem:[%s7188_s27 + $0x10] sm:$0xff] }
 0x4ca   : > { %v4996_v15 = vrot.slane %v4995_v37, 4 }
 0x4cc   : > { %v4997_v57 = vadd.f32 %v4996_v15, %v4995_v37  ;;  %v5241_v37 = vld [vmem:[%s7188_s27 + $0x8] sm:$0xff] }
 0x4ce   : > { %v4998_v20 = vrot.slane %v4997_v57, 2 }
 0x4d0   : > { %v4999_v51 = vadd.f32 %v4998_v20, %v4997_v57  ;;  %v5245_v57 = vld [vmem:[%s7188_s27 + $0x28] sm:$0xff] }
 0x4d2   : > { %v5000_v30 = vrot.slane %v4999_v51, 1 }
 0x4d4   : > { %v5001_v14 = vadd.f32 %v5000_v30, %v4999_v51 }
 0x4d6   : > { %6420 = vmatmul.mubr.f32.vlgmr.msra.gmra.mrb[96].mxu0 %v5001_v14 }
 0x4d7   : > { %6424 = vmatprep.mubr.msk.f32.mxu0 %vm6978_vm9, %v6979_v56  ;;  %6423 = vmatpush3.msra.mxu0 %v5090_v8 }
 0x5a9   : > { %v5085_v46 = vpop.f32.mrb[96].mxu0 }
 0x5aa   : > { %v5086_v32 = vadd.f32 %v5085_v46, %v5018_v6  ;;  %v6421_v55 = vpop.f32.mrb[97].mxu0  ;;  %v5252_v46 = vld [vmem:[%s7188_s27 + $0x60] sm:$0xff] }
 0x5ac   : > { %v5089_v50 = vmax.f32 %v5086_v32, 0.0 }
 0x5ae   : > { %6425 = vmatmul.mubr.msk.f32.vlgmr.msra.gmra.mrb[98].mxu0 %vm5092_vm14, %v5089_v50  ;;  %v5258_v50 = vld [vmem:[%s7188_s27 + $0x90] sm:$0xff] }
 0x681   : > { %v5162_v56 = vpop.f32.mrb[98].mxu0 }
 0x682   : > { %v5163_v1 = vadd.f32 %v5162_v56, %v5091_v29  ;;  %v6426_v45 = vpop.f32.mrb[99].mxu0 }
 0x684   : > { %v5688_v22 = vmul.f32 -1.442695, %v5163_v1  ;;  %v5257_v1 = vld [vmem:[%s7188_s27 + $0x88] sm:$0xff] }
 0x686   : > { %6830 = vpow2.f32 %v5688_v22 }
 0x690   : > { %v6831_v4 = vpop.eup %6830 }
 0x691   : > { %v5169_v21 = vadd.f32 1.0, %v6831_v4 }
 0x693   : > { %6832 = vrcp.f32 %v5169_v21  ;;  %v5262_v21 = vld [vmem:[%s7188_s27 + $0xb0] sm:$0xff] }
 0x69d   : > { %v6833_v17 = vpop.eup %6832 }
 0x69e   : > { %v5207_v34 = vrot.slane %v6833_v17, %v5206_v48 }
 0x6a0   : > { %v5208_v43 = vmul.f32 %v5207_v34, %v9365_v40  ;;  %v5209_v44 = vmul.f32 %v5207_v34, %v9368_v26  ;;  %v5210_v62 = vmul.f32 %v5207_v34, %v9371_v41  ;;  %v5211_v42 = vmul.f32 %v5207_v34, %v9376_v61 }
 0x6a1   : > { %v5212_v3 = vmul.f32 %v5207_v34, %v9380_v23  ;;  %v5213_v16 = vmul.f32 %v5207_v34, %v9385_v60  ;;  %v5214_v9 = vmul.f32 %v5207_v34, %v9388_v24  ;;  %v5215_v27 = vmul.f32 %v5207_v34, %v9392_v7  ;;  %v5240_v23 = vld [vmem:[%s7188_s27] sm:$0xff]  ;;  %v5243_v60 = vld [vmem:[%s7188_s27 + $0x18] sm:$0xff] }
 0x6a2   : > { %v5216_v40 = vmul.f32 %v5207_v34, %v9396_v2  ;;  %v5217_v26 = vmul.f32 %v5207_v34, %v9401_v36  ;;  %v5218_v41 = vmul.f32 %v5207_v34, %v9404_v52  ;;  %v5219_v61 = vmul.f32 %v5207_v34, %v9408_v38  ;;  %v5246_v36 = vld [vmem:[%s7188_s27 + $0x30] sm:$0xff]  ;;  %v5244_v52 = vld [vmem:[%s7188_s27 + $0x20] sm:$0xff]  ;;  %v5247_v38 = vld [vmem:[%s7188_s27 + $0x38] sm:$0xff] }
 0x6a3   : > { %v5220_v24 = vmul.f32 %v5207_v34, %v9412_v39  ;;  %v5221_v7 = vmul.f32 %v5207_v34, %v9417_v0  ;;  %v5222_v15 = vmul.f32 %v5207_v34, %v9420_v11  ;;  %v5223_v2 = vmul.f32 %v5207_v34, %v9424_v53  ;;  %v5250_v0 = vld [vmem:[%s7188_s27 + $0x50] sm:$0xff]  ;;  %v5248_v11 = vld [vmem:[%s7188_s27 + $0x40] sm:$0xff]  ;;  %v5251_v53 = vld [vmem:[%s7188_s27 + $0x58] sm:$0xff] }
 0x6a4   : > { %v5224_v20 = vmul.f32 %v5207_v34, %v9428_v54  ;;  %v5225_v51 = vmul.f32 %v5207_v34, %v9433_v5  ;;  %v5226_v30 = vmul.f32 %v5207_v34, %v9436_v31  ;;  %v5227_v39 = vmul.f32 %v5207_v34, %v9440_v13  ;;  %v5249_v5 = vld [vmem:[%s7188_s27 + $0x48] sm:$0xff]  ;;  %v5254_v31 = vld [vmem:[%s7188_s27 + $0x70] sm:$0xff] }
 0x6a5   : > { %v5228_v14 = vmul.f32 %v5207_v34, %v9444_v18  ;;  %v5229_v8 = vmul.f32 %v5207_v34, %v9449_v33  ;;  %v5230_v6 = vmul.f32 %v5207_v34, %v9452_v49  ;;  %v5231_v54 = vmul.f32 %v5207_v34, %v9456_v19  ;;  %v5255_v33 = vld [vmem:[%s7188_s27 + $0x78] sm:$0xff]  ;;  %v5253_v49 = vld [vmem:[%s7188_s27 + $0x68] sm:$0xff] }
 0x6a6   : > { %v5232_v13 = vmul.f32 %v5207_v34, %v9460_v63  ;;  %v5233_v32 = vmul.f32 %v5207_v34, %v9465_v47  ;;  %v5234_v55 = vmul.f32 %v5207_v34, %v9468_v59  ;;  %v5235_v18 = vmul.f32 %v5207_v34, %v9472_v25  ;;  %v5256_v47 = vld [vmem:[%s7188_s27 + $0x80] sm:$0xff]  ;;  %v5259_v59 = vld [vmem:[%s7188_s27 + $0x98] sm:$0xff] }
 0x6a7   : > { %v5236_v19 = vmul.f32 %v5207_v34, %v9476_v28  ;;  %v5237_v29 = vmul.f32 %v5207_v34, %v9481_v58  ;;  %v5238_v56 = vmul.f32 %v5207_v34, %v9484_v35  ;;  %v5239_v63 = vmul.f32 %v5207_v34, %v9488_v12  ;;  %v5260_v28 = vld [vmem:[%s7188_s27 + $0xa0] sm:$0xff]  ;;  %v5263_v58 = vld [vmem:[%s7188_s27 + $0xb8] sm:$0xff]  ;;  %v5261_v34 = vld [vmem:[%s7188_s27 + $0xa8] sm:$0xff] }
 0x6a8   : > { %v5272_v25 = vadd.f32 %v5240_v23, %v5208_v43  ;;  %v5273_v45 = vadd.f32 %v5241_v37, %v5209_v44  ;;  %v5274_v22 = vadd.f32 %v5242_v10, %v5210_v62  ;;  %v5275_v4 = vadd.f32 %v5243_v60, %v5211_v42  ;;  %v5266_v23 = vld [vmem:[%s7188_s27 + $0xd0] sm:$0xff]  ;;  %v5264_v43 = vld [vmem:[%s7188_s27 + $0xc0] sm:$0xff]  ;;  %v5267_v42 = vld [vmem:[%s7188_s27 + $0xd8] sm:$0xff] }
 0x6a9   : > { %v5276_v48 = vadd.f32 %v5244_v52, %v5212_v3  ;;  %v5277_v35 = vadd.f32 %v5245_v57, %v5213_v16  ;;  %v5278_v17 = vadd.f32 %v5246_v36, %v5214_v9  ;;  %v5279_v12 = vadd.f32 %v5247_v38, %v5215_v27  ;;  %v5265_v60 = vld [vmem:[%s7188_s27 + $0xc8] sm:$0xff]  ;;  %v5270_v3 = vld [vmem:[%s7188_s27 + $0xf0] sm:$0xff]  ;;  %v5268_v36 = vld [vmem:[%s7188_s27 + $0xe0] sm:$0xff] }
 0x6aa   : > { %v5280_v37 = vadd.f32 %v5248_v11, %v5216_v40  ;;  %v5281_v44 = vadd.f32 %v5249_v5, %v5217_v26  ;;  %v5282_v62 = vadd.f32 %v5250_v0, %v5218_v41  ;;  %v5283_v10 = vadd.f32 %v5251_v53, %v5219_v61  ;;  %v5271_v27 = vld [vmem:[%s7188_s27 + $0xf8] sm:$0xff]  ;;  %v5269_v38 = vld [vmem:[%s7188_s27 + $0xe8] sm:$0xff]  ;;  %s9602_s27 = scalar_lea.vmem [#allocation9], %s5473_s28  ;;  %s5695_s28 = sshll.u32 %s7064_s21, 12 }
 0x6ab   : > { %v5284_v52 = vadd.f32 %v5252_v46, %v5220_v24  ;;  %v5285_v16 = vadd.f32 %v5253_v49, %v5221_v7  ;;  %v5286_v57 = vadd.f32 %v5254_v31, %v5222_v15  ;;  %v5287_v9 = vadd.f32 %v5255_v33, %v5223_v2  ;;  %s5382_s30 = sshll.u32 %s9602_s27, 4  ;;  %s9641_s13 = scalar_lea.hbm %s10547_s23, %s5695_s28  ;;  %s9643_s30 = int_to_ptr.vmem [resolvable:$true] %s5382_s30 }
 0x6ac   : > { %v9568_v11 = vadd.f32 %v5256_v47, %v5224_v20  ;;  %v9570_v40 = vadd.f32 %v5257_v1, %v5225_v51  ;;  %v9572_v5 = vadd.f32 %v5258_v50, %v5226_v30  ;;  %v9574_v26 = vadd.f32 %v5259_v59, %v5227_v39  ;;  %s6898_s17 = scalar_lea.vmem %s9643_s30, 4096  ;;  %p6905_p10 = scmp.lt.s32.totalorder %s9643_s30, %s6903_s15 }
 0x6ad   : > { %v9576_v41 = vadd.f32 %v5260_v28, %v5228_v14  ;;  %v9578_v61 = vadd.f32 %v5261_v34, %v5229_v8  ;;  %v9580_v0 = vadd.f32 %v5262_v21, %v5230_v6  ;;  %v9582_v24 = vadd.f32 %v5263_v58, %v5231_v54  ;;  %p6899_p4 = scmp.ne.s32.totalorder %s9643_s30, %s6898_s17  ;;  %p6906_p13 = scmp.lt.s32.totalorder %s6904_s22, %s6898_s17 }
 0x6ae   : > { %v9584_v7 = vadd.f32 %v5264_v43, %v5232_v13  ;;  %v9586_v15 = vadd.f32 %v5265_v60, %v5233_v32  ;;  %v9588_v2 = vadd.f32 %v5266_v23, %v5234_v55  ;;  %v9590_v20 = vadd.f32 %v5267_v42, %v5235_v18 }
 0x6af   : > { %v9592_v51 = vadd.f32 %v5268_v36, %v5236_v19  ;;  %v9594_v30 = vadd.f32 %v5269_v38, %v5237_v29  ;;  %v9596_v39 = vadd.f32 %v5270_v3, %v5238_v56  ;;  %v9598_v53 = vadd.f32 %v5271_v27, %v5239_v63  ;;  %p6900_p6 = pnand %p6899_p4, %p7134_p12  ;;  %p6907_p3 = por %p6906_p13, %p6905_p10 }
 0x6b0   : > { %v5304_v14 = vmax.f32 %v5272_v25, 0.0  ;;  %v5305_v8 = vmax.f32 %v5273_v45, 0.0  ;;  %v5306_v6 = vmax.f32 %v5274_v22, 0.0  ;;  %v5307_v54 = vmax.f32 %v5275_v4, 0.0 }
 0x6b1   : > { %v5308_v31 = vmax.f32 %v5276_v48, 0.0  ;;  %v5309_v46 = vmax.f32 %v5277_v35, 0.0  ;;  %v5310_v13 = vmax.f32 %v5278_v17, 0.0  ;;  %v5311_v32 = vmax.f32 %v5279_v12, 0.0  ;;  %p6901_p8 = pneg %p6900_p6 }
 0x6b2   : > { %v5312_v55 = vmax.f32 %v5280_v37, 0.0  ;;  %v5313_v18 = vmax.f32 %v5281_v44, 0.0  ;;  %v5314_v33 = vmax.f32 %v5282_v62, 0.0  ;;  %v5315_v49 = vmax.f32 %v5283_v10, 0.0  ;;  %5336 = vst [vmem:[%s9602_s27] sm:$0xff] %v5304_v14  ;;  %5337 = vst [vmem:[%s9602_s27 + $0x8] sm:$0xff] %v5305_v8 }
 0x6b3   : > { %5338 = vst [vmem:[%s9602_s27 + $0x10] sm:$0xff] %v5306_v6  ;;  %5339 = vst [vmem:[%s9602_s27 + $0x18] sm:$0xff] %v5307_v54  ;;  %v5316_v50 = vmax.f32 %v5284_v52, 0.0  ;;  %v5317_v19 = vmax.f32 %v5285_v16, 0.0  ;;  %v5318_v29 = vmax.f32 %v5286_v57, 0.0  ;;  %v5319_v56 = vmax.f32 %v5287_v9, 0.0  ;;  %p6908_p7 = pnand %p6907_p3, %p6901_p8 }
 0x6b4   : > { %5340 = vst [vmem:[%s9602_s27 + $0x20] sm:$0xff] %v5308_v31  ;;  %5341 = vst [vmem:[%s9602_s27 + $0x28] sm:$0xff] %v5309_v46  ;;  %v5320_v63 = vmax.f32 %v9568_v11, 0.0  ;;  %v5321_v47 = vmax.f32 %v9570_v40, 0.0  ;;  %v5322_v59 = vmax.f32 %v9572_v5, 0.0  ;;  %v5323_v1 = vmax.f32 %v9574_v26, 0.0 }
 0x6b5   : > { %5342 = vst [vmem:[%s9602_s27 + $0x30] sm:$0xff] %v5310_v13  ;;  %5343 = vst [vmem:[%s9602_s27 + $0x38] sm:$0xff] %v5311_v32  ;;  %v5324_v25 = vmax.f32 %v9576_v41, 0.0  ;;  %v5325_v45 = vmax.f32 %v9578_v61, 0.0  ;;  %v5326_v22 = vmax.f32 %v9580_v0, 0.0  ;;  %v5327_v4 = vmax.f32 %v9582_v24, 0.0 }
 0x6b6   : > { %5344 = vst [vmem:[%s9602_s27 + $0x40] sm:$0xff] %v5312_v55  ;;  %5345 = vst [vmem:[%s9602_s27 + $0x48] sm:$0xff] %v5313_v18  ;;  %v5328_v21 = vmax.f32 %v9584_v7, 0.0  ;;  %v5329_v28 = vmax.f32 %v9586_v15, 0.0  ;;  %v5330_v58 = vmax.f32 %v9588_v2, 0.0  ;;  %v5331_v48 = vmax.f32 %v9590_v20, 0.0 }
 0x6b7   : > { %5346 = vst [vmem:[%s9602_s27 + $0x50] sm:$0xff] %v5314_v33  ;;  %5347 = vst [vmem:[%s9602_s27 + $0x58] sm:$0xff] %v5315_v49  ;;  %v5332_v35 = vmax.f32 %v9592_v51, 0.0  ;;  %v5333_v17 = vmax.f32 %v9594_v30, 0.0  ;;  %v5334_v12 = vmax.f32 %v9596_v39, 0.0  ;;  %v5335_v34 = vmax.f32 %v9598_v53, 0.0 }
 0x6b8   : > { %5348 = vst [vmem:[%s9602_s27 + $0x60] sm:$0xff] %v5316_v50  ;;  %5349 = vst [vmem:[%s9602_s27 + $0x68] sm:$0xff] %v5317_v19 }
 0x6b9   : > { %5350 = vst [vmem:[%s9602_s27 + $0x70] sm:$0xff] %v5318_v29  ;;  %5351 = vst [vmem:[%s9602_s27 + $0x78] sm:$0xff] %v5319_v56 }
 0x6ba   : > { %5352 = vst [vmem:[%s9602_s27 + $0x80] sm:$0xff] %v5320_v63  ;;  %5353 = vst [vmem:[%s9602_s27 + $0x88] sm:$0xff] %v5321_v47 }
 0x6bb   : > { %5354 = vst [vmem:[%s9602_s27 + $0x90] sm:$0xff] %v5322_v59  ;;  %5355 = vst [vmem:[%s9602_s27 + $0x98] sm:$0xff] %v5323_v1 }
 0x6bc   : > { %5356 = vst [vmem:[%s9602_s27 + $0xa0] sm:$0xff] %v5324_v25  ;;  %5357 = vst [vmem:[%s9602_s27 + $0xa8] sm:$0xff] %v5325_v45 }
 0x6bd   : > { %5358 = vst [vmem:[%s9602_s27 + $0xb0] sm:$0xff] %v5326_v22  ;;  %5359 = vst [vmem:[%s9602_s27 + $0xb8] sm:$0xff] %v5327_v4 }
 0x6be   : > { %5360 = vst [vmem:[%s9602_s27 + $0xc0] sm:$0xff] %v5328_v21  ;;  %5361 = vst [vmem:[%s9602_s27 + $0xc8] sm:$0xff] %v5329_v28 }
 0x6bf   : > { %5362 = vst [vmem:[%s9602_s27 + $0xd0] sm:$0xff] %v5330_v58  ;;  %5363 = vst [vmem:[%s9602_s27 + $0xd8] sm:$0xff] %v5331_v48 }
 0x6c0   : > { %5364 = vst [vmem:[%s9602_s27 + $0xe0] sm:$0xff] %v5332_v35  ;;  %5365 = vst [vmem:[%s9602_s27 + $0xe8] sm:$0xff] %v5333_v17 }
 0x6c1   : > { %5366 = vst [vmem:[%s9602_s27 + $0xf0] sm:$0xff] %v5334_v12  ;;  %5367 = vst [vmem:[%s9602_s27 + $0xf8] sm:$0xff] %v5335_v34 }
 0x6c2   : > { %6911 = shalt.err (!%p6908_p7)
}
 0x6c3   : > { %s6912_s25 = scalar_lea.hbm %s9641_s13, 4096  ;;  %s6916_s28 = scalar_lea.hbm %s10547_s23, 8192 }
 0x6c4   : > { %p6913_p9 = scmp.ne.s32.totalorder %s9641_s13, %s6912_s25  ;;  %p6917_p5 = scmp.lt.u32.totalorder %s9641_s13, %s10547_s23 }
 0x6c5   : > { %p6918_p11 = scmp.lt.u32.totalorder %s6916_s28, %s6912_s25  ;;  %p6920_p4 = scmp.lt.u32.totalorder %s6912_s25, %s9641_s13 }
 0x6c6   : > { %p6914_p2 = pnand %p6913_p9, %p7134_p12 }
 0x6c7   : > { %p6919_p1 = por %p6918_p11, %p6917_p5 }
 0x6c8   : > { %p6915_p0 = pneg %p6914_p2 }
 0x6c9   : > { %p6921_p6 = por %p6920_p4, %p6919_p1 }
 0x6cb   : > { %p6922_p8 = pnand %p6921_p6, %p6915_p0 }
 0x6cd   : > { %6925 = shalt.err (!%p6922_p8)
}
 0x6ce   : > { %s6981_s17 = smov 128   ;;  %s6982_s24 = smov 8  }
 0x6cf   : > { %6721 = dma.vmem_to_hbm [thread:$0]  (%p7134_p12), %s9643_s30, 4096, %s9641_s13, %s5369_s11, %s6981_s17, %s6981_s17, %s6982_s24  }
 0x6d0 PF: > { %s10548_s15 = sld [smem:[#allocation13_spill]]  ;;  %s10549_s22 = sld [smem:[#allocation14_spill]] }
 0x6d1   : > { %p10551_p13 = scmp.ge.s32.totalorder %s6968_s20, 2 }
 0x6d6   : > { %s5397_s14 = sand.u32 1, %s10548_s15   ;;  %p10550_p10 = scmp.ne.s32.totalorder %s10549_s22, 0 }
 0x6d7   : > { %s5398_s25 = scalar_lea.sflag [#allocation6], %s5397_s14 }
 0x6d8   : > { %p6732_p3 = pnand %p10551_p13, %p10550_p10 }
 0x6da   : > { %6951 = dma.done.wait (!%p6732_p3), %s5398_s25, 4096  }
 0x6db   : > { %6953 = vsyncadd (!%p6732_p3), %s5398_s25, 4294963200  ;;  %s10552_s20 = sld [smem:[#allocation15_spill]]  ;;  %s10553_s17 = smov %s6960_s18 }
 0x6dc   : > { %s10554_s18 = smov %s6964_s19  ;;  %s10555_s19 = smov %s7130_s29 }
 0x6e1   : > { %p25_p7 = scmp.ge.s32.totalorder %s10552_s20, 4  }
 0x6e3   :  { %27 = sbr.rel (!%p25_p7) target bundleno = 8 (0x8), region = 121 }
 0x6ea   :  { %5403 = vsyncpa [#allocation5], 1 }
 0x6eb   :  { %5405 = vsyncpa [#allocation5 + $0x1], 1 }
 0x6ec   :  { %5406 = vsyncpa [#allocation8], 1 }
 0x6ed   :  { %5407 = vsyncpa [#allocation6], 1 }
 0x6ee   :  { %5409 = vsyncpa [#allocation6 + $0x1], 1 }

</bundles_post_ra>
